<compile_context>
chip_gen: v5e
topology: v5e:2x2
jax: 0.10.0
libtpu: 0.0.40
codegen_flags: <defaults>
</compile_context>

<pallas_src>
from functools import partial

import jax
import jax.numpy as jnp
from jax import lax
from jax.experimental import pallas as pl
from jax.experimental.pallas import tpu as pltpu


def _bottleneck_kernel(x_ref, w1_ref, w2_ref, w3_ref, shifts_ref,
                       out_ref, pad_ref,
                       *, bb, h, w, cmid, compute_dtype):
    # Per grid step (batch_block images):
    #   x_ref     : (bb*h*w, Cin)          f32
    #   w1_ref    : (Cin, Cmid)            compute_dtype, BN1 scale folded in
    #   w2_ref    : (9, Cmid, Cmid)        compute_dtype, BN2 scale folded in
    #   w3_ref    : (Cmid, Cout)           compute_dtype, BN3 scale folded in
    #   shifts_ref: (3, Cout)              f32 packed BN shifts (b1, b2, b3)
    #   out_ref   : (bb*h*w, Cout)         f32
    #   pad_ref   : VMEM (bb, h+2, w+2, Cmid) compute_dtype zero-padded conv3x3 input
    m = bb * h * w
    cd = compute_dtype

    # ---- conv1 1x1 (BN1 scale folded into w1) -> +shift -> relu ----
    h1 = jnp.dot(x_ref[...].astype(cd), w1_ref[...],
                 preferred_element_type=jnp.float32)
    h1 = jnp.maximum(h1 + shifts_ref[0:1, :cmid], 0.0)

    # ---- conv2 3x3 (stride=1, padding=1) -> +shift -> relu ----
    # Re-zero only the 1-wide border (the interior is overwritten every step);
    # cheap and correct even when the grid is partitioned across TensorCores.
    zrow = jnp.zeros((bb, 1, w + 2, cmid), cd)
    zcol = jnp.zeros((bb, h + 2, 1, cmid), cd)
    pad_ref[:, 0:1, :, :] = zrow
    pad_ref[:, h + 1:h + 2, :, :] = zrow
    pad_ref[:, :, 0:1, :] = zcol
    pad_ref[:, :, w + 1:w + 2, :] = zcol
    pad_ref[:, 1:h + 1, 1:w + 1, :] = h1.astype(cd).reshape(bb, h, w, cmid)

    # Nine accumulating matmuls: no lane-dim concatenation, no (M, 9*Cmid)
    # intermediate.  Taps are read from the bf16 scratch already in the MXU
    # input dtype.
    acc = jnp.zeros((m, cmid), jnp.float32)
    for ky in range(3):
        for kx in range(3):
            tap = pad_ref[:, ky:ky + h, kx:kx + w, :].reshape(m, cmid)
            acc = acc + jnp.dot(tap, w2_ref[ky * 3 + kx],
                                preferred_element_type=jnp.float32)
    h2 = jnp.maximum(acc + shifts_ref[1:2, :cmid], 0.0)

    # ---- conv3 1x1 (expansion, BN3 scale folded into w3) -> +shift -> relu ----
    h3 = jnp.dot(h2.astype(cd), w3_ref[...],
                 preferred_element_type=jnp.float32)
    h3 = jnp.maximum(h3 + shifts_ref[2:3, :], 0.0)

    # ---- residual add (identity path; matches the reference forward) ----
    # Re-read x here instead of keeping it live across the three matmuls.
    out_ref[...] = (h3 + x_ref[...]).astype(out_ref.dtype)


def bottleneck_block(x, w1, w2, w3, s1, b1, s2, b2, s3, b3,
                     *, batch_block=1, compute_dtype=jnp.bfloat16):
    """x: (B, H, W, Cin) float32, NHWC. Returns (B, H, W, Cout) with Cout == Cin.

    batch_block  : images folded into one grid step (larger matmul M).
    compute_dtype: dtype of matmul inputs; bf16 (default) on all generations,
                   f32 only for bit-exact verification.
    """
    B, H, W, Cin = x.shape
    Cmid = w1.shape[1]
    Cout = w3.shape[-1]
    assert Cin == Cout, "identity residual requires in_channel == expansion*out_channel"
    assert B % batch_block == 0, "batch must be divisible by batch_block"
    Bb = batch_block
    M = Bb * H * W

    # ---- wrapper-side parameter prep (all folding done in f32, then cast) ----
    # Fold BN scales into the weights' output channels; only shifts remain.
    w1f = (w1 * s1).astype(compute_dtype)                         # (Cin, Cmid)
    w2f = (w2 * s2.reshape(1, 1, 1, Cmid)).reshape(9, Cmid, Cmid).astype(compute_dtype)
    w3f = (w3 * s3).astype(compute_dtype)                         # (Cmid, Cout)
    shifts = jnp.zeros((3, Cout), jnp.float32)
    shifts = shifts.at[0, :Cmid].set(b1.reshape(-1))
    shifts = shifts.at[1, :Cmid].set(b2.reshape(-1))
    shifts = shifts.at[2, :].set(b3.reshape(-1))

    # 2-D slab for I/O.
    x2d = x.reshape(B * H * W, Cin)

    kernel = partial(_bottleneck_kernel, bb=Bb, h=H, w=W, cmid=Cmid,
                     compute_dtype=compute_dtype)

    grid = (B // Bb,)
    in_specs = [
        pl.BlockSpec((M, Cin), lambda b: (b, 0)),
        pl.BlockSpec((Cin, Cmid), lambda b: (0, 0)),
        pl.BlockSpec((9, Cmid, Cmid), lambda b: (0, 0, 0)),
        pl.BlockSpec((Cmid, Cout), lambda b: (0, 0)),
        pl.BlockSpec((3, Cout), lambda b: (0, 0)),
    ]
    out_specs = pl.BlockSpec((M, Cout), lambda b: (b, 0))

    # Explicit VMEM budget: double-buffered I/O blocks + weights + scratch +
    # rough live intermediates, with headroom, capped at 64 MiB (v7x physical).
    cd_bytes = jnp.dtype(compute_dtype).itemsize
    vmem_est = (
        2 * (M * Cin * 4 + M * Cout * 4)
        + 2 * (Cin * Cmid + 9 * Cmid * Cmid + Cmid * Cout) * cd_bytes
        + 2 * 3 * Cout * 4
        + Bb * (H + 2) * (W + 2) * Cmid * cd_bytes
        + M * (3 * Cmid + 2 * Cout) * 4
    )
    vmem_limit = int(min(max(int(vmem_est * 1.5), 32 * 1024 * 1024),
                         64 * 1024 * 1024))

    out2d = pl.pallas_call(
        kernel,
        out_shape=jax.ShapeDtypeStruct((B * H * W, Cout), jnp.float32),
        grid_spec=pltpu.PrefetchScalarGridSpec(
            num_scalar_prefetch=0,
            grid=grid,
            in_specs=in_specs,
            out_specs=out_specs,
            scratch_shapes=[
                pltpu.VMEM((Bb, H + 2, W + 2, Cmid), compute_dtype)],
        ),
        compiler_params=pltpu.CompilerParams(
            dimension_semantics=("parallel",),
            vmem_limit_bytes=vmem_limit),
    )(x2d, w1f, w2f, w3f, shifts)

    return out2d.reshape(B, H, W, Cout)


def _reference(x, w1, w2, w3, s1, b1, s2, b2, s3, b3):
    """Pure-JAX reference of the same forward pass (NHWC, eval-mode BN)."""
    h1 = jnp.maximum(jnp.einsum('bhwc,cm->bhwm', x, w1) * s1 + b1, 0.0)
    h2 = lax.conv_general_dilated(
        h1, w2, window_strides=(1, 1), padding=((1, 1), (1, 1)),
        dimension_numbers=('NHWC', 'HWIO', 'NHWC'))
    h2 = jnp.maximum(h2 * s2 + b2, 0.0)
    h3 = jnp.maximum(jnp.einsum('bhwm,mo->bhwo', h2, w3) * s3 + b3, 0.0)
    return h3 + x


def _make_bn_fold(key, c, eps=1e-5):
    k1, k2, k3, k4 = jax.random.split(key, 4)
    gamma = jax.random.uniform(k1, (c,), jnp.float32, 0.5, 1.5)
    beta = 0.1 * jax.random.normal(k2, (c,), jnp.float32)
    r_mean = 0.1 * jax.random.normal(k3, (c,), jnp.float32)
    r_var = jax.random.uniform(k4, (c,), jnp.float32, 0.5, 1.5)
    scale = gamma / jnp.sqrt(r_var + eps)
    shift = beta - r_mean * scale
    return scale.reshape(1, c), shift.reshape(1, c)


if __name__ == "__main__":
    # Block(in_channel=16, out_channel=4, stride=1) -> expansion*out_channel = 16
    B, H, W = 2, 16, 16
    out_channel = 4
    expansion = 4
    in_channel = out_channel * expansion          # identity add works
    cmid, cout = out_channel, out_channel * expansion

    key = jax.random.PRNGKey(0)
    kx, kw1, kw2, kw3, kb1, kb2, kb3 = jax.random.split(key, 7)

    x = jax.random.normal(kx, (B, H, W, in_channel), jnp.float32)
    w1 = 0.1 * jax.random.normal(kw1, (in_channel, cmid), jnp.float32)   # conv1 1x1
    w2 = 0.1 * jax.random.normal(kw2, (3, 3, cmid, cmid), jnp.float32)   # conv2 3x3 (HWIO)
    w3 = 0.1 * jax.random.normal(kw3, (cmid, cout), jnp.float32)         # conv3 1x1
    s1, b1 = _make_bn_fold(kb1, cmid)
    s2, b2 = _make_bn_fold(kb2, cmid)
    s3, b3 = _make_bn_fold(kb3, cout)

    ref = jax.block_until_ready(_reference(x, w1, w2, w3, s1, b1, s2, b2, s3, b3))

    # f32 matmul path: bit-accuracy verification of the kernel structure.
    out_f32 = jax.block_until_ready(
        bottleneck_block(x, w1, w2, w3, s1, b1, s2, b2, s3, b3,
                         batch_block=1, compute_dtype=jnp.float32))
    if not jnp.allclose(out_f32, ref, rtol=1e-3, atol=1e-3):
        raise AssertionError("f32 Pallas kernel does not match reference")

    # Default path: bf16 matmul inputs + bf16 conv3x3 scratch (all generations).
    out_bf16 = jax.block_until_ready(
        bottleneck_block(x, w1, w2, w3, s1, b1, s2, b2, s3, b3,
                         batch_block=1))
    if not jnp.allclose(out_bf16, ref, rtol=5e-2, atol=5e-2):
        raise AssertionError("bf16 Pallas kernel does not match reference")

    print("KERNEL_OK")
</pallas_src>

<mosaic_0001>
module attributes {stable_mosaic.version = 11 : i64} {
  func.func @_bottleneck_kernel(%arg0: i32, %arg1: memref<256x16xf32, #tpu.memory_space<vmem>>, %arg2: memref<16x4xf32, #tpu.memory_space<vmem>>, %arg3: memref<9x4x4xf32, #tpu.memory_space<vmem>>, %arg4: memref<4x16xf32, #tpu.memory_space<vmem>>, %arg5: memref<3x16xf32, #tpu.memory_space<vmem>>, %arg6: memref<256x16xf32, #tpu.memory_space<vmem>>, %arg7: memref<1x18x18x4xf32, #tpu.memory_space<vmem>>) attributes {dimension_semantics = [#tpu.dimension_semantics<parallel>], iteration_bounds = array<i64: 2>, scalar_prefetch = 0 : i64, scratch_operands = 1 : i64, tpu.core_type = #tpu.core_type<tc>, window_params = [{transform_indices = @transform_0, window_bounds = array<i64: 256, 16>}, {pipeline_mode = #tpu.pipeline_mode<synchronous>, transform_indices = @transform_1, window_bounds = array<i64: 16, 4>}, {pipeline_mode = #tpu.pipeline_mode<synchronous>, transform_indices = @transform_2, window_bounds = array<i64: 9, 4, 4>}, {pipeline_mode = #tpu.pipeline_mode<synchronous>, transform_indices = @transform_3, window_bounds = array<i64: 4, 16>}, {pipeline_mode = #tpu.pipeline_mode<synchronous>, transform_indices = @transform_4, window_bounds = array<i64: 3, 16>}, {transform_indices = @transform_5, window_bounds = array<i64: 256, 16>}]} {
    %c0 = arith.constant 0 : index
    %c0_0 = arith.constant 0 : index
    %0 = vector.load %arg1[%c0, %c0_0] : memref<256x16xf32, #tpu.memory_space<vmem>>, vector<256x16xf32>
    %c0_1 = arith.constant 0 : index
    %c0_2 = arith.constant 0 : index
    %1 = vector.load %arg2[%c0_1, %c0_2] : memref<16x4xf32, #tpu.memory_space<vmem>>, vector<16x4xf32>
    %cst = arith.constant dense<0.000000e+00> : vector<256x4xf32>
    %2 = tpu.matmul %0, %1, %cst {dimension_numbers = #tpu.dot_dimension_numbers<[1], [0], [0], [1], [0, 0, 1, 1], [], []>} : vector<256x16xf32>, vector<16x4xf32>, vector<256x4xf32> -> vector<256x4xf32>
    %c0_3 = arith.constant 0 : index
    %c0_4 = arith.constant 0 : index
    %3 = vector.load %arg5[%c0_3, %c0_4] : memref<3x16xf32, #tpu.memory_space<vmem>>, vector<1x4xf32>
    %4 = vector.broadcast %3 : vector<1x4xf32> to vector<256x4xf32>
    %5 = arith.addf %2, %4 : vector<256x4xf32>
    %cst_5 = arith.constant 0.000000e+00 : f32
    %6 = vector.broadcast %cst_5 : f32 to vector<256x4xf32>
    %7 = arith.maximumf %5, %6 : vector<256x4xf32>
    %cst_6 = arith.constant 0.000000e+00 : f32
    %8 = vector.broadcast %cst_6 : f32 to vector<1x1x18x4xf32>
    %cst_7 = arith.constant 0.000000e+00 : f32
    %9 = vector.broadcast %cst_7 : f32 to vector<1x18x1x4xf32>
    %c0_8 = arith.constant 0 : index
    %c0_9 = arith.constant 0 : index
    %c0_10 = arith.constant 0 : index
    %c0_11 = arith.constant 0 : index
    %10 = vector.load %arg7[%c0_8, %c0_9, %c0_10, %c0_11] : memref<1x18x18x4xf32, #tpu.memory_space<vmem>>, vector<1x1x18x4xf32>
    tpu.vector_store %arg7[%c0_8, %c0_9, %c0_10, %c0_11], %8 {strides = array<i32>} : memref<1x18x18x4xf32, #tpu.memory_space<vmem>>, vector<1x1x18x4xf32>,
    %c0_12 = arith.constant 0 : index
    %c17 = arith.constant 17 : index
    %c0_13 = arith.constant 0 : index
    %c0_14 = arith.constant 0 : index
    %11 = vector.load %arg7[%c0_12, %c17, %c0_13, %c0_14] : memref<1x18x18x4xf32, #tpu.memory_space<vmem>>, vector<1x1x18x4xf32>
    tpu.vector_store %arg7[%c0_12, %c17, %c0_13, %c0_14], %8 {strides = array<i32>} : memref<1x18x18x4xf32, #tpu.memory_space<vmem>>, vector<1x1x18x4xf32>,
    %c0_15 = arith.constant 0 : index
    %c0_16 = arith.constant 0 : index
    %c0_17 = arith.constant 0 : index
    %c0_18 = arith.constant 0 : index
    %12 = vector.load %arg7[%c0_15, %c0_16, %c0_17, %c0_18] : memref<1x18x18x4xf32, #tpu.memory_space<vmem>>, vector<1x18x1x4xf32>
    tpu.vector_store %arg7[%c0_15, %c0_16, %c0_17, %c0_18], %9 {strides = array<i32>} : memref<1x18x18x4xf32, #tpu.memory_space<vmem>>, vector<1x18x1x4xf32>,
    %c0_19 = arith.constant 0 : index
    %c0_20 = arith.constant 0 : index
    %c17_21 = arith.constant 17 : index
    %c0_22 = arith.constant 0 : index
    %13 = vector.load %arg7[%c0_19, %c0_20, %c17_21, %c0_22] : memref<1x18x18x4xf32, #tpu.memory_space<vmem>>, vector<1x18x1x4xf32>
    tpu.vector_store %arg7[%c0_19, %c0_20, %c17_21, %c0_22], %9 {strides = array<i32>} : memref<1x18x18x4xf32, #tpu.memory_space<vmem>>, vector<1x18x1x4xf32>,
    %14 = vector.shape_cast %7 : vector<256x4xf32> to vector<1x16x16x4xf32>
    %c0_23 = arith.constant 0 : index
    %c1 = arith.constant 1 : index
    %c1_24 = arith.constant 1 : index
    %c0_25 = arith.constant 0 : index
    %15 = vector.load %arg7[%c0_23, %c1, %c1_24, %c0_25] : memref<1x18x18x4xf32, #tpu.memory_space<vmem>>, vector<1x16x16x4xf32>
    tpu.vector_store %arg7[%c0_23, %c1, %c1_24, %c0_25], %14 {strides = array<i32>} : memref<1x18x18x4xf32, #tpu.memory_space<vmem>>, vector<1x16x16x4xf32>,
    %cst_26 = arith.constant 0.000000e+00 : f32
    %16 = vector.broadcast %cst_26 : f32 to vector<256x4xf32>
    %c0_27 = arith.constant 0 : index
    %c0_28 = arith.constant 0 : index
    %c0_29 = arith.constant 0 : index
    %c0_30 = arith.constant 0 : index
    %17 = vector.load %arg7[%c0_27, %c0_28, %c0_29, %c0_30] : memref<1x18x18x4xf32, #tpu.memory_space<vmem>>, vector<1x16x16x4xf32>
    %18 = vector.shape_cast %17 : vector<1x16x16x4xf32> to vector<256x4xf32>
    %c0_31 = arith.constant 0 : index
    %c0_32 = arith.constant 0 : index
    %c0_33 = arith.constant 0 : index
    %19 = vector.load %arg3[%c0_31, %c0_32, %c0_33] : memref<9x4x4xf32, #tpu.memory_space<vmem>>, vector<1x4x4xf32>
    %20 = vector.shape_cast %19 : vector<1x4x4xf32> to vector<4x4xf32>
    %cst_34 = arith.constant dense<0.000000e+00> : vector<256x4xf32>
    %21 = tpu.matmul %18, %20, %cst_34 {dimension_numbers = #tpu.dot_dimension_numbers<[1], [0], [0], [1], [0, 0, 1, 1], [], []>} : vector<256x4xf32>, vector<4x4xf32>, vector<256x4xf32> -> vector<256x4xf32>
    %22 = arith.addf %16, %21 : vector<256x4xf32>
    %c0_35 = arith.constant 0 : index
    %c0_36 = arith.constant 0 : index
    %c1_37 = arith.constant 1 : index
    %c0_38 = arith.constant 0 : index
    %23 = vector.load %arg7[%c0_35, %c0_36, %c1_37, %c0_38] : memref<1x18x18x4xf32, #tpu.memory_space<vmem>>, vector<1x16x16x4xf32>
    %24 = vector.shape_cast %23 : vector<1x16x16x4xf32> to vector<256x4xf32>
    %c1_39 = arith.constant 1 : index
    %c0_40 = arith.constant 0 : index
    %c0_41 = arith.constant 0 : index
    %25 = vector.load %arg3[%c1_39, %c0_40, %c0_41] : memref<9x4x4xf32, #tpu.memory_space<vmem>>, vector<1x4x4xf32>
    %26 = vector.shape_cast %25 : vector<1x4x4xf32> to vector<4x4xf32>
    %cst_42 = arith.constant dense<0.000000e+00> : vector<256x4xf32>
    %27 = tpu.matmul %24, %26, %cst_42 {dimension_numbers = #tpu.dot_dimension_numbers<[1], [0], [0], [1], [0, 0, 1, 1], [], []>} : vector<256x4xf32>, vector<4x4xf32>, vector<256x4xf32> -> vector<256x4xf32>
    %28 = arith.addf %22, %27 : vector<256x4xf32>
    %c0_43 = arith.constant 0 : index
    %c0_44 = arith.constant 0 : index
    %c2 = arith.constant 2 : index
    %c0_45 = arith.constant 0 : index
    %29 = vector.load %arg7[%c0_43, %c0_44, %c2, %c0_45] : memref<1x18x18x4xf32, #tpu.memory_space<vmem>>, vector<1x16x16x4xf32>
    %30 = vector.shape_cast %29 : vector<1x16x16x4xf32> to vector<256x4xf32>
    %c2_46 = arith.constant 2 : index
    %c0_47 = arith.constant 0 : index
    %c0_48 = arith.constant 0 : index
    %31 = vector.load %arg3[%c2_46, %c0_47, %c0_48] : memref<9x4x4xf32, #tpu.memory_space<vmem>>, vector<1x4x4xf32>
    %32 = vector.shape_cast %31 : vector<1x4x4xf32> to vector<4x4xf32>
    %cst_49 = arith.constant dense<0.000000e+00> : vector<256x4xf32>
    %33 = tpu.matmul %30, %32, %cst_49 {dimension_numbers = #tpu.dot_dimension_numbers<[1], [0], [0], [1], [0, 0, 1, 1], [], []>} : vector<256x4xf32>, vector<4x4xf32>, vector<256x4xf32> -> vector<256x4xf32>
    %34 = arith.addf %28, %33 : vector<256x4xf32>
    %c0_50 = arith.constant 0 : index
    %c1_51 = arith.constant 1 : index
    %c0_52 = arith.constant 0 : index
    %c0_53 = arith.constant 0 : index
    %35 = vector.load %arg7[%c0_50, %c1_51, %c0_52, %c0_53] : memref<1x18x18x4xf32, #tpu.memory_space<vmem>>, vector<1x16x16x4xf32>
    %36 = vector.shape_cast %35 : vector<1x16x16x4xf32> to vector<256x4xf32>
    %c3 = arith.constant 3 : index
    %c0_54 = arith.constant 0 : index
    %c0_55 = arith.constant 0 : index
    %37 = vector.load %arg3[%c3, %c0_54, %c0_55] : memref<9x4x4xf32, #tpu.memory_space<vmem>>, vector<1x4x4xf32>
    %38 = vector.shape_cast %37 : vector<1x4x4xf32> to vector<4x4xf32>
    %cst_56 = arith.constant dense<0.000000e+00> : vector<256x4xf32>
    %39 = tpu.matmul %36, %38, %cst_56 {dimension_numbers = #tpu.dot_dimension_numbers<[1], [0], [0], [1], [0, 0, 1, 1], [], []>} : vector<256x4xf32>, vector<4x4xf32>, vector<256x4xf32> -> vector<256x4xf32>
    %40 = arith.addf %34, %39 : vector<256x4xf32>
    %c0_57 = arith.constant 0 : index
    %c1_58 = arith.constant 1 : index
    %c1_59 = arith.constant 1 : index
    %c0_60 = arith.constant 0 : index
    %41 = vector.load %arg7[%c0_57, %c1_58, %c1_59, %c0_60] : memref<1x18x18x4xf32, #tpu.memory_space<vmem>>, vector<1x16x16x4xf32>
    %42 = vector.shape_cast %41 : vector<1x16x16x4xf32> to vector<256x4xf32>
    %c4 = arith.constant 4 : index
    %c0_61 = arith.constant 0 : index
    %c0_62 = arith.constant 0 : index
    %43 = vector.load %arg3[%c4, %c0_61, %c0_62] : memref<9x4x4xf32, #tpu.memory_space<vmem>>, vector<1x4x4xf32>
    %44 = vector.shape_cast %43 : vector<1x4x4xf32> to vector<4x4xf32>
    %cst_63 = arith.constant dense<0.000000e+00> : vector<256x4xf32>
    %45 = tpu.matmul %42, %44, %cst_63 {dimension_numbers = #tpu.dot_dimension_numbers<[1], [0], [0], [1], [0, 0, 1, 1], [], []>} : vector<256x4xf32>, vector<4x4xf32>, vector<256x4xf32> -> vector<256x4xf32>
    %46 = arith.addf %40, %45 : vector<256x4xf32>
    %c0_64 = arith.constant 0 : index
    %c1_65 = arith.constant 1 : index
    %c2_66 = arith.constant 2 : index
    %c0_67 = arith.constant 0 : index
    %47 = vector.load %arg7[%c0_64, %c1_65, %c2_66, %c0_67] : memref<1x18x18x4xf32, #tpu.memory_space<vmem>>, vector<1x16x16x4xf32>
    %48 = vector.shape_cast %47 : vector<1x16x16x4xf32> to vector<256x4xf32>
    %c5 = arith.constant 5 : index
    %c0_68 = arith.constant 0 : index
    %c0_69 = arith.constant 0 : index
    %49 = vector.load %arg3[%c5, %c0_68, %c0_69] : memref<9x4x4xf32, #tpu.memory_space<vmem>>, vector<1x4x4xf32>
    %50 = vector.shape_cast %49 : vector<1x4x4xf32> to vector<4x4xf32>
    %cst_70 = arith.constant dense<0.000000e+00> : vector<256x4xf32>
    %51 = tpu.matmul %48, %50, %cst_70 {dimension_numbers = #tpu.dot_dimension_numbers<[1], [0], [0], [1], [0, 0, 1, 1], [], []>} : vector<256x4xf32>, vector<4x4xf32>, vector<256x4xf32> -> vector<256x4xf32>
    %52 = arith.addf %46, %51 : vector<256x4xf32>
    %c0_71 = arith.constant 0 : index
    %c2_72 = arith.constant 2 : index
    %c0_73 = arith.constant 0 : index
    %c0_74 = arith.constant 0 : index
    %53 = vector.load %arg7[%c0_71, %c2_72, %c0_73, %c0_74] : memref<1x18x18x4xf32, #tpu.memory_space<vmem>>, vector<1x16x16x4xf32>
    %54 = vector.shape_cast %53 : vector<1x16x16x4xf32> to vector<256x4xf32>
    %c6 = arith.constant 6 : index
    %c0_75 = arith.constant 0 : index
    %c0_76 = arith.constant 0 : index
    %55 = vector.load %arg3[%c6, %c0_75, %c0_76] : memref<9x4x4xf32, #tpu.memory_space<vmem>>, vector<1x4x4xf32>
    %56 = vector.shape_cast %55 : vector<1x4x4xf32> to vector<4x4xf32>
    %cst_77 = arith.constant dense<0.000000e+00> : vector<256x4xf32>
    %57 = tpu.matmul %54, %56, %cst_77 {dimension_numbers = #tpu.dot_dimension_numbers<[1], [0], [0], [1], [0, 0, 1, 1], [], []>} : vector<256x4xf32>, vector<4x4xf32>, vector<256x4xf32> -> vector<256x4xf32>
    %58 = arith.addf %52, %57 : vector<256x4xf32>
    %c0_78 = arith.constant 0 : index
    %c2_79 = arith.constant 2 : index
    %c1_80 = arith.constant 1 : index
    %c0_81 = arith.constant 0 : index
    %59 = vector.load %arg7[%c0_78, %c2_79, %c1_80, %c0_81] : memref<1x18x18x4xf32, #tpu.memory_space<vmem>>, vector<1x16x16x4xf32>
    %60 = vector.shape_cast %59 : vector<1x16x16x4xf32> to vector<256x4xf32>
    %c7 = arith.constant 7 : index
    %c0_82 = arith.constant 0 : index
    %c0_83 = arith.constant 0 : index
    %61 = vector.load %arg3[%c7, %c0_82, %c0_83] : memref<9x4x4xf32, #tpu.memory_space<vmem>>, vector<1x4x4xf32>
    %62 = vector.shape_cast %61 : vector<1x4x4xf32> to vector<4x4xf32>
    %cst_84 = arith.constant dense<0.000000e+00> : vector<256x4xf32>
    %63 = tpu.matmul %60, %62, %cst_84 {dimension_numbers = #tpu.dot_dimension_numbers<[1], [0], [0], [1], [0, 0, 1, 1], [], []>} : vector<256x4xf32>, vector<4x4xf32>, vector<256x4xf32> -> vector<256x4xf32>
    %64 = arith.addf %58, %63 : vector<256x4xf32>
    %c0_85 = arith.constant 0 : index
    %c2_86 = arith.constant 2 : index
    %c2_87 = arith.constant 2 : index
    %c0_88 = arith.constant 0 : index
    %65 = vector.load %arg7[%c0_85, %c2_86, %c2_87, %c0_88] : memref<1x18x18x4xf32, #tpu.memory_space<vmem>>, vector<1x16x16x4xf32>
    %66 = vector.shape_cast %65 : vector<1x16x16x4xf32> to vector<256x4xf32>
    %c8 = arith.constant 8 : index
    %c0_89 = arith.constant 0 : index
    %c0_90 = arith.constant 0 : index
    %67 = vector.load %arg3[%c8, %c0_89, %c0_90] : memref<9x4x4xf32, #tpu.memory_space<vmem>>, vector<1x4x4xf32>
    %68 = vector.shape_cast %67 : vector<1x4x4xf32> to vector<4x4xf32>
    %cst_91 = arith.constant dense<0.000000e+00> : vector<256x4xf32>
    %69 = tpu.matmul %66, %68, %cst_91 {dimension_numbers = #tpu.dot_dimension_numbers<[1], [0], [0], [1], [0, 0, 1, 1], [], []>} : vector<256x4xf32>, vector<4x4xf32>, vector<256x4xf32> -> vector<256x4xf32>
    %70 = arith.addf %64, %69 : vector<256x4xf32>
    %c1_92 = arith.constant 1 : index
    %c0_93 = arith.constant 0 : index
    %71 = vector.load %arg5[%c1_92, %c0_93] : memref<3x16xf32, #tpu.memory_space<vmem>>, vector<1x4xf32>
    %72 = vector.broadcast %71 : vector<1x4xf32> to vector<256x4xf32>
    %73 = arith.addf %70, %72 : vector<256x4xf32>
    %cst_94 = arith.constant 0.000000e+00 : f32
    %74 = vector.broadcast %cst_94 : f32 to vector<256x4xf32>
    %75 = arith.maximumf %73, %74 : vector<256x4xf32>
    %c0_95 = arith.constant 0 : index
    %c0_96 = arith.constant 0 : index
    %76 = vector.load %arg4[%c0_95, %c0_96] : memref<4x16xf32, #tpu.memory_space<vmem>>, vector<4x16xf32>
    %cst_97 = arith.constant dense<0.000000e+00> : vector<256x16xf32>
    %77 = tpu.matmul %75, %76, %cst_97 {dimension_numbers = #tpu.dot_dimension_numbers<[1], [0], [0], [1], [0, 0, 1, 1], [], []>} : vector<256x4xf32>, vector<4x16xf32>, vector<256x16xf32> -> vector<256x16xf32>
    %c2_98 = arith.constant 2 : index
    %c0_99 = arith.constant 0 : index
    %78 = vector.load %arg5[%c2_98, %c0_99] : memref<3x16xf32, #tpu.memory_space<vmem>>, vector<1x16xf32>
    %79 = vector.broadcast %78 : vector<1x16xf32> to vector<256x16xf32>
    %80 = arith.addf %77, %79 : vector<256x16xf32>
    %cst_100 = arith.constant 0.000000e+00 : f32
    %81 = vector.broadcast %cst_100 : f32 to vector<256x16xf32>
    %82 = arith.maximumf %80, %81 : vector<256x16xf32>
    %c0_101 = arith.constant 0 : index
    %c0_102 = arith.constant 0 : index
    %83 = vector.load %arg1[%c0_101, %c0_102] : memref<256x16xf32, #tpu.memory_space<vmem>>, vector<256x16xf32>
    %84 = arith.addf %82, %83 : vector<256x16xf32>
    %c0_103 = arith.constant 0 : index
    %c0_104 = arith.constant 0 : index
    %85 = vector.load %arg6[%c0_103, %c0_104] : memref<256x16xf32, #tpu.memory_space<vmem>>, vector<256x16xf32>
    tpu.vector_store %arg6[%c0_103, %c0_104], %84 {strides = array<i32>} : memref<256x16xf32, #tpu.memory_space<vmem>>, vector<256x16xf32>,
    return
  }
  func.func @transform_0(%arg0: i32) -> (i32, i32) {
    %c0_i32 = arith.constant 0 : i32
    %c0_i32_0 = arith.constant 0 : i32
    return %arg0, %c0_i32 : i32, i32
  }
  func.func @transform_1(%arg0: i32) -> (i32, i32) {
    %c0_i32 = arith.constant 0 : i32
    %c0_i32_0 = arith.constant 0 : i32
    %c0_i32_1 = arith.constant 0 : i32
    return %c0_i32, %c0_i32_0 : i32, i32
  }
  func.func @transform_2(%arg0: i32) -> (i32, i32, i32) {
    %c0_i32 = arith.constant 0 : i32
    %c0_i32_0 = arith.constant 0 : i32
    %c0_i32_1 = arith.constant 0 : i32
    %c0_i32_2 = arith.constant 0 : i32
    return %c0_i32, %c0_i32_0, %c0_i32_1 : i32, i32, i32
  }
  func.func @transform_3(%arg0: i32) -> (i32, i32) {
    %c0_i32 = arith.constant 0 : i32
    %c0_i32_0 = arith.constant 0 : i32
    %c0_i32_1 = arith.constant 0 : i32
    return %c0_i32, %c0_i32_0 : i32, i32
  }
  func.func @transform_4(%arg0: i32) -> (i32, i32) {
    %c0_i32 = arith.constant 0 : i32
    %c0_i32_0 = arith.constant 0 : i32
    %c0_i32_1 = arith.constant 0 : i32
    return %c0_i32, %c0_i32_0 : i32, i32
  }
  func.func @transform_5(%arg0: i32) -> (i32, i32) {
    %c0_i32 = arith.constant 0 : i32
    %c0_i32_0 = arith.constant 0 : i32
    return %arg0, %c0_i32 : i32, i32
  }
}

</mosaic_0001>

<bundles_post_ra>
// kernel: tpu_custom_call.1
= control target key start
LH: loop header
LB: loop body
LE: loop exit
PB: predicated region body
PF: predicated region fallthrough
CT: control target
= control target key end

     0   :  { %s3924_s18 = smov 0   ;;  %s5427_s0 = inlined_call_operand.vmem [shape: f32[512,16], index: 0, kind: input, shape index: {}]   ;;  %s5428_s1 = inlined_call_operand.vmem [shape: f32[16,4], index: 1, kind: input, shape index: {}]   ;;  %s5429_s2 = inlined_call_operand.vmem [shape: f32[9,4,4], index: 2, kind: input, shape index: {}]   ;;  %s5430_s3 = inlined_call_operand.vmem [shape: f32[4,16], index: 3, kind: input, shape index: {}]   ;;  %s5431_s4 = inlined_call_operand.vmem [shape: f32[3,16], index: 4, kind: input, shape index: {}]   ;;  %s5432_s5 = inlined_call_operand.vmem [shape: f32[512,16], index: 5, kind: output, shape index: {}]  }
   0x1 LB: > { %s3489_s19 = sadd.s32 4294967295, %s3891_s18   ;;  %p3493_p0 = scmp.ge.s32.totalorder %s3891_s18, 1  ;;  %s3891_s18 = sphi %s3924_s18, %s15_s18  }
   0x2   : > { %p188_p1 = scmp.lt.s32.totalorder %s3891_s18, 3 }
   0x4   : > { %p189_p2 = pnand %p3493_p0, %p188_p1 }
   0x6   : > { %192 = sbr.rel (%p189_p2) target bundleno = 1182 (0x49e), region = 40 }
   0xb   : > { %v261_v0 = vld [vmem:[%s5428_s1 + $0x8] sm:$0xff]  ;;  %v260_v1 = vld [vmem:[%s5428_s1] sm:$0xff]  ;;  %s3494_s24 = sshll.u32 %s3489_s19, 5  ;;  %vm264_vm0 = vcmask 130048   ;;  %vm515_vm1 = vcmask 24576   ;;  %vm506_vm2 = vcmask 31744  }
   0xc   : > { %375 = vmatpush.msra.mxu0 %v261_v0  ;;  %p217_p3 = scmp.lt.s32.totalorder %s3494_s24, 63  ;;  %v3893_v15 = vmov 0.0   ;;  %v4031_v19 = vld [vmem:[%s5431_s4] ss:$0 sm:$0xff]  ;;  %v3530_v36 = vld [vmem:[%s5429_s2 + $0x4] sm:$0xf] }
   0xd   : > { %520 = vst.msk [vmem:[#allocation2 + $0x60] sm:$0x1] %vm515_vm1, %v3893_v15  ;;  %vm748_vm3 = vcmask 1043456   ;;  %v617_v37 = vld [vmem:[%s5429_s2] sm:$0xf]  ;;  %vm509_vm4 = vcmask 25600  }
   0xe   : > { %376 = vmatpush.msra.mxu0 %v260_v1  ;;  %s5561_s24 = smov (!%p217_p3, %s3494_s24), 63  ;;  %507 = vst.msk [vmem:[#allocation2] sm:$0xff] %vm506_vm2, %v3893_v15  ;;  %3870 = vmatpush.msk.msra.mxu1 %vm748_vm3, %v3530_v36  ;;  %v3665_v38 = vld [vmem:[%s5429_s2 + $0x10] sm:$0xf]  ;;  %v4097_v43 = vld [vmem:[%s5429_s2 + $0x8] sm:$0xf] }
   0xf   : > { %s3495_s25 = sshll.u32 %s5561_s24, 3  ;;  %508 = vst.msk [vmem:[#allocation2 + $0x8] sm:$0xff] %vm506_vm2, %v3893_v15  ;;  %3871 = vmatpush.msk.msra.mxu2 %vm748_vm3, %v617_v37  ;;  %3872 = vmatpush.msk.msra.mxu3 %vm748_vm3, %v4097_v43  ;;  %v3631_v44 = vld [vmem:[%s5429_s2 + $0xc] sm:$0xf] }
  0x10   : > { %s3946_s28 = scalar_lea.vmem %s5427_s0, %s3495_s25  ;;  %512 = vst.msk [vmem:[#allocation2 + $0x198] sm:$0xff] %vm506_vm2, %v3893_v15  ;;  %3531 = vmatpush.msk.msrb.mxu0 %vm748_vm3, %v3530_v36  ;;  %3632 = vmatpush.msk.msrb.mxu1 %vm748_vm3, %v3631_v44  ;;  %s5241_s11 = scalar_lea.vmem %s5432_s5, %s3495_s25 }
  0x11   : > { %v228_v2 = vld [vmem:[%s3946_s28] sm:$0xff]  ;;  %v229_v3 = vld [vmem:[%s3946_s28 + $0x8] sm:$0xff]  ;;  %v230_v4 = vld [vmem:[%s3946_s28 + $0x10] sm:$0xff]  ;;  %513 = vst.msk [vmem:[#allocation2 + $0x1a0] sm:$0xff] %vm506_vm2, %v3893_v15  ;;  %3666 = vmatpush.msk.msrb.mxu2 %vm748_vm3, %v3665_v38 }
  0x12   : > { %3498 = vmatmul.msk.f32.vlgmr.msra.gmra.mxu0 %vm264_vm0, %v228_v2  ;;  %v231_v5 = vld [vmem:[%s3946_s28 + $0x18] sm:$0xff]  ;;  %v232_v6 = vld [vmem:[%s3946_s28 + $0x20] sm:$0xff]  ;;  %v233_v7 = vld [vmem:[%s3946_s28 + $0x28] sm:$0xff]  ;;  %517 = vst.msk [vmem:[#allocation2 + $0x18] sm:$0x1] %vm515_vm1, %v3893_v15 }
  0x13   : > { %v234_v8 = vld [vmem:[%s3946_s28 + $0x30] sm:$0xff]  ;;  %v235_v9 = vld [vmem:[%s3946_s28 + $0x38] sm:$0xff]  ;;  %v236_v10 = vld [vmem:[%s3946_s28 + $0x40] sm:$0xff]  ;;  %518 = vst.msk [vmem:[#allocation2 + $0x30] sm:$0x1] %vm515_vm1, %v3893_v15  ;;  %3564 = vmatpush.msk.msra.mxu0 %vm748_vm3, %v617_v37 }
  0x14   : > { %v237_v11 = vld [vmem:[%s3946_s28 + $0x48] sm:$0xff]  ;;  %v238_v12 = vld [vmem:[%s3946_s28 + $0x50] sm:$0xff]  ;;  %v239_v13 = vld [vmem:[%s3946_s28 + $0x58] sm:$0xff]  ;;  %519 = vst.msk [vmem:[#allocation2 + $0x48] sm:$0x1] %vm515_vm1, %v3893_v15 }
  0x15   : > { %v240_v14 = vld [vmem:[%s3946_s28 + $0x60] sm:$0xff]  ;;  %v241_v16 = vld [vmem:[%s3946_s28 + $0x68] sm:$0xff]  ;;  %521 = vst.msk [vmem:[#allocation2 + $0x78] sm:$0x1] %vm515_vm1, %v3893_v15  ;;  %v242_v17 = vld [vmem:[%s3946_s28 + $0x70] sm:$0xff] }
  0x16   : > { %522 = vst.msk [vmem:[#allocation2 + $0x90] sm:$0x1] %vm515_vm1, %v3893_v15  ;;  %v243_v18 = vld [vmem:[%s3946_s28 + $0x78] sm:$0xff]  ;;  %v244_v21 = vld [vmem:[%s3946_s28 + $0x80] sm:$0xff]  ;;  %v245_v25 = vld [vmem:[%s3946_s28 + $0x88] sm:$0xff] }
  0x17   : > { %523 = vst.msk [vmem:[#allocation2 + $0xa8] sm:$0x1] %vm515_vm1, %v3893_v15  ;;  %v246_v29 = vld [vmem:[%s3946_s28 + $0x90] sm:$0xff]  ;;  %v247_v33 = vld [vmem:[%s3946_s28 + $0x98] sm:$0xff]  ;;  %v248_v40 = vld [vmem:[%s3946_s28 + $0xa0] sm:$0xff] }
  0x18   : > { %524 = vst.msk [vmem:[#allocation2 + $0xc0] sm:$0x1] %vm515_vm1, %v3893_v15  ;;  %v249_v46 = vld [vmem:[%s3946_s28 + $0xa8] sm:$0xff]  ;;  %v250_v50 = vld [vmem:[%s3946_s28 + $0xb0] sm:$0xff]  ;;  %v251_v54 = vld [vmem:[%s3946_s28 + $0xb8] sm:$0xff] }
  0x19   : > { %525 = vst.msk [vmem:[#allocation2 + $0xd8] sm:$0x1] %vm515_vm1, %v3893_v15  ;;  %v252_v60 = vld [vmem:[%s3946_s28 + $0xc0] sm:$0xff] }
  0x1a   : > { %3499 = vmatmul.msk.f32.gmra.mxu0 %vm264_vm0, %v229_v3  ;;  %526 = vst.msk [vmem:[#allocation2 + $0xf0] sm:$0x1] %vm515_vm1, %v3893_v15  ;;  %v253_v3 = vld [vmem:[%s3946_s28 + $0xc8] sm:$0xff] }
  0x1b   : > { %527 = vst.msk [vmem:[#allocation2 + $0x108] sm:$0x1] %vm515_vm1, %v3893_v15 }
  0x1c   : > { %528 = vst.msk [vmem:[#allocation2 + $0x120] sm:$0x1] %vm515_vm1, %v3893_v15 }
  0x1d   : > { %529 = vst.msk [vmem:[#allocation2 + $0x138] sm:$0x1] %vm515_vm1, %v3893_v15 }
  0x1e   : > { %530 = vst.msk [vmem:[#allocation2 + $0x150] sm:$0x1] %vm515_vm1, %v3893_v15 }
  0x1f   : > { %531 = vst.msk [vmem:[#allocation2 + $0x168] sm:$0x1] %vm515_vm1, %v3893_v15 }
  0x20   : > { %532 = vst.msk [vmem:[#allocation2 + $0x180] sm:$0x1] %vm515_vm1, %v3893_v15 }
  0x21   : > { %535 = vst.msk [vmem:[#allocation2 + $0x29] sm:$0x1] %vm515_vm1, %v3893_v15 }
  0x22   : > { %3500 = vmatmul.msk.f32.gmra.mxu0 %vm264_vm0, %v230_v4  ;;  %536 = vst.msk [vmem:[#allocation2 + $0x41] sm:$0x1] %vm515_vm1, %v3893_v15 }
  0x23   : > { %537 = vst.msk [vmem:[#allocation2 + $0x59] sm:$0x1] %vm515_vm1, %v3893_v15 }
  0x24   : > { %538 = vst.msk [vmem:[#allocation2 + $0x71] sm:$0x1] %vm515_vm1, %v3893_v15 }
  0x25   : > { %539 = vst.msk [vmem:[#allocation2 + $0x89] sm:$0x1] %vm515_vm1, %v3893_v15 }
  0x26   : > { %540 = vst.msk [vmem:[#allocation2 + $0xa1] sm:$0x1] %vm515_vm1, %v3893_v15 }
  0x27   : > { %541 = vst.msk [vmem:[#allocation2 + $0xb9] sm:$0x1] %vm515_vm1, %v3893_v15 }
  0x28   : > { %542 = vst.msk [vmem:[#allocation2 + $0xd1] sm:$0x1] %vm515_vm1, %v3893_v15 }
  0x29   : > { %543 = vst.msk [vmem:[#allocation2 + $0xe9] sm:$0x1] %vm515_vm1, %v3893_v15 }
  0x2a   : > { %3501 = vmatmul.msk.f32.gmra.mxu0 %vm264_vm0, %v231_v5  ;;  %544 = vst.msk [vmem:[#allocation2 + $0x101] sm:$0x1] %vm515_vm1, %v3893_v15 }
  0x2b   : > { %545 = vst.msk [vmem:[#allocation2 + $0x119] sm:$0x1] %vm515_vm1, %v3893_v15 }
  0x2c   : > { %546 = vst.msk [vmem:[#allocation2 + $0x131] sm:$0x1] %vm515_vm1, %v3893_v15 }
  0x2d   : > { %547 = vst.msk [vmem:[#allocation2 + $0x149] sm:$0x1] %vm515_vm1, %v3893_v15 }
  0x2e   : > { %548 = vst.msk [vmem:[#allocation2 + $0x161] sm:$0x1] %vm515_vm1, %v3893_v15 }
  0x2f   : > { %549 = vst.msk [vmem:[#allocation2 + $0x179] sm:$0x1] %vm515_vm1, %v3893_v15 }
  0x30   : > { %550 = vst.msk [vmem:[#allocation2 + $0x191] sm:$0x1] %vm515_vm1, %v3893_v15 }
  0x31   : > { %516 = vst.msk [vmem:[#allocation2] sm:$0x1] %vm515_vm1, %v3893_v15 }
  0x32   : > { %3502 = vmatmul.msk.f32.gmra.mxu0 %vm264_vm0, %v232_v6  ;;  %533 = vst.msk [vmem:[#allocation2 + $0x198] sm:$0x1] %vm515_vm1, %v3893_v15 }
  0x33   : > { %510 = vst.msk [vmem:[#allocation2 + $0x10] sm:$0x3] %vm509_vm4, %v3893_v15 }
  0x34   : > { %514 = vst.msk [vmem:[#allocation2 + $0x1a8] sm:$0x3] %vm509_vm4, %v3893_v15 }
  0x35   : > { %534 = vst.msk [vmem:[#allocation2 + $0x11] sm:$0x1] %vm515_vm1, %v3893_v15 }
  0x36   : > { %551 = vst.msk [vmem:[#allocation2 + $0x1a9] sm:$0x1] %vm515_vm1, %v3893_v15 }
  0x3a   : > { %3503 = vmatmul.msk.f32.gmra.mxu0 %vm264_vm0, %v233_v7 }
  0x42   : > { %3504 = vmatmul.msk.f32.gmra.mxu0 %vm264_vm0, %v234_v8 }
  0x4a   : > { %3505 = vmatmul.msk.f32.gmra.mxu0 %vm264_vm0, %v235_v9 }
  0x52   : > { %3506 = vmatmul.msk.f32.gmra.mxu0 %vm264_vm0, %v236_v10  ;;  %v254_v10 = vld [vmem:[%s3946_s28 + $0xd0] sm:$0xff] }
  0x5a   : > { %3507 = vmatmul.msk.f32.gmra.mxu0 %vm264_vm0, %v237_v11 }
  0x62   : > { %3508 = vmatmul.msk.f32.gmra.mxu0 %vm264_vm0, %v238_v12 }
  0x6a   : > { %3509 = vmatmul.msk.f32.gmra.mxu0 %vm264_vm0, %v239_v13 }
  0x72   : > { %3510 = vmatmul.msk.f32.gmra.mxu0 %vm264_vm0, %v240_v14 }
  0x7a   : > { %3511 = vmatmul.msk.f32.gmra.mxu0 %vm264_vm0, %v241_v16 }
  0x82   : > { %3512 = vmatmul.msk.f32.gmra.mxu0 %vm264_vm0, %v242_v17 }
  0x8a   : > { %3513 = vmatmul.msk.f32.gmra.mxu0 %vm264_vm0, %v243_v18  ;;  %v255_v18 = vld [vmem:[%s3946_s28 + $0xd8] sm:$0xff] }
  0x8f   : > { %v378_v20 = vpop.f32.mrf.mxu0 }
  0x90   : > { %v379_v22 = vadd.f32 %v4031_v19, %v378_v20 }
  0x92   : > { %v474_v23 = vmax.f32 %v379_v22, 0.0  ;;  %3514 = vmatmul.msk.f32.gmra.mxu0 %vm264_vm0, %v244_v21 }
  0x94   : > { %553 = vst.msk [vmem:[#allocation2 + $0x19] sm:$0xff] %vm506_vm2, %v474_v23 }
  0x97   : > { %v381_v24 = vpop.f32.mrf.mxu0 }
  0x98   : > { %v382_v26 = vadd.f32 %v4031_v19, %v381_v24 }
  0x9a   : > { %v475_v27 = vmax.f32 %v382_v26, 0.0  ;;  %3515 = vmatmul.msk.f32.gmra.mxu0 %vm264_vm0, %v245_v25  ;;  %v256_v26 = vld [vmem:[%s3946_s28 + $0xe0] sm:$0xff] }
  0x9c   : > { %554 = vst.msk [vmem:[#allocation2 + $0x21] sm:$0xff] %vm506_vm2, %v475_v27 }
  0x9f   : > { %v384_v28 = vpop.f32.mrf.mxu0 }
  0xa0   : > { %v385_v30 = vadd.f32 %v4031_v19, %v384_v28 }
  0xa2   : > { %v476_v31 = vmax.f32 %v385_v30, 0.0  ;;  %3516 = vmatmul.msk.f32.gmra.mxu0 %vm264_vm0, %v246_v29 }
  0xa4   : > { %555 = vst.msk [vmem:[#allocation2 + $0x31] sm:$0xff] %vm506_vm2, %v476_v31 }
  0xa7   : > { %v387_v32 = vpop.f32.mrf.mxu0 }
  0xa8   : > { %v388_v34 = vadd.f32 %v4031_v19, %v387_v32 }
  0xaa   : > { %v477_v35 = vmax.f32 %v388_v34, 0.0  ;;  %3517 = vmatmul.msk.f32.gmra.mxu0 %vm264_vm0, %v247_v33  ;;  %v257_v33 = vld [vmem:[%s3946_s28 + $0xe8] sm:$0xff] }
  0xac   : > { %556 = vst.msk [vmem:[#allocation2 + $0x39] sm:$0xff] %vm506_vm2, %v477_v35 }
  0xaf   : > { %v390_v39 = vpop.f32.mrf.mxu0 }
  0xb0   : > { %v391_v41 = vadd.f32 %v4031_v19, %v390_v39  ;;  %v258_v39 = vld [vmem:[%s3946_s28 + $0xf0] sm:$0xff] }
  0xb2   : > { %v478_v42 = vmax.f32 %v391_v41, 0.0  ;;  %3518 = vmatmul.msk.f32.gmra.mxu0 %vm264_vm0, %v248_v40 }
  0xb4   : > { %557 = vst.msk [vmem:[#allocation2 + $0x49] sm:$0xff] %vm506_vm2, %v478_v42 }
  0xb7   : > { %v393_v45 = vpop.f32.mrf.mxu0 }
  0xb8   : > { %v394_v47 = vadd.f32 %v4031_v19, %v393_v45 }
  0xba   : > { %v479_v48 = vmax.f32 %v394_v47, 0.0  ;;  %3519 = vmatmul.msk.f32.gmra.mxu0 %vm264_vm0, %v249_v46  ;;  %v259_v47 = vld [vmem:[%s3946_s28 + $0xf8] sm:$0xff] }
  0xbc   : > { %558 = vst.msk [vmem:[#allocation2 + $0x51] sm:$0xff] %vm506_vm2, %v479_v48 }
  0xbf   : > { %v396_v49 = vpop.f32.mrf.mxu0 }
  0xc0   : > { %v397_v51 = vadd.f32 %v4031_v19, %v396_v49 }
  0xc2   : > { %v480_v52 = vmax.f32 %v397_v51, 0.0  ;;  %3520 = vmatmul.msk.f32.gmra.mxu0 %vm264_vm0, %v250_v50 }
  0xc4   : > { %559 = vst.msk [vmem:[#allocation2 + $0x61] sm:$0xff] %vm506_vm2, %v480_v52 }
  0xc7   : > { %v399_v53 = vpop.f32.mrf.mxu0 }
  0xc8   : > { %v400_v55 = vadd.f32 %v4031_v19, %v399_v53 }
  0xca   : > { %v481_v56 = vmax.f32 %v400_v55, 0.0  ;;  %3521 = vmatmul.msk.f32.gmra.mxu0 %vm264_vm0, %v251_v54  ;;  %v618_v54 = vld [vmem:[#allocation2 + $0x1] sm:$0xff] }
  0xcb   : > { %v4117_v57 = vld [vmem:[#allocation2 + $0x61] sm:$0xff] }
  0xcc   : > { %v4119_v58 = vld [vmem:[#allocation2 + $0x60] sm:$0xff]  ;;  %560 = vst.msk [vmem:[#allocation2 + $0x69] sm:$0xff] %vm506_vm2, %v481_v56  ;;  %3540 = vmatmul.msk.f32.vlgmr.msra.gmra.mxu1 %vm506_vm2, %v4117_v57 }
  0xcd   : > { %3573 = vmatmul.msk.f32.vlgmr.msra.gmra.mxu2 %vm506_vm2, %v4119_v58 }
  0xcf   : > { %v402_v59 = vpop.f32.mrf.mxu0 }
  0xd0   : > { %v403_v61 = vadd.f32 %v4031_v19, %v402_v59 }
  0xd2   : > { %v482_v62 = vmax.f32 %v403_v61, 0.0  ;;  %3522 = vmatmul.msk.f32.gmra.mxu0 %vm264_vm0, %v252_v60 }
  0xd3   : > { %v4129_v63 = vld [vmem:[#allocation2 + $0x69] sm:$0xff] }
  0xd4   : > { %v4131_v0 = vld [vmem:[#allocation2 + $0x68] sm:$0xff]  ;;  %561 = vst.msk [vmem:[#allocation2 + $0x79] sm:$0xff] %vm506_vm2, %v482_v62  ;;  %3541 = vmatmul.msk.f32.gmra.mxu1 %vm506_vm2, %v4129_v63 }
  0xd5   : > { %v4133_v1 = vld [vmem:[#allocation2 + $0x62] sm:$0xff]  ;;  %3574 = vmatmul.msk.f32.gmra.mxu2 %vm506_vm2, %v4131_v0  ;;  %v4154_v8 = vld [vmem:[#allocation2 + $0x6a] sm:$0xff] }
  0xd6   : > { %3607 = vmatmul.msk.f32.vlgmr.msra.gmra.mxu3 %vm506_vm2, %v4133_v1 }
  0xd7   : > { %v405_v2 = vpop.f32.mrf.mxu0 }
  0xd8   : > { %v406_v4 = vadd.f32 %v4031_v19, %v405_v2  ;;  %v619_v2 = vld [vmem:[#allocation2 + $0x9] sm:$0xff] }
  0xda   : > { %v483_v5 = vmax.f32 %v406_v4, 0.0  ;;  %3523 = vmatmul.msk.f32.gmra.mxu0 %vm264_vm0, %v253_v3 }
  0xdb   : > { %v4145_v6 = vld [vmem:[#allocation2 + $0x79] sm:$0xff] }
  0xdc   : > { %v4147_v7 = vld [vmem:[#allocation2 + $0x78] sm:$0xff]  ;;  %562 = vst.msk [vmem:[#allocation2 + $0x81] sm:$0xff] %vm506_vm2, %v483_v5  ;;  %3542 = vmatmul.msk.f32.gmra.mxu1 %vm506_vm2, %v4145_v6 }
  0xdd   : > { %3575 = vmatmul.msk.f32.gmra.mxu2 %vm506_vm2, %v4147_v7 }
  0xde   : > { %3608 = vmatmul.msk.f32.gmra.mxu3 %vm506_vm2, %v4154_v8 }
  0xdf   : > { %v408_v9 = vpop.f32.mrf.mxu0 }
  0xe0   : > { %v409_v11 = vadd.f32 %v4031_v19, %v408_v9 }
  0xe2   : > { %v484_v12 = vmax.f32 %v409_v11, 0.0  ;;  %3524 = vmatmul.msk.f32.gmra.mxu0 %vm264_vm0, %v254_v10 }
  0xe3   : > { %v4161_v13 = vld [vmem:[#allocation2 + $0x81] sm:$0xff] }
  0xe4   : > { %v4163_v14 = vld [vmem:[#allocation2 + $0x80] sm:$0xff]  ;;  %563 = vst.msk [vmem:[#allocation2 + $0x91] sm:$0xff] %vm506_vm2, %v484_v12  ;;  %3543 = vmatmul.msk.f32.gmra.mxu1 %vm506_vm2, %v4161_v13 }
  0xe5   : > { %v4165_v16 = vld [vmem:[#allocation2 + $0x7a] sm:$0xff]  ;;  %3576 = vmatmul.msk.f32.gmra.mxu2 %vm506_vm2, %v4163_v14  ;;  %v4186_v24 = vld [vmem:[#allocation2 + $0x82] sm:$0xff] }
  0xe6   : > { %3609 = vmatmul.msk.f32.gmra.mxu3 %vm506_vm2, %v4165_v16  ;;  %v4293_v12 = vld [vmem:[#allocation2 + $0x19] sm:$0xff] }
  0xe7   : > { %v411_v17 = vpop.f32.mrf.mxu0 }
  0xe8   : > { %v412_v20 = vadd.f32 %v4031_v19, %v411_v17 }
  0xea   : > { %v485_v21 = vmax.f32 %v412_v20, 0.0  ;;  %3525 = vmatmul.msk.f32.gmra.mxu0 %vm264_vm0, %v255_v18 }
  0xeb   : > { %v4177_v22 = vld [vmem:[#allocation2 + $0x91] sm:$0xff] }
  0xec   : > { %v4179_v23 = vld [vmem:[#allocation2 + $0x90] sm:$0xff]  ;;  %564 = vst.msk [vmem:[#allocation2 + $0x99] sm:$0xff] %vm506_vm2, %v485_v21  ;;  %3544 = vmatmul.msk.f32.gmra.mxu1 %vm506_vm2, %v4177_v22 }
  0xed   : > { %3577 = vmatmul.msk.f32.gmra.mxu2 %vm506_vm2, %v4179_v23 }
  0xee   : > { %3610 = vmatmul.msk.f32.gmra.mxu3 %vm506_vm2, %v4186_v24 }
  0xef   : > { %v414_v25 = vpop.f32.mrf.mxu0 }
  0xf0   : > { %v415_v27 = vadd.f32 %v4031_v19, %v414_v25 }
  0xf2   : > { %v486_v28 = vmax.f32 %v415_v27, 0.0  ;;  %3526 = vmatmul.msk.f32.gmra.mxu0 %vm264_vm0, %v256_v26  ;;  %v4311_v27 = vld [vmem:[#allocation2 + $0x21] sm:$0xff] }
  0xf3   : > { %v4193_v29 = vld [vmem:[#allocation2 + $0x99] sm:$0xff] }
  0xf4   : > { %v4195_v30 = vld [vmem:[#allocation2 + $0x98] sm:$0xff]  ;;  %565 = vst.msk [vmem:[#allocation2 + $0xa9] sm:$0xff] %vm506_vm2, %v486_v28  ;;  %3545 = vmatmul.msk.f32.gmra.mxu1 %vm506_vm2, %v4193_v29 }
  0xf5   : > { %v4197_v31 = vld [vmem:[#allocation2 + $0x92] sm:$0xff]  ;;  %3578 = vmatmul.msk.f32.gmra.mxu2 %vm506_vm2, %v4195_v30  ;;  %v4224_v38 = vld [vmem:[#allocation2 + $0x9a] sm:$0xff] }
  0xf6   : > { %3611 = vmatmul.msk.f32.gmra.mxu3 %vm506_vm2, %v4197_v31 }
  0xf7   : > { %v417_v32 = vpop.f32.mrf.mxu0 }
  0xf8   : > { %v418_v34 = vadd.f32 %v4031_v19, %v417_v32 }
  0xfa   : > { %v487_v35 = vmax.f32 %v418_v34, 0.0  ;;  %3527 = vmatmul.msk.f32.gmra.mxu0 %vm264_vm0, %v257_v33 }
  0xfb   : > { %v4215_v36 = vld [vmem:[#allocation2 + $0xa9] sm:$0xff] }
  0xfc   : > { %v4217_v37 = vld [vmem:[#allocation2 + $0xa8] sm:$0xff]  ;;  %566 = vst.msk [vmem:[#allocation2 + $0xb1] sm:$0xff] %vm506_vm2, %v487_v35  ;;  %3546 = vmatmul.msk.f32.gmra.mxu1 %vm506_vm2, %v4215_v36 }
  0xfd   : > { %3579 = vmatmul.msk.f32.gmra.mxu2 %vm506_vm2, %v4217_v37 }
  0xfe   : > { %3612 = vmatmul.msk.f32.gmra.mxu3 %vm506_vm2, %v4224_v38 }
  0xff   : > { %v420_v15 = vpop.f32.mrf.mxu0 }
 0x100   : > { %v421_v40 = vadd.f32 %v4031_v19, %v420_v15 }
 0x102   : > { %v488_v41 = vmax.f32 %v421_v40, 0.0  ;;  %3528 = vmatmul.msk.f32.gmra.mxu0 %vm264_vm0, %v258_v39  ;;  %v4329_v39 = vld [vmem:[#allocation2 + $0x31] sm:$0xff] }
 0x103   : > { %v4231_v42 = vld [vmem:[#allocation2 + $0xb1] sm:$0xff] }
 0x104   : > { %v4233_v44 = vld [vmem:[#allocation2 + $0xb0] sm:$0xff]  ;;  %567 = vst.msk [vmem:[#allocation2 + $0xc1] sm:$0xff] %vm506_vm2, %v488_v41  ;;  %3547 = vmatmul.msk.f32.gmra.mxu1 %vm506_vm2, %v4231_v42 }
 0x105   : > { %v4235_v45 = vld [vmem:[#allocation2 + $0xaa] sm:$0xff]  ;;  %3580 = vmatmul.msk.f32.gmra.mxu2 %vm506_vm2, %v4233_v44  ;;  %v4256_v52 = vld [vmem:[#allocation2 + $0xb2] sm:$0xff] }
 0x106   : > { %3613 = vmatmul.msk.f32.gmra.mxu3 %vm506_vm2, %v4235_v45 }
 0x107   : > { %v423_v46 = vpop.f32.mrf.mxu0 }
 0x108   : > { %v424_v48 = vadd.f32 %v4031_v19, %v423_v46 }
 0x10a   : > { %v489_v49 = vmax.f32 %v424_v48, 0.0  ;;  %3529 = vmatmul.msk.f32.gmra.mxu0 %vm264_vm0, %v259_v47  ;;  %v3699_v48 = vld [vmem:[%s5429_s2 + $0x14] sm:$0xf] }
 0x10b   : > { %v4247_v50 = vld [vmem:[#allocation2 + $0xc1] sm:$0xff]  ;;  %3700 = vmatpush.msk.msrb.mxu3 %vm748_vm3, %v3699_v48 }
 0x10c   : > { %v4249_v51 = vld [vmem:[#allocation2 + $0xc0] sm:$0xff]  ;;  %568 = vst.msk [vmem:[#allocation2 + $0xc9] sm:$0xff] %vm506_vm2, %v489_v49  ;;  %3548 = vmatmul.msk.f32.gmra.mxu1 %vm506_vm2, %v4247_v50 }
 0x10d   : > { %3581 = vmatmul.msk.f32.gmra.mxu2 %vm506_vm2, %v4249_v51 }
 0x10e   : > { %3614 = vmatmul.msk.f32.gmra.mxu3 %vm506_vm2, %v4256_v52 }
 0x10f   : > { %v426_v53 = vpop.f32.mrf.mxu0 }
 0x110   : > { %v427_v55 = vadd.f32 %v4031_v19, %v426_v53 }
 0x112   : > { %v490_v56 = vmax.f32 %v427_v55, 0.0  ;;  %3532 = vmatmul.msk.f32.vlgmr.msrb.gmra.mxu0 %vm506_vm2, %v618_v54  ;;  %v4351_v54 = vld [vmem:[#allocation2 + $0x39] sm:$0xff] }
 0x113   : > { %v4262_v59 = vld [vmem:[#allocation2 + $0xc9] sm:$0xff]  ;;  %3598 = vmatpush.msk.msrb.mxu0 %vm748_vm3, %v4097_v43 }
 0x114   : > { %v4264_v60 = vld [vmem:[#allocation2 + $0xc8] sm:$0xff]  ;;  %569 = vst.msk [vmem:[#allocation2 + $0xd9] sm:$0xff] %vm506_vm2, %v490_v56  ;;  %3549 = vmatmul.msk.f32.gmra.mxu1 %vm506_vm2, %v4262_v59 }
 0x115   : > { %v4266_v61 = vld [vmem:[#allocation2 + $0xc2] sm:$0xff]  ;;  %3582 = vmatmul.msk.f32.gmra.mxu2 %vm506_vm2, %v4264_v60  ;;  %v4288_v9 = vld [vmem:[#allocation2 + $0xca] sm:$0xff] }
 0x116   : > { %3615 = vmatmul.msk.f32.gmra.mxu3 %vm506_vm2, %v4266_v61 }
 0x117   : > { %v429_v62 = vpop.f32.mrf.mxu0 }
 0x118   : > { %v430_v3 = vadd.f32 %v4031_v19, %v429_v62 }
 0x11a   : > { %v491_v4 = vmax.f32 %v430_v3, 0.0  ;;  %3533 = vmatmul.msk.f32.gmra.mxu0 %vm506_vm2, %v619_v2 }
 0x11b   : > { %v4279_v5 = vld [vmem:[#allocation2 + $0xd9] sm:$0xff] }
 0x11c   : > { %v4281_v43 = vld [vmem:[#allocation2 + $0xd8] sm:$0xff]  ;;  %570 = vst.msk [vmem:[#allocation2 + $0xe1] sm:$0xff] %vm506_vm2, %v491_v4  ;;  %3550 = vmatmul.msk.f32.gmra.mxu1 %vm506_vm2, %v4279_v5 }
 0x11d   : > { %3583 = vmatmul.msk.f32.gmra.mxu2 %vm506_vm2, %v4281_v43 }
 0x11e   : > { %3616 = vmatmul.msk.f32.gmra.mxu3 %vm506_vm2, %v4288_v9 }
 0x11f   : > { %v432_v10 = vpop.f32.mrf.mxu0 }
 0x120   : > { %v433_v11 = vadd.f32 %v4031_v19, %v432_v10  ;;  %v4369_v10 = vld [vmem:[#allocation2 + $0x49] sm:$0xff] }
 0x122   : > { %v492_v17 = vmax.f32 %v433_v11, 0.0  ;;  %3534 = vmatmul.msk.f32.gmra.mxu0 %vm506_vm2, %v4293_v12 }
 0x123   : > { %v4297_v18 = vld [vmem:[#allocation2 + $0xe1] sm:$0xff] }
 0x124   : > { %v4299_v20 = vld [vmem:[#allocation2 + $0xe0] sm:$0xff]  ;;  %571 = vst.msk [vmem:[#allocation2 + $0xf1] sm:$0xff] %vm506_vm2, %v492_v17  ;;  %3551 = vmatmul.msk.f32.gmra.mxu1 %vm506_vm2, %v4297_v18 }
 0x125   : > { %v4301_v21 = vld [vmem:[#allocation2 + $0xda] sm:$0xff]  ;;  %3584 = vmatmul.msk.f32.gmra.mxu2 %vm506_vm2, %v4299_v20  ;;  %v4324_v34 = vld [vmem:[#allocation2 + $0xe2] sm:$0xff] }
 0x126   : > { %3617 = vmatmul.msk.f32.gmra.mxu3 %vm506_vm2, %v4301_v21 }
 0x127   : > { %v435_v25 = vpop.f32.mrf.mxu0 }
 0x128   : > { %v436_v26 = vadd.f32 %v4031_v19, %v435_v25 }
 0x12a   : > { %v493_v28 = vmax.f32 %v436_v26, 0.0  ;;  %3535 = vmatmul.msk.f32.gmra.mxu0 %vm506_vm2, %v4311_v27 }
 0x12b   : > { %v4315_v32 = vld [vmem:[#allocation2 + $0xf1] sm:$0xff] }
 0x12c   : > { %v4317_v33 = vld [vmem:[#allocation2 + $0xf0] sm:$0xff]  ;;  %572 = vst.msk [vmem:[#allocation2 + $0xf9] sm:$0xff] %vm506_vm2, %v493_v28  ;;  %3552 = vmatmul.msk.f32.gmra.mxu1 %vm506_vm2, %v4315_v32 }
 0x12d   : > { %3585 = vmatmul.msk.f32.gmra.mxu2 %vm506_vm2, %v4317_v33 }
 0x12e   : > { %3618 = vmatmul.msk.f32.gmra.mxu3 %vm506_vm2, %v4324_v34 }
 0x12f   : > { %v438_v35 = vpop.f32.mrf.mxu0 }
 0x130   : > { %v439_v15 = vadd.f32 %v4031_v19, %v438_v35 }
 0x132   : > { %v494_v40 = vmax.f32 %v439_v15, 0.0  ;;  %3536 = vmatmul.msk.f32.gmra.mxu0 %vm506_vm2, %v4329_v39 }
 0x133   : > { %v4333_v41 = vld [vmem:[#allocation2 + $0xf9] sm:$0xff] }
 0x134   : > { %5464 = vst [vmem:[#allocation3_spill] sm:$0xff] %v4333_v41  ;;  %v4335_v46 = vld [vmem:[#allocation2 + $0xf8] sm:$0xff]  ;;  %3553 = vmatmul.msk.f32.gmra.mxu1 %vm506_vm2, %v4333_v41 }
 0x135   : > { %5465 = vst [vmem:[#allocation4_spill] sm:$0xff] %v4335_v46  ;;  %v4337_v47 = vld [vmem:[#allocation2 + $0xf2] sm:$0xff]  ;;  %3586 = vmatmul.msk.f32.gmra.mxu2 %vm506_vm2, %v4335_v46  ;;  %v4364_v2 = vld [vmem:[#allocation2 + $0xfa] sm:$0xff] }
 0x136   : > { %5466 = vst [vmem:[#allocation5_spill] sm:$0xff] %v4337_v47  ;;  %3619 = vmatmul.msk.f32.gmra.mxu3 %vm506_vm2, %v4337_v47  ;;  %v4507_v47 = vld [vmem:[#allocation2 + $0x38] sm:$0xff]  ;;  %v4547_v46 = vld [vmem:[#allocation2 + $0x50] sm:$0xff] }
 0x137   : > { %573 = vst.msk [vmem:[#allocation2 + $0x109] sm:$0xff] %vm506_vm2, %v494_v40  ;;  %v441_v49 = vpop.f32.mrf.mxu0  ;;  %v4387_v40 = vld [vmem:[#allocation2 + $0x51] sm:$0xff] }
 0x138   : > { %v442_v53 = vadd.f32 %v4031_v19, %v441_v49  ;;  %5469 = vst [vmem:[#allocation8_spill] sm:$0xff] %v4364_v2 }
 0x13a   : > { %v495_v55 = vmax.f32 %v442_v53, 0.0  ;;  %3537 = vmatmul.msk.f32.gmra.mxu0 %vm506_vm2, %v4351_v54 }
 0x13c   : > { %574 = vst.msk [vmem:[#allocation2 + $0x111] sm:$0xff] %vm506_vm2, %v495_v55 }
 0x13e   : > { %v4355_v56 = vld [vmem:[#allocation2 + $0x109] sm:$0xff]  ;;  %3620 = vmatmul.msk.f32.gmra.mxu3 %vm506_vm2, %v4364_v2 }
 0x13f   : > { %5467 = vst [vmem:[#allocation6_spill] sm:$0xff] %v4355_v56  ;;  %v4357_v62 = vld [vmem:[#allocation2 + $0x108] sm:$0xff]  ;;  %3554 = vmatmul.msk.f32.gmra.mxu1 %vm506_vm2, %v4355_v56  ;;  %v444_v3 = vpop.f32.mrf.mxu0 }
 0x140   : > { %5468 = vst [vmem:[#allocation7_spill] sm:$0xff] %v4357_v62  ;;  %3587 = vmatmul.msk.f32.gmra.mxu2 %vm506_vm2, %v4357_v62  ;;  %v445_v4 = vadd.f32 %v4031_v19, %v444_v3 }
 0x142   : > { %v496_v11 = vmax.f32 %v445_v4, 0.0  ;;  %3538 = vmatmul.msk.f32.gmra.mxu0 %vm506_vm2, %v4369_v10 }
 0x143   : > { %v4373_v17 = vld [vmem:[#allocation2 + $0x111] sm:$0xff] }
 0x144   : > { %5470 = vst [vmem:[#allocation9_spill] sm:$0xff] %v4373_v17  ;;  %v4375_v25 = vld [vmem:[#allocation2 + $0x110] sm:$0xff] }
 0x145   : > { %5471 = vst [vmem:[#allocation10_spill] sm:$0xff] %v4375_v25  ;;  %v4377_v26 = vld [vmem:[#allocation2 + $0x10a] sm:$0xff]  ;;  %v4400_v55 = vld [vmem:[#allocation2 + $0x112] sm:$0xff] }
 0x146   : > { %5472 = vst [vmem:[#allocation11_spill] sm:$0xff] %v4377_v26  ;;  %3621 = vmatmul.msk.f32.gmra.mxu3 %vm506_vm2, %v4377_v26 }
 0x147   : > { %575 = vst.msk [vmem:[#allocation2 + $0x121] sm:$0xff] %vm506_vm2, %v496_v11  ;;  %3555 = vmatmul.msk.f32.gmra.mxu1 %vm506_vm2, %v4373_v17  ;;  %v447_v28 = vpop.f32.mrf.mxu0  ;;  %v585_v11 = vld [vmem:[#allocation2] sm:$0xff] }
 0x148   : > { %3588 = vmatmul.msk.f32.gmra.mxu2 %vm506_vm2, %v4375_v25  ;;  %v448_v35 = vadd.f32 %v4031_v19, %v447_v28  ;;  %5475 = vst [vmem:[#allocation14_spill] sm:$0xff] %v4400_v55 }
 0x149   : > { %v793_v15 = vpop.f32.mrf.mxu1 }
 0x14a   : > { %v497_v48 = vmax.f32 %v448_v35, 0.0  ;;  %3539 = vmatmul.msk.f32.gmra.mxu0 %vm506_vm2, %v4387_v40 }
 0x14c   : > { %576 = vst.msk [vmem:[#allocation2 + $0x129] sm:$0xff] %vm506_vm2, %v497_v48 }
 0x14e   : > { %v4391_v49 = vld [vmem:[#allocation2 + $0x121] sm:$0xff]  ;;  %3622 = vmatmul.msk.f32.gmra.mxu3 %vm506_vm2, %v4400_v55 }
 0x14f   : > { %5473 = vst [vmem:[#allocation12_spill] sm:$0xff] %v4391_v49  ;;  %v4393_v53 = vld [vmem:[#allocation2 + $0x120] sm:$0xff]  ;;  %3556 = vmatmul.msk.f32.gmra.mxu1 %vm506_vm2, %v4391_v49  ;;  %v450_v3 = vpop.f32.mrf.mxu0 }
 0x150   : > { %5474 = vst [vmem:[#allocation13_spill] sm:$0xff] %v4393_v53  ;;  %3589 = vmatmul.msk.f32.gmra.mxu2 %vm506_vm2, %v4393_v53  ;;  %v1005_v4 = vpop.f32.mrf.mxu2  ;;  %v451_v28 = vadd.f32 %v4031_v19, %v450_v3 }
 0x151   : > { %v1006_v35 = vadd.f32 %v1005_v4, %v793_v15  ;;  %v796_v26 = vpop.f32.mrf.mxu1  ;;  %v586_v4 = vld [vmem:[#allocation2 + $0x8] sm:$0xff] }
 0x152   : > { %v498_v17 = vmax.f32 %v451_v28, 0.0  ;;  %3565 = vmatmul.msk.f32.vlgmr.msra.gmra.mxu0 %vm506_vm2, %v585_v11 }
 0x153   : > { %v4406_v48 = vld [vmem:[#allocation2 + $0x129] sm:$0xff] }
 0x154   : > { %5476 = vst [vmem:[#allocation15_spill] sm:$0xff] %v4406_v48  ;;  %v4408_v49 = vld [vmem:[#allocation2 + $0x128] sm:$0xff] }
 0x155   : > { %5477 = vst [vmem:[#allocation16_spill] sm:$0xff] %v4408_v49  ;;  %v4410_v53 = vld [vmem:[#allocation2 + $0x122] sm:$0xff] }
 0x156   : > { %5478 = vst [vmem:[#allocation17_spill] sm:$0xff] %v4410_v53  ;;  %3623 = vmatmul.msk.f32.gmra.mxu3 %vm506_vm2, %v4410_v53 }
 0x157   : > { %577 = vst.msk [vmem:[#allocation2 + $0x139] sm:$0xff] %vm506_vm2, %v498_v17  ;;  %3557 = vmatmul.msk.f32.gmra.mxu1 %vm506_vm2, %v4406_v48  ;;  %v453_v15 = vpop.f32.mrf.mxu0 }
 0x158   : > { %3590 = vmatmul.msk.f32.gmra.mxu2 %vm506_vm2, %v4408_v49  ;;  %v1008_v3 = vpop.f32.mrf.mxu2  ;;  %v454_v11 = vadd.f32 %v4031_v19, %v453_v15  ;;  %v4459_v49 = vld [vmem:[#allocation2 + $0x20] sm:$0xff] }
 0x159   : > { %v1009_v28 = vadd.f32 %v1008_v3, %v796_v26  ;;  %v1251_v55 = vpop.f32.mrf.mxu3  ;;  %v799_v2 = vpop.f32.mrf.mxu1  ;;  %v4432_v26 = vld [vmem:[#allocation2 + $0x12a] sm:$0xff] }
 0x15a   : > { %v4420_v25 = vadd.f32 %v1251_v55, %v1006_v35  ;;  %v499_v17 = vmax.f32 %v454_v11, 0.0  ;;  %3566 = vmatmul.msk.f32.gmra.mxu0 %vm506_vm2, %v586_v4  ;;  %5482 = vst [vmem:[#allocation21_spill] sm:$0xff] %v4432_v26 }
 0x15c   : > { %5479 = vst [vmem:[#allocation18_spill] sm:$0xff] %v4420_v25  ;;  %v4439_v25 = vld [vmem:[#allocation2 + $0x18] sm:$0xff] }
 0x15d   : > { %578 = vst.msk [vmem:[#allocation2 + $0x141] sm:$0xff] %vm506_vm2, %v499_v17 }
 0x15e   : > { %v4423_v48 = vld [vmem:[#allocation2 + $0x139] sm:$0xff]  ;;  %3624 = vmatmul.msk.f32.gmra.mxu3 %vm506_vm2, %v4432_v26 }
 0x15f   : > { %5480 = vst [vmem:[#allocation19_spill] sm:$0xff] %v4423_v48  ;;  %v4425_v56 = vld [vmem:[#allocation2 + $0x138] sm:$0xff]  ;;  %3558 = vmatmul.msk.f32.gmra.mxu1 %vm506_vm2, %v4423_v48  ;;  %v456_v55 = vpop.f32.mrf.mxu0 }
 0x160   : > { %5481 = vst [vmem:[#allocation20_spill] sm:$0xff] %v4425_v56  ;;  %3591 = vmatmul.msk.f32.gmra.mxu2 %vm506_vm2, %v4425_v56  ;;  %v1011_v35 = vpop.f32.mrf.mxu2  ;;  %v457_v15 = vadd.f32 %v4031_v19, %v456_v55 }
 0x161   : > { %v1012_v3 = vadd.f32 %v1011_v35, %v799_v2  ;;  %v1254_v4 = vpop.f32.mrf.mxu3  ;;  %v802_v17 = vpop.f32.mrf.mxu1 }
 0x162   : > { %v4437_v11 = vadd.f32 %v1254_v4, %v1009_v28  ;;  %v500_v48 = vmax.f32 %v457_v15, 0.0  ;;  %3567 = vmatmul.msk.f32.gmra.mxu0 %vm506_vm2, %v4439_v25 }
 0x164   : > { %5483 = vst [vmem:[#allocation22_spill] sm:$0xff] %v4437_v11  ;;  %v4443_v56 = vld [vmem:[#allocation2 + $0x141] sm:$0xff] }
 0x165   : > { %5484 = vst [vmem:[#allocation23_spill] sm:$0xff] %v4443_v56  ;;  %v4445_v53 = vld [vmem:[#allocation2 + $0x140] sm:$0xff] }
 0x166   : > { %5485 = vst [vmem:[#allocation24_spill] sm:$0xff] %v4445_v53  ;;  %v4447_v26 = vld [vmem:[#allocation2 + $0x13a] sm:$0xff] }
 0x167   : > { %5486 = vst [vmem:[#allocation25_spill] sm:$0xff] %v4447_v26  ;;  %3559 = vmatmul.msk.f32.gmra.mxu1 %vm506_vm2, %v4443_v56  ;;  %3625 = vmatmul.msk.f32.gmra.mxu3 %vm506_vm2, %v4447_v26  ;;  %v459_v2 = vpop.f32.mrf.mxu0 }
 0x168   : > { %579 = vst.msk [vmem:[#allocation2 + $0x151] sm:$0xff] %vm506_vm2, %v500_v48  ;;  %3592 = vmatmul.msk.f32.gmra.mxu2 %vm506_vm2, %v4445_v53  ;;  %v1014_v28 = vpop.f32.mrf.mxu2  ;;  %v460_v55 = vadd.f32 %v4031_v19, %v459_v2 }
 0x169   : > { %v1015_v35 = vadd.f32 %v1014_v28, %v802_v17  ;;  %v1257_v15 = vpop.f32.mrf.mxu3  ;;  %v805_v11 = vpop.f32.mrf.mxu1  ;;  %v3801_v17 = vld [vmem:[%s5429_s2 + $0x20] sm:$0xf] }
 0x16a   : > { %v4457_v4 = vadd.f32 %v1257_v15, %v1012_v3  ;;  %v501_v48 = vmax.f32 %v460_v55, 0.0  ;;  %3568 = vmatmul.msk.f32.gmra.mxu0 %vm506_vm2, %v4459_v49  ;;  %v4472_v3 = vld [vmem:[#allocation2 + $0x142] sm:$0xff]  ;;  %3802 = vmatpush.msk.msra.mxu2 %vm748_vm3, %v3801_v17 }
 0x16b   : > { %5490 = vst [vmem:[#allocation29_spill] sm:$0xff] %v4472_v3 }
 0x16c   : > { %5487 = vst [vmem:[#allocation26_spill] sm:$0xff] %v4457_v4 }
 0x16d   : > { %580 = vst.msk [vmem:[#allocation2 + $0x159] sm:$0xff] %vm506_vm2, %v501_v48 }
 0x16f   : > { %v4463_v56 = vld [vmem:[#allocation2 + $0x151] sm:$0xff]  ;;  %3626 = vmatmul.msk.f32.gmra.mxu3 %vm506_vm2, %v4472_v3  ;;  %v462_v2 = vpop.f32.mrf.mxu0  ;;  %v3767_v3 = vld [vmem:[%s5429_s2 + $0x1c] sm:$0xf] }
 0x170   : > { %5488 = vst [vmem:[#allocation27_spill] sm:$0xff] %v4463_v56  ;;  %v4465_v53 = vld [vmem:[#allocation2 + $0x150] sm:$0xff]  ;;  %3560 = vmatmul.msk.f32.gmra.mxu1 %vm506_vm2, %v4463_v56  ;;  %v1017_v28 = vpop.f32.mrf.mxu2  ;;  %v463_v55 = vadd.f32 %v4031_v19, %v462_v2 }
 0x171   : > { %5489 = vst [vmem:[#allocation28_spill] sm:$0xff] %v4465_v53  ;;  %3593 = vmatmul.msk.f32.gmra.mxu2 %vm506_vm2, %v4465_v53  ;;  %v1018_v15 = vadd.f32 %v1017_v28, %v805_v11  ;;  %v1260_v48 = vpop.f32.mrf.mxu3  ;;  %v808_v56 = vpop.f32.mrf.mxu1  ;;  %v4483_v53 = vld [vmem:[#allocation2 + $0x30] sm:$0xff]  ;;  %3768 = vmatpush.msk.msra.mxu1 %vm748_vm3, %v3767_v3 }
 0x172   : > { %v4481_v4 = vadd.f32 %v1260_v48, %v1015_v35  ;;  %v502_v26 = vmax.f32 %v463_v55, 0.0  ;;  %3569 = vmatmul.msk.f32.gmra.mxu0 %vm506_vm2, %v4483_v53 }
 0x174   : > { %5491 = vst [vmem:[#allocation30_spill] sm:$0xff] %v4481_v4  ;;  %v4491_v17 = vld [vmem:[#allocation2 + $0x159] sm:$0xff] }
 0x175   : > { %5492 = vst [vmem:[#allocation31_spill] sm:$0xff] %v4491_v17  ;;  %v4493_v2 = vld [vmem:[#allocation2 + $0x158] sm:$0xff] }
 0x176   : > { %5493 = vst [vmem:[#allocation32_spill] sm:$0xff] %v4493_v2  ;;  %v4495_v11 = vld [vmem:[#allocation2 + $0x152] sm:$0xff] }
 0x177   : > { %5494 = vst [vmem:[#allocation33_spill] sm:$0xff] %v4495_v11  ;;  %3627 = vmatmul.msk.f32.gmra.mxu3 %vm506_vm2, %v4495_v11  ;;  %v465_v35 = vpop.f32.mrf.mxu0  ;;  %v4527_v11 = vld [vmem:[#allocation2 + $0x48] sm:$0xff] }
 0x178   : > { %581 = vst.msk [vmem:[#allocation2 + $0x169] sm:$0xff] %vm506_vm2, %v502_v26  ;;  %3561 = vmatmul.msk.f32.gmra.mxu1 %vm506_vm2, %v4491_v17  ;;  %v1020_v28 = vpop.f32.mrf.mxu2  ;;  %v466_v3 = vadd.f32 %v4031_v19, %v465_v35 }
 0x179   : > { %3594 = vmatmul.msk.f32.gmra.mxu2 %vm506_vm2, %v4493_v2  ;;  %v1021_v55 = vadd.f32 %v1020_v28, %v808_v56  ;;  %v1263_v48 = vpop.f32.mrf.mxu3  ;;  %v811_v62 = vpop.f32.mrf.mxu1  ;;  %v4520_v56 = vld [vmem:[#allocation2 + $0x15a] sm:$0xff] }
 0x17a   : > { %v4505_v4 = vadd.f32 %v1263_v48, %v1018_v15  ;;  %v503_v26 = vmax.f32 %v466_v3, 0.0  ;;  %3570 = vmatmul.msk.f32.gmra.mxu0 %vm506_vm2, %v4507_v47  ;;  %5498 = vst [vmem:[#allocation37_spill] sm:$0xff] %v4520_v56 }
 0x17c   : > { %5495 = vst [vmem:[#allocation34_spill] sm:$0xff] %v4505_v4 }
 0x17d   : > { %582 = vst.msk [vmem:[#allocation2 + $0x171] sm:$0xff] %vm506_vm2, %v503_v26 }
 0x17f   : > { %v4511_v17 = vld [vmem:[#allocation2 + $0x169] sm:$0xff]  ;;  %3628 = vmatmul.msk.f32.gmra.mxu3 %vm506_vm2, %v4520_v56  ;;  %v468_v15 = vpop.f32.mrf.mxu0 }
 0x180   : > { %5496 = vst [vmem:[#allocation35_spill] sm:$0xff] %v4511_v17  ;;  %v4513_v2 = vld [vmem:[#allocation2 + $0x168] sm:$0xff]  ;;  %3562 = vmatmul.msk.f32.gmra.mxu1 %vm506_vm2, %v4511_v17  ;;  %v1023_v35 = vpop.f32.mrf.mxu2  ;;  %v469_v28 = vadd.f32 %v4031_v19, %v468_v15 }
 0x181   : > { %5497 = vst [vmem:[#allocation36_spill] sm:$0xff] %v4513_v2  ;;  %3595 = vmatmul.msk.f32.gmra.mxu2 %vm506_vm2, %v4513_v2  ;;  %v1024_v3 = vadd.f32 %v1023_v35, %v811_v62  ;;  %v1266_v48 = vpop.f32.mrf.mxu3  ;;  %v814_v26 = vpop.f32.mrf.mxu1 }
 0x182   : > { %v4525_v4 = vadd.f32 %v1266_v48, %v1021_v55  ;;  %v504_v17 = vmax.f32 %v469_v28, 0.0  ;;  %3571 = vmatmul.msk.f32.gmra.mxu0 %vm506_vm2, %v4527_v11 }
 0x184   : > { %5499 = vst [vmem:[#allocation38_spill] sm:$0xff] %v4525_v4  ;;  %v4531_v2 = vld [vmem:[#allocation2 + $0x171] sm:$0xff] }
 0x185   : > { %5500 = vst [vmem:[#allocation39_spill] sm:$0xff] %v4531_v2  ;;  %v4533_v41 = vld [vmem:[#allocation2 + $0x170] sm:$0xff] }
 0x186   : > { %v4535_v56 = vld [vmem:[#allocation2 + $0x16a] sm:$0xff]  ;;  %583 = vst.msk [vmem:[#allocation2 + $0x181] sm:$0xff] %vm506_vm2, %v504_v17 }
 0x187   : > { %3629 = vmatmul.msk.f32.gmra.mxu3 %vm506_vm2, %v4535_v56  ;;  %v471_v62 = vpop.f32.mrf.mxu0 }
 0x188   : > { %3563 = vmatmul.msk.f32.gmra.mxu1 %vm506_vm2, %v4531_v2  ;;  %v1026_v55 = vpop.f32.mrf.mxu2  ;;  %v472_v15 = vadd.f32 %v4031_v19, %v471_v62  ;;  %v4552_v2 = vld [vmem:[#allocation2 + $0x172] sm:$0xff] }
 0x189   : > { %3596 = vmatmul.msk.f32.gmra.mxu2 %vm506_vm2, %v4533_v41  ;;  %v1027_v35 = vadd.f32 %v1026_v55, %v814_v26  ;;  %v1269_v28 = vpop.f32.mrf.mxu3  ;;  %v817_v4 = vpop.f32.mrf.mxu1  ;;  %v1077_v26 = vld [vmem:[#allocation2 + $0x2] sm:$0xff] }
 0x18a   : > { %v4545_v48 = vadd.f32 %v1269_v28, %v1024_v3  ;;  %v505_v17 = vmax.f32 %v472_v15, 0.0  ;;  %3572 = vmatmul.msk.f32.gmra.mxu0 %vm506_vm2, %v4547_v46 }
 0x18c   : > { %5501 = vst [vmem:[#allocation40_spill] sm:$0xff] %v4545_v48  ;;  %v1078_v48 = vld [vmem:[#allocation2 + $0xa] sm:$0xff] }
 0x18d   : > { %584 = vst.msk [vmem:[#allocation2 + $0x189] sm:$0xff] %vm506_vm2, %v505_v17 }
 0x18f   : > { %3630 = vmatmul.msk.f32.gmra.mxu3 %vm506_vm2, %v4552_v2  ;;  %v4560_v19 = vpop.f32.mrf.mxu0 }
 0x190   : > { %3633 = vmatmul.msk.f32.vlgmr.msrb.gmra.mxu1 %vm506_vm2, %v4439_v25  ;;  %v1029_v3 = vpop.f32.mrf.mxu2 }
 0x191   : > { %3667 = vmatmul.msk.f32.vlgmr.msrb.gmra.mxu2 %vm506_vm2, %v4293_v12  ;;  %v1030_v62 = vadd.f32 %v1029_v3, %v817_v4  ;;  %v1272_v55 = vpop.f32.mrf.mxu3  ;;  %v820_v28 = vpop.f32.mrf.mxu1  ;;  %v1911_v12 = vld [vmem:[#allocation2 + $0x1a] sm:$0xff] }
 0x192   : > { %v4562_v15 = vadd.f32 %v1272_v55, %v1027_v35  ;;  %3599 = vmatmul.msk.f32.vlgmr.msrb.gmra.mxu0 %vm506_vm2, %v1077_v26 }
 0x194   : > { %5502 = vst [vmem:[#allocation41_spill] sm:$0xff] %v4562_v15 }
 0x197   : > { %3701 = vmatmul.msk.f32.vlgmr.msrb.gmra.mxu3 %vm506_vm2, %v1911_v12  ;;  %v4570_v25 = vpop.f32.mrf.mxu0 }
 0x198   : > { %3634 = vmatmul.msk.f32.gmra.mxu1 %vm506_vm2, %v4459_v49  ;;  %v1032_v17 = vpop.f32.mrf.mxu2 }
 0x199   : > { %3668 = vmatmul.msk.f32.gmra.mxu2 %vm506_vm2, %v4311_v27  ;;  %v1033_v4 = vadd.f32 %v1032_v17, %v820_v28  ;;  %v1275_v3 = vpop.f32.mrf.mxu3  ;;  %v823_v55 = vpop.f32.mrf.mxu1  ;;  %v1912_v27 = vld [vmem:[#allocation2 + $0x22] sm:$0xff] }
 0x19a   : > { %v4572_v35 = vadd.f32 %v1275_v3, %v1030_v62  ;;  %3600 = vmatmul.msk.f32.gmra.mxu0 %vm506_vm2, %v1078_v48 }
 0x19f   : > { %3702 = vmatmul.msk.f32.gmra.mxu3 %vm506_vm2, %v1912_v27  ;;  %v4580_v49 = vpop.f32.mrf.mxu0 }
 0x1a0   : > { %3635 = vmatmul.msk.f32.gmra.mxu1 %vm506_vm2, %v4483_v53  ;;  %v1035_v26 = vpop.f32.mrf.mxu2 }
 0x1a1   : > { %3669 = vmatmul.msk.f32.gmra.mxu2 %vm506_vm2, %v4329_v39  ;;  %v1036_v15 = vadd.f32 %v1035_v26, %v823_v55  ;;  %v1278_v28 = vpop.f32.mrf.mxu3  ;;  %v826_v62 = vpop.f32.mrf.mxu1  ;;  %v4589_v39 = vld [vmem:[#allocation2 + $0x32] sm:$0xff] }
 0x1a2   : > { %v4582_v17 = vadd.f32 %v1278_v28, %v1033_v4  ;;  %3601 = vmatmul.msk.f32.gmra.mxu0 %vm506_vm2, %v1911_v12 }
 0x1a4   : > { %5503 = vst [vmem:[#allocation42_spill] sm:$0xff] %v4582_v17 }
 0x1a7   : > { %3703 = vmatmul.msk.f32.gmra.mxu3 %vm506_vm2, %v4589_v39  ;;  %v4593_v48 = vpop.f32.mrf.mxu0 }
 0x1a8   : > { %3636 = vmatmul.msk.f32.gmra.mxu1 %vm506_vm2, %v4507_v47  ;;  %v1038_v3 = vpop.f32.mrf.mxu2 }
 0x1a9   : > { %3670 = vmatmul.msk.f32.gmra.mxu2 %vm506_vm2, %v4351_v54  ;;  %v1039_v55 = vadd.f32 %v1038_v3, %v826_v62  ;;  %v1281_v4 = vpop.f32.mrf.mxu3  ;;  %v829_v28 = vpop.f32.mrf.mxu1  ;;  %v4602_v54 = vld [vmem:[#allocation2 + $0x3a] sm:$0xff] }
 0x1aa   : > { %v4595_v26 = vadd.f32 %v1281_v4, %v1036_v15  ;;  %3602 = vmatmul.msk.f32.gmra.mxu0 %vm506_vm2, %v1912_v27  ;;  %v3733_v27 = vld [vmem:[%s5429_s2 + $0x18] sm:$0xf] }
 0x1ab   : > { %3734 = vmatpush.msk.msra.mxu0 %vm748_vm3, %v3733_v27 }
 0x1ac   : > { %5504 = vst [vmem:[#allocation43_spill] sm:$0xff] %v4595_v26 }
 0x1af   : > { %3704 = vmatmul.msk.f32.gmra.mxu3 %vm506_vm2, %v4602_v54  ;;  %v4606_v12 = vpop.f32.mrf.mxu0 }
 0x1b0   : > { %3637 = vmatmul.msk.f32.gmra.mxu1 %vm506_vm2, %v4527_v11  ;;  %v1041_v62 = vpop.f32.mrf.mxu2 }
 0x1b1   : > { %3671 = vmatmul.msk.f32.gmra.mxu2 %vm506_vm2, %v4369_v10  ;;  %v1042_v3 = vadd.f32 %v1041_v62, %v829_v28  ;;  %v1284_v15 = vpop.f32.mrf.mxu3  ;;  %v832_v26 = vpop.f32.mrf.mxu1  ;;  %v4620_v10 = vld [vmem:[#allocation2 + $0x4a] sm:$0xff] }
 0x1b2   : > { %v4608_v4 = vadd.f32 %v1284_v15, %v1039_v55  ;;  %3603 = vmatmul.msk.f32.gmra.mxu0 %vm506_vm2, %v4589_v39 }
 0x1b4   : > { %5505 = vst [vmem:[#allocation44_spill] sm:$0xff] %v4608_v4 }
 0x1b7   : > { %3705 = vmatmul.msk.f32.gmra.mxu3 %vm506_vm2, %v4620_v10  ;;  %v4624_v55 = vpop.f32.mrf.mxu0 }
 0x1b8   : > { %3638 = vmatmul.msk.f32.gmra.mxu1 %vm506_vm2, %v4547_v46  ;;  %v1044_v28 = vpop.f32.mrf.mxu2 }
 0x1b9   : > { %3672 = vmatmul.msk.f32.gmra.mxu2 %vm506_vm2, %v4387_v40  ;;  %v1045_v62 = vadd.f32 %v1044_v28, %v832_v26  ;;  %v1287_v15 = vpop.f32.mrf.mxu3  ;;  %v4634_v40 = vld [vmem:[#allocation2 + $0x52] sm:$0xff] }
 0x1ba   : > { %v4626_v4 = vadd.f32 %v1287_v15, %v1042_v3  ;;  %3604 = vmatmul.msk.f32.gmra.mxu0 %vm506_vm2, %v4602_v54 }
 0x1bc   : > { %5506 = vst [vmem:[#allocation45_spill] sm:$0xff] %v4626_v4  ;;  %v835_v17 = vpop.f32.mrf.mxu1 }
 0x1bf   : > { %3706 = vmatmul.msk.f32.gmra.mxu3 %vm506_vm2, %v4634_v40  ;;  %v4638_v27 = vpop.f32.mrf.mxu0 }
 0x1c0   : > { %3639 = vmatmul.msk.f32.gmra.mxu1 %vm506_vm2, %v4119_v58 }
 0x1c1   : > { %3673 = vmatmul.msk.f32.gmra.mxu2 %vm506_vm2, %v4117_v57  ;;  %v1290_v28 = vpop.f32.mrf.mxu3 }
 0x1c2   : > { %v4640_v15 = vadd.f32 %v1290_v28, %v1045_v62  ;;  %3605 = vmatmul.msk.f32.gmra.mxu0 %vm506_vm2, %v4620_v10 }
 0x1c3   : > { %v1047_v26 = vpop.f32.mrf.mxu2 }
 0x1c4   : > { %v1048_v3 = vadd.f32 %v1047_v26, %v835_v17  ;;  %v838_v4 = vpop.f32.mrf.mxu1 }
 0x1c7   : > { %3707 = vmatmul.msk.f32.gmra.mxu3 %vm506_vm2, %v4133_v1  ;;  %v4650_v57 = vpop.f32.mrf.mxu0 }
 0x1c8   : > { %3640 = vmatmul.msk.f32.gmra.mxu1 %vm506_vm2, %v4131_v0 }
 0x1c9   : > { %3674 = vmatmul.msk.f32.gmra.mxu2 %vm506_vm2, %v4129_v63  ;;  %v1293_v26 = vpop.f32.mrf.mxu3 }
 0x1ca   : > { %v4652_v62 = vadd.f32 %v1293_v26, %v1048_v3  ;;  %3606 = vmatmul.msk.f32.gmra.mxu0 %vm506_vm2, %v4634_v40 }
 0x1cb   : > { %v1050_v58 = vpop.f32.mrf.mxu2 }
 0x1cc   : > { %v1051_v17 = vadd.f32 %v1050_v58, %v838_v4  ;;  %v841_v28 = vpop.f32.mrf.mxu1 }
 0x1cf   : > { %3708 = vmatmul.msk.f32.gmra.mxu3 %vm506_vm2, %v4154_v8  ;;  %v4662_v63 = vpop.f32.mrf.mxu0 }
 0x1d0   : > { %3641 = vmatmul.msk.f32.gmra.mxu1 %vm506_vm2, %v4147_v7 }
 0x1d1   : > { %3675 = vmatmul.msk.f32.gmra.mxu2 %vm506_vm2, %v4145_v6  ;;  %v1296_v4 = vpop.f32.mrf.mxu3 }
 0x1d2   : > { %v4664_v3 = vadd.f32 %v1296_v4, %v1051_v17  ;;  %3735 = vmatmul.msk.f32.vlgmr.msra.gmra.mxu0 %vm506_vm2, %v4483_v53 }
 0x1d3   : > { %v1053_v0 = vpop.f32.mrf.mxu2 }
 0x1d4   : > { %v1054_v1 = vadd.f32 %v1053_v0, %v841_v28  ;;  %v844_v58 = vpop.f32.mrf.mxu1 }
 0x1d7   : > { %3709 = vmatmul.msk.f32.gmra.mxu3 %vm506_vm2, %v4165_v16  ;;  %v4674_v6 = vpop.f32.mrf.mxu0 }
 0x1d8   : > { %3642 = vmatmul.msk.f32.gmra.mxu1 %vm506_vm2, %v4163_v14 }
 0x1d9   : > { %3676 = vmatmul.msk.f32.gmra.mxu2 %vm506_vm2, %v4161_v13  ;;  %v1299_v26 = vpop.f32.mrf.mxu3 }
 0x1da   : > { %v4676_v17 = vadd.f32 %v1299_v26, %v1054_v1  ;;  %3736 = vmatmul.msk.f32.gmra.mxu0 %vm506_vm2, %v4507_v47  ;;  %v2194_v26 = vld [vmem:[#allocation2 + $0x60] sm:$0xff] }
 0x1db   : > { %v1056_v7 = vpop.f32.mrf.mxu2 }
 0x1dc   : > { %v1057_v8 = vadd.f32 %v1056_v7, %v844_v58  ;;  %v847_v28 = vpop.f32.mrf.mxu1 }
 0x1df   : > { %3710 = vmatmul.msk.f32.gmra.mxu3 %vm506_vm2, %v4186_v24  ;;  %v4686_v13 = vpop.f32.mrf.mxu0 }
 0x1e0   : > { %3643 = vmatmul.msk.f32.gmra.mxu1 %vm506_vm2, %v4179_v23 }
 0x1e1   : > { %3677 = vmatmul.msk.f32.gmra.mxu2 %vm506_vm2, %v4177_v22  ;;  %v1302_v53 = vpop.f32.mrf.mxu3 }
 0x1e2   : > { %v4688_v0 = vadd.f32 %v1302_v53, %v1057_v8  ;;  %3737 = vmatmul.msk.f32.gmra.mxu0 %vm506_vm2, %v4527_v11 }
 0x1e3   : > { %v1059_v14 = vpop.f32.mrf.mxu2 }
 0x1e4   : > { %v1060_v16 = vadd.f32 %v1059_v14, %v847_v28  ;;  %v850_v1 = vpop.f32.mrf.mxu1 }
 0x1e7   : > { %3711 = vmatmul.msk.f32.gmra.mxu3 %vm506_vm2, %v4197_v31  ;;  %v4698_v22 = vpop.f32.mrf.mxu0 }
 0x1e8   : > { %3644 = vmatmul.msk.f32.gmra.mxu1 %vm506_vm2, %v4195_v30 }
 0x1e9   : > { %3678 = vmatmul.msk.f32.gmra.mxu2 %vm506_vm2, %v4193_v29 }
 0x1ea   : > { %v1305_v47 = vpop.f32.mrf.mxu3  ;;  %3738 = vmatmul.msk.f32.gmra.mxu0 %vm506_vm2, %v4547_v46 }
 0x1eb   : > { %v1062_v23 = vpop.f32.mrf.mxu2  ;;  %v4700_v4 = vadd.f32 %v1305_v47, %v1060_v16  ;;  %v2195_v16 = vld [vmem:[#allocation2 + $0x68] sm:$0xff]  ;;  %v2196_v47 = vld [vmem:[#allocation2 + $0x78] sm:$0xff] }
 0x1ec   : > { %v1063_v24 = vadd.f32 %v1062_v23, %v850_v1 }
 0x1ed   : > { %v853_v58 = vpop.f32.mrf.mxu1 }
 0x1ef   : > { %3712 = vmatmul.msk.f32.gmra.mxu3 %vm506_vm2, %v4224_v38  ;;  %v4710_v29 = vpop.f32.mrf.mxu0 }
 0x1f0   : > { %3645 = vmatmul.msk.f32.gmra.mxu1 %vm506_vm2, %v4217_v37 }
 0x1f1   : > { %3679 = vmatmul.msk.f32.gmra.mxu2 %vm506_vm2, %v4215_v36  ;;  %v3090_v36 = vld [vmem:[%s5430_s3] sm:$0xf] }
 0x1f2   : > { %v1308_v11 = vpop.f32.mrf.mxu3  ;;  %3739 = vmatmul.msk.f32.gmra.mxu0 %vm506_vm2, %v2194_v26  ;;  %3835 = vmatpush.msk.msra.mxu3 %vm748_vm3, %v3090_v36 }
 0x1f3   : > { %v4712_v7 = vadd.f32 %v1308_v11, %v1063_v24  ;;  %v2197_v11 = vld [vmem:[#allocation2 + $0x80] sm:$0xff] }
 0x1f4   : > { %v1065_v30 = vpop.f32.mrf.mxu2 }
 0x1f5   : > { %v1066_v31 = vadd.f32 %v1065_v30, %v853_v58  ;;  %v856_v8 = vpop.f32.mrf.mxu1 }
 0x1f7   : > { %3713 = vmatmul.msk.f32.gmra.mxu3 %vm506_vm2, %v4235_v45  ;;  %v4725_v37 = vpop.f32.mrf.mxu0 }
 0x1f8   : > { %3646 = vmatmul.msk.f32.gmra.mxu1 %vm506_vm2, %v4233_v44 }
 0x1f9   : > { %3680 = vmatmul.msk.f32.gmra.mxu2 %vm506_vm2, %v4231_v42 }
 0x1fa   : > { %v1311_v28 = vpop.f32.mrf.mxu3  ;;  %3740 = vmatmul.msk.f32.gmra.mxu0 %vm506_vm2, %v2195_v16 }
 0x1fb   : > { %v4727_v14 = vadd.f32 %v1311_v28, %v1066_v31 }
 0x1fc   : > { %v1068_v38 = vpop.f32.mrf.mxu2 }
 0x1fd   : > { %v1069_v46 = vadd.f32 %v1068_v38, %v856_v8  ;;  %v859_v44 = vpop.f32.mrf.mxu1 }
 0x1ff   : > { %3714 = vmatmul.msk.f32.gmra.mxu3 %vm506_vm2, %v4256_v52  ;;  %v4736_v42 = vpop.f32.mrf.mxu0 }
 0x200   : > { %3647 = vmatmul.msk.f32.gmra.mxu1 %vm506_vm2, %v4249_v51 }
 0x201   : > { %3681 = vmatmul.msk.f32.gmra.mxu2 %vm506_vm2, %v4247_v50 }
 0x202   : > { %v1314_v1 = vpop.f32.mrf.mxu3  ;;  %3741 = vmatmul.msk.f32.gmra.mxu0 %vm506_vm2, %v2196_v47 }
 0x203   : > { %v4738_v23 = vadd.f32 %v1314_v1, %v1069_v46  ;;  %v2198_v46 = vld [vmem:[#allocation2 + $0x90] sm:$0xff] }
 0x204   : > { %v1071_v45 = vpop.f32.mrf.mxu2 }
 0x205   : > { %v1072_v53 = vadd.f32 %v1071_v45, %v859_v44  ;;  %v862_v24 = vpop.f32.mrf.mxu1 }
 0x207   : > { %3715 = vmatmul.msk.f32.gmra.mxu3 %vm506_vm2, %v4266_v61  ;;  %v4747_v50 = vpop.f32.mrf.mxu0 }
 0x208   : > { %3648 = vmatmul.msk.f32.gmra.mxu1 %vm506_vm2, %v4264_v60  ;;  %v982_v60 = vadd.f32 %v4662_v63, %v4560_v19 }
 0x209   : > { %3682 = vmatmul.msk.f32.gmra.mxu2 %vm506_vm2, %v4262_v59 }
 0x20a   : > { %v1317_v58 = vpop.f32.mrf.mxu3  ;;  %3742 = vmatmul.msk.f32.gmra.mxu0 %vm506_vm2, %v2197_v11 }
 0x20b   : > { %v4749_v30 = vadd.f32 %v1317_v58, %v1072_v53  ;;  %v2199_v53 = vld [vmem:[#allocation2 + $0x98] sm:$0xff] }
 0x20c   : > { %v1074_v51 = vpop.f32.mrf.mxu2 }
 0x20d   : > { %v1075_v52 = vadd.f32 %v1074_v51, %v862_v24  ;;  %v1505_v31 = vpop.f32.mrf.mxu1 }
 0x20f   : > { %3716 = vmatmul.msk.f32.gmra.mxu3 %vm506_vm2, %v4288_v9  ;;  %v1227_v59 = vpop.f32.mrf.mxu0 }
 0x210   : > { %3649 = vmatmul.msk.f32.gmra.mxu1 %vm506_vm2, %v4281_v43  ;;  %v1323_v8 = vadd.f32 %v1227_v59, %v982_v60  ;;  %v985_v43 = vadd.f32 %v4674_v6, %v4570_v25 }
 0x211   : > { %3683 = vmatmul.msk.f32.gmra.mxu2 %vm506_vm2, %v4279_v5 }
 0x212   : > { %v1320_v26 = vpop.f32.mrf.mxu3  ;;  %v1601_v28 = vadd.f32 %v1505_v31, %v1323_v8  ;;  %3743 = vmatmul.msk.f32.gmra.mxu0 %vm506_vm2, %v2198_v46  ;;  %v5507_v31 = vld [vmem:[#allocation4_spill] sm:$0xff] }
 0x213   : > { %v4760_v36 = vadd.f32 %v1320_v26, %v1075_v52  ;;  %v2200_v52 = vld [vmem:[#allocation2 + $0xa8] sm:$0xff]  ;;  %v2201_v26 = vld [vmem:[#allocation2 + $0xb0] sm:$0xff] }
 0x214   : > { %v1783_v61 = vpop.f32.mrf.mxu2 }
 0x215   : > { %v1508_v38 = vpop.f32.mrf.mxu1  ;;  %v1879_v19 = vadd.f32 %v1783_v61, %v1601_v28  ;;  %v5510_v28 = vld [vmem:[#allocation7_spill] sm:$0xff] }
 0x217   : > { %3717 = vmatmul.msk.f32.gmra.mxu3 %vm506_vm2, %v4301_v21  ;;  %v1230_v5 = vpop.f32.mrf.mxu0 }
 0x218   : > { %3650 = vmatmul.msk.f32.gmra.mxu1 %vm506_vm2, %v4299_v20  ;;  %v1324_v63 = vadd.f32 %v1230_v5, %v985_v43  ;;  %v5511_v43 = vld [vmem:[#allocation6_spill] sm:$0xff] }
 0x219   : > { %3684 = vmatmul.msk.f32.gmra.mxu2 %vm506_vm2, %v4297_v18  ;;  %v988_v18 = vadd.f32 %v4686_v13, %v4580_v49  ;;  %v991_v49 = vadd.f32 %v4698_v22, %v4593_v48  ;;  %v994_v48 = vadd.f32 %v4710_v29, %v4606_v12  ;;  %v997_v12 = vadd.f32 %v4725_v37, %v4624_v55 }
 0x21a   : > { %v2061_v44 = vpop.f32.mrf.mxu3  ;;  %v1602_v1 = vadd.f32 %v1508_v38, %v1324_v63  ;;  %3744 = vmatmul.msk.f32.gmra.mxu0 %vm506_vm2, %v2199_v53  ;;  %v2202_v53 = vld [vmem:[#allocation2 + $0xc0] sm:$0xff]  ;;  %v1000_v55 = vadd.f32 %v4736_v42, %v4638_v27  ;;  %v1003_v27 = vadd.f32 %v4747_v50, %v4650_v57  ;;  %v5525_v57 = vld [vmem:[#allocation18_spill] sm:$0xff] }
 0x21b   : > { %v4771_v16 = vadd.f32 %v2061_v44, %v1879_v19  ;;  %v5512_v19 = vld [vmem:[#allocation8_spill] sm:$0xff] }
 0x21c   : > { %v1786_v9 = vpop.f32.mrf.mxu2 }
 0x21d   : > { %v1511_v45 = vpop.f32.mrf.mxu1  ;;  %v1880_v25 = vadd.f32 %v1786_v9, %v1602_v1 }
 0x21f   : > { %3718 = vmatmul.msk.f32.gmra.mxu3 %vm506_vm2, %v4324_v34  ;;  %v1233_v20 = vpop.f32.mrf.mxu0  ;;  %v5509_v34 = vld [vmem:[#allocation5_spill] sm:$0xff] }
 0x220   : > { %3651 = vmatmul.msk.f32.gmra.mxu1 %vm506_vm2, %v4317_v33  ;;  %v1325_v6 = vadd.f32 %v1233_v20, %v988_v18  ;;  %v5513_v18 = vld [vmem:[#allocation10_spill] sm:$0xff]  ;;  %v5514_v20 = vld [vmem:[#allocation9_spill] sm:$0xff] }
 0x221   : > { %3685 = vmatmul.msk.f32.gmra.mxu2 %vm506_vm2, %v4315_v32  ;;  %v5508_v32 = vld [vmem:[#allocation3_spill] sm:$0xff] }
 0x222   : > { %v2064_v24 = vpop.f32.mrf.mxu3  ;;  %v1603_v58 = vadd.f32 %v1511_v45, %v1325_v6  ;;  %3745 = vmatmul.msk.f32.gmra.mxu0 %vm506_vm2, %v2200_v52 }
 0x223   : > { %v4782_v47 = vadd.f32 %v2064_v24, %v1880_v25 }
 0x224   : > { %v1789_v21 = vpop.f32.mrf.mxu2 }
 0x225   : > { %v1514_v51 = vpop.f32.mrf.mxu1  ;;  %v1881_v33 = vadd.f32 %v1789_v21, %v1603_v58  ;;  %v5515_v21 = vld [vmem:[#allocation11_spill] sm:$0xff] }
 0x227   : > { %3719 = vmatmul.msk.f32.gmra.mxu3 %vm506_vm2, %v5509_v34  ;;  %v1236_v13 = vpop.f32.mrf.mxu0  ;;  %v5516_v34 = vld [vmem:[#allocation13_spill] sm:$0xff] }
 0x228   : > { %3652 = vmatmul.msk.f32.gmra.mxu1 %vm506_vm2, %v5507_v31  ;;  %v1326_v60 = vadd.f32 %v1236_v13, %v991_v49  ;;  %v5517_v49 = vld [vmem:[#allocation12_spill] sm:$0xff]  ;;  %v5518_v13 = vld [vmem:[#allocation14_spill] sm:$0xff] }
 0x229   : > { %3686 = vmatmul.msk.f32.gmra.mxu2 %vm506_vm2, %v5508_v32 }
 0x22a   : > { %v2067_v59 = vpop.f32.mrf.mxu3  ;;  %v1604_v38 = vadd.f32 %v1514_v51, %v1326_v60  ;;  %3746 = vmatmul.msk.f32.gmra.mxu0 %vm506_vm2, %v2201_v26 }
 0x22b   : > { %v4793_v61 = vadd.f32 %v2067_v59, %v1881_v33  ;;  %v2203_v33 = vld [vmem:[#allocation2 + $0xc8] sm:$0xff] }
 0x22c   : > { %v1792_v11 = vpop.f32.mrf.mxu2 }
 0x22d   : > { %v1517_v8 = vpop.f32.mrf.mxu1  ;;  %v1882_v46 = vadd.f32 %v1792_v11, %v1604_v38  ;;  %v2204_v38 = vld [vmem:[#allocation2 + $0xd8] sm:$0xff] }
 0x22f   : > { %3720 = vmatmul.msk.f32.gmra.mxu3 %vm506_vm2, %v5512_v19  ;;  %v1239_v22 = vpop.f32.mrf.mxu0  ;;  %v5520_v19 = vld [vmem:[#allocation15_spill] sm:$0xff] }
 0x230   : > { %3653 = vmatmul.msk.f32.gmra.mxu1 %vm506_vm2, %v5510_v28  ;;  %v1327_v9 = vadd.f32 %v1239_v22, %v994_v48  ;;  %v5521_v48 = vld [vmem:[#allocation17_spill] sm:$0xff] }
 0x231   : > { %3687 = vmatmul.msk.f32.gmra.mxu2 %vm506_vm2, %v5511_v43  ;;  %v5519_v43 = vld [vmem:[#allocation16_spill] sm:$0xff] }
 0x232   : > { %v2070_v63 = vpop.f32.mrf.mxu3  ;;  %v1605_v1 = vadd.f32 %v1517_v8, %v1327_v9  ;;  %3747 = vmatmul.msk.f32.gmra.mxu0 %vm506_vm2, %v2202_v53  ;;  %v2205_v53 = vld [vmem:[#allocation2 + $0xe0] sm:$0xff] }
 0x233   : > { %v4804_v44 = vadd.f32 %v2070_v63, %v1882_v46 }
 0x234   : > { %v1795_v5 = vpop.f32.mrf.mxu2 }
 0x235   : > { %v1520_v45 = vpop.f32.mrf.mxu1  ;;  %v1883_v25 = vadd.f32 %v1795_v5, %v1605_v1 }
 0x237   : > { %3721 = vmatmul.msk.f32.gmra.mxu3 %vm506_vm2, %v5515_v21  ;;  %v1242_v29 = vpop.f32.mrf.mxu0  ;;  %v5524_v21 = vld [vmem:[#allocation21_spill] sm:$0xff] }
 0x238   : > { %3654 = vmatmul.msk.f32.gmra.mxu1 %vm506_vm2, %v5513_v18  ;;  %v1328_v24 = vadd.f32 %v1242_v29, %v997_v12  ;;  %v5522_v18 = vld [vmem:[#allocation20_spill] sm:$0xff] }
 0x239   : > { %3688 = vmatmul.msk.f32.gmra.mxu2 %vm506_vm2, %v5514_v20  ;;  %v5523_v20 = vld [vmem:[#allocation19_spill] sm:$0xff] }
 0x23a   : > { %v2073_v51 = vpop.f32.mrf.mxu3  ;;  %v1606_v31 = vadd.f32 %v1520_v45, %v1328_v24  ;;  %3748 = vmatmul.msk.f32.gmra.mxu0 %vm506_vm2, %v2203_v33  ;;  %v5526_v33 = vld [vmem:[#allocation24_spill] sm:$0xff] }
 0x23b   : > { %v4815_v52 = vadd.f32 %v2073_v51, %v1883_v25 }
 0x23c   : > { %v1798_v6 = vpop.f32.mrf.mxu2 }
 0x23d   : > { %v1523_v58 = vpop.f32.mrf.mxu1  ;;  %v1884_v32 = vadd.f32 %v1798_v6, %v1606_v31  ;;  %v5527_v31 = vld [vmem:[#allocation23_spill] sm:$0xff] }
 0x23f   : > { %3722 = vmatmul.msk.f32.gmra.mxu3 %vm506_vm2, %v5518_v13  ;;  %v1245_v37 = vpop.f32.mrf.mxu0 }
 0x240   : > { %3655 = vmatmul.msk.f32.gmra.mxu1 %vm506_vm2, %v5516_v34  ;;  %v1329_v60 = vadd.f32 %v1245_v37, %v1000_v55  ;;  %v5529_v34 = vld [vmem:[#allocation22_spill] sm:$0xff] }
 0x241   : > { %3689 = vmatmul.msk.f32.gmra.mxu2 %vm506_vm2, %v5517_v49 }
 0x242   : > { %v2076_v59 = vpop.f32.mrf.mxu3  ;;  %v1607_v46 = vadd.f32 %v1523_v58, %v1329_v60  ;;  %3749 = vmatmul.msk.f32.gmra.mxu0 %vm506_vm2, %v2204_v38  ;;  %v2206_v58 = vld [vmem:[#allocation2 + $0xf0] sm:$0xff]  ;;  %v5530_v60 = vld [vmem:[#allocation28_spill] sm:$0xff]  ;;  %v5533_v38 = vld [vmem:[#allocation26_spill] sm:$0xff] }
 0x243   : > { %v4826_v8 = vadd.f32 %v2076_v59, %v1884_v32  ;;  %v5528_v32 = vld [vmem:[#allocation25_spill] sm:$0xff]  ;;  %v5531_v59 = vld [vmem:[#allocation27_spill] sm:$0xff] }
 0x244   : > { %v1801_v11 = vpop.f32.mrf.mxu2 }
 0x245   : > { %v1526_v26 = vpop.f32.mrf.mxu1  ;;  %v1885_v28 = vadd.f32 %v1801_v11, %v1607_v46  ;;  %v2207_v11 = vld [vmem:[#allocation2 + $0xf8] sm:$0xff] }
 0x247   : > { %3723 = vmatmul.msk.f32.gmra.mxu3 %vm506_vm2, %v5521_v48  ;;  %v1248_v42 = vpop.f32.mrf.mxu0  ;;  %v2208_v48 = vld [vmem:[#allocation2 + $0x108] sm:$0xff] }
 0x248   : > { %3656 = vmatmul.msk.f32.gmra.mxu1 %vm506_vm2, %v5519_v43  ;;  %v1330_v5 = vadd.f32 %v1248_v42, %v1003_v27  ;;  %v5534_v27 = vld [vmem:[#allocation32_spill] sm:$0xff]  ;;  %v5535_v42 = vld [vmem:[#allocation31_spill] sm:$0xff] }
 0x249   : > { %3690 = vmatmul.msk.f32.gmra.mxu2 %vm506_vm2, %v5520_v19 }
 0x24a   : > { %v2079_v9 = vpop.f32.mrf.mxu3  ;;  %v1608_v1 = vadd.f32 %v1526_v26, %v1330_v5  ;;  %3750 = vmatmul.msk.f32.gmra.mxu0 %vm506_vm2, %v2205_v53  ;;  %v5532_v26 = vld [vmem:[#allocation29_spill] sm:$0xff]  ;;  %v5537_v5 = vld [vmem:[#allocation30_spill] sm:$0xff] }
 0x24b   : > { %v4837_v63 = vadd.f32 %v2079_v9, %v1885_v28 }
 0x24c   : > { %v1804_v22 = vpop.f32.mrf.mxu2 }
 0x24d   : > { %v1529_v45 = vpop.f32.mrf.mxu1  ;;  %v1886_v25 = vadd.f32 %v1804_v22, %v1608_v1  ;;  %v5536_v22 = vld [vmem:[#allocation33_spill] sm:$0xff] }
 0x24e   : > { %v1609_v50 = vadd.f32 %v1529_v45, %v5525_v57  ;;  %v5541_v57 = vld [vmem:[#allocation34_spill] sm:$0xff] }
 0x24f   : > { %3724 = vmatmul.msk.f32.gmra.mxu3 %vm506_vm2, %v5524_v21  ;;  %v5540_v21 = vld [vmem:[#allocation37_spill] sm:$0xff] }
 0x250   : > { %3657 = vmatmul.msk.f32.gmra.mxu1 %vm506_vm2, %v5522_v18  ;;  %v5538_v18 = vld [vmem:[#allocation36_spill] sm:$0xff] }
 0x251   : > { %3691 = vmatmul.msk.f32.gmra.mxu2 %vm506_vm2, %v5523_v20  ;;  %v5539_v20 = vld [vmem:[#allocation35_spill] sm:$0xff] }
 0x252   : > { %v2082_v6 = vpop.f32.mrf.mxu3  ;;  %3751 = vmatmul.msk.f32.gmra.mxu0 %vm506_vm2, %v2206_v58  ;;  %v2210_v58 = vld [vmem:[#allocation2 + $0x120] sm:$0xff] }
 0x253   : > { %v4849_v24 = vadd.f32 %v2082_v6, %v1886_v25  ;;  %v2209_v25 = vld [vmem:[#allocation2 + $0x110] sm:$0xff] }
 0x254   : > { %v1807_v12 = vpop.f32.mrf.mxu2 }
 0x255   : > { %v4847_v29 = vadd.f32 %v1807_v12, %v1609_v50  ;;  %v1532_v51 = vpop.f32.mrf.mxu1 }
 0x256   : > { %v1610_v49 = vadd.f32 %v1532_v51, %v5529_v34 }
 0x257   : > { %3725 = vmatmul.msk.f32.gmra.mxu3 %vm506_vm2, %v5528_v32 }
 0x258   : > { %3658 = vmatmul.msk.f32.gmra.mxu1 %vm506_vm2, %v5526_v33  ;;  %v5542_v33 = vld [vmem:[#allocation39_spill] sm:$0xff] }
 0x259   : > { %3692 = vmatmul.msk.f32.gmra.mxu2 %vm506_vm2, %v5527_v31  ;;  %v5543_v31 = vld [vmem:[#allocation38_spill] sm:$0xff] }
 0x25a   : > { %3752 = vmatmul.msk.f32.gmra.mxu0 %vm506_vm2, %v2207_v11  ;;  %v4902_v11 = vld [vmem:[#allocation2 + $0x180] sm:$0xff] }
 0x25c   : > { %v1810_v13 = vpop.f32.mrf.mxu2 }
 0x25d   : > { %v4859_v55 = vadd.f32 %v1810_v13, %v1610_v49  ;;  %v1535_v37 = vpop.f32.mrf.mxu1 }
 0x25e   : > { %v1611_v46 = vadd.f32 %v1535_v37, %v5533_v38  ;;  %v2211_v37 = vld [vmem:[#allocation2 + $0x128] sm:$0xff] }
 0x25f   : > { %3726 = vmatmul.msk.f32.gmra.mxu3 %vm506_vm2, %v5532_v26 }
 0x260   : > { %3659 = vmatmul.msk.f32.gmra.mxu1 %vm506_vm2, %v5530_v60  ;;  %v4904_v60 = vld [vmem:[#allocation2 + $0x181] sm:$0xff] }
 0x261   : > { %3693 = vmatmul.msk.f32.gmra.mxu2 %vm506_vm2, %v5531_v59 }
 0x262   : > { %3753 = vmatmul.msk.f32.gmra.mxu0 %vm506_vm2, %v2208_v48  ;;  %v4920_v48 = vpop.f32.mrf.mxu0 }
 0x264   : > { %v1813_v28 = vpop.f32.mrf.mxu2 }
 0x265   : > { %v4869_v43 = vadd.f32 %v1813_v28, %v1611_v46  ;;  %v1538_v19 = vpop.f32.mrf.mxu1  ;;  %v2212_v46 = vld [vmem:[#allocation2 + $0x138] sm:$0xff]  ;;  %v4916_v28 = vld [vmem:[#allocation2 + $0x188] sm:$0xff] }
 0x266   : > { %v1612_v9 = vadd.f32 %v1538_v19, %v5537_v5  ;;  %v4918_v19 = vld [vmem:[#allocation2 + $0x189] sm:$0xff] }
 0x267   : > { %3727 = vmatmul.msk.f32.gmra.mxu3 %vm506_vm2, %v5536_v22 }
 0x268   : > { %3660 = vmatmul.msk.f32.gmra.mxu1 %vm506_vm2, %v5534_v27  ;;  %v5545_v27 = vld [vmem:[#allocation41_spill] sm:$0xff] }
 0x269   : > { %3694 = vmatmul.msk.f32.gmra.mxu2 %vm506_vm2, %v5535_v42 }
 0x26a   : > { %3754 = vmatmul.msk.f32.gmra.mxu0 %vm506_vm2, %v2209_v25  ;;  %v4934_v25 = vld [vmem:[#allocation2 + $0x18a] sm:$0xff] }
 0x26c   : > { %v1816_v45 = vpop.f32.mrf.mxu2 }
 0x26d   : > { %v4879_v53 = vadd.f32 %v1816_v45, %v1612_v9  ;;  %v1541_v1 = vpop.f32.mrf.mxu1  ;;  %v2213_v45 = vld [vmem:[#allocation2 + $0x140] sm:$0xff] }
 0x26e   : > { %v1613_v50 = vadd.f32 %v1541_v1, %v5541_v57  ;;  %v2468_v1 = vld [vmem:[#allocation2 + $0x31] sm:$0xff] }
 0x26f   : > { %3728 = vmatmul.msk.f32.gmra.mxu3 %vm506_vm2, %v5540_v21 }
 0x270   : > { %3661 = vmatmul.msk.f32.gmra.mxu1 %vm506_vm2, %v5538_v18  ;;  %v4941_v18 = vpop.f32.mrf.mxu0 }
 0x271   : > { %3695 = vmatmul.msk.f32.gmra.mxu2 %vm506_vm2, %v5539_v20 }
 0x272   : > { %3755 = vmatmul.msk.f32.gmra.mxu0 %vm506_vm2, %v2210_v58 }
 0x274   : > { %v1819_v12 = vpop.f32.mrf.mxu2 }
 0x275   : > { %v4889_v6 = vadd.f32 %v1819_v12, %v1613_v50  ;;  %v1544_v51 = vpop.f32.mrf.mxu1  ;;  %v2214_v12 = vld [vmem:[#allocation2 + $0x150] sm:$0xff] }
 0x276   : > { %v1614_v32 = vadd.f32 %v1544_v51, %v5543_v31  ;;  %v2469_v51 = vld [vmem:[#allocation2 + $0x39] sm:$0xff] }
 0x277   : > { %3729 = vmatmul.msk.f32.gmra.mxu3 %vm506_vm2, %v4535_v56 }
 0x278   : > { %3662 = vmatmul.msk.f32.gmra.mxu1 %vm506_vm2, %v4533_v41  ;;  %v5544_v41 = vld [vmem:[#allocation40_spill] sm:$0xff]  ;;  %v4951_v31 = vpop.f32.mrf.mxu0 }
 0x279   : > { %3696 = vmatmul.msk.f32.gmra.mxu2 %vm506_vm2, %v5542_v33 }
 0x27a   : > { %3756 = vmatmul.msk.f32.gmra.mxu0 %vm506_vm2, %v2211_v37  ;;  %v5547_v37 = vld [vmem:[#allocation43_spill] sm:$0xff] }
 0x27c   : > { %v1822_v34 = vpop.f32.mrf.mxu2 }
 0x27d   : > { %v4899_v49 = vadd.f32 %v1822_v34, %v1614_v32  ;;  %v1547_v13 = vpop.f32.mrf.mxu1  ;;  %v2215_v34 = vld [vmem:[#allocation2 + $0x158] sm:$0xff] }
 0x27e   : > { %v1615_v56 = vadd.f32 %v1547_v13, %v5544_v41  ;;  %v2470_v13 = vld [vmem:[#allocation2 + $0x49] sm:$0xff] }
 0x27f   : > { %3730 = vmatmul.msk.f32.gmra.mxu3 %vm506_vm2, %v4552_v2  ;;  %v4926_v2 = vld [vmem:[#allocation2 + $0x182] sm:$0xff] }
 0x280   : > { %3663 = vmatmul.msk.f32.gmra.mxu1 %vm506_vm2, %v4902_v11 }
 0x281   : > { %3697 = vmatmul.msk.f32.gmra.mxu2 %vm506_vm2, %v4904_v60 }
 0x282   : > { %3757 = vmatmul.msk.f32.gmra.mxu0 %vm506_vm2, %v2212_v46  ;;  %v4962_v46 = vpop.f32.mrf.mxu0 }
 0x284   : > { %v1825_v59 = vpop.f32.mrf.mxu2 }
 0x285   : > { %v4913_v26 = vadd.f32 %v1825_v59, %v1615_v56  ;;  %v1550_v38 = vpop.f32.mrf.mxu1 }
 0x286   : > { %v1616_v42 = vadd.f32 %v1550_v38, %v5545_v27  ;;  %v2216_v38 = vld [vmem:[#allocation2 + $0x168] sm:$0xff]  ;;  %v2471_v27 = vld [vmem:[#allocation2 + $0x51] sm:$0xff] }
 0x287   : > { %3731 = vmatmul.msk.f32.gmra.mxu3 %vm506_vm2, %v4926_v2 }
 0x288   : > { %3664 = vmatmul.msk.f32.gmra.mxu1 %vm506_vm2, %v4916_v28 }
 0x289   : > { %3698 = vmatmul.msk.f32.gmra.mxu2 %vm506_vm2, %v4918_v19 }
 0x28a   : > { %3758 = vmatmul.msk.f32.gmra.mxu0 %vm506_vm2, %v2213_v45 }
 0x28c   : > { %v1828_v22 = vpop.f32.mrf.mxu2 }
 0x28d   : > { %v4931_v5 = vadd.f32 %v1828_v22, %v1616_v42  ;;  %v1553_v9 = vpop.f32.mrf.mxu1  ;;  %v5548_v42 = vld [vmem:[#allocation44_spill] sm:$0xff] }
 0x28e   : > { %v1617_v20 = vadd.f32 %v1553_v9, %v4572_v35 }
 0x28f   : > { %3732 = vmatmul.msk.f32.gmra.mxu3 %vm506_vm2, %v4934_v25 }
 0x290   : > { %3769 = vmatmul.msk.f32.vlgmr.msra.gmra.mxu1 %vm506_vm2, %v2468_v1  ;;  %v2217_v1 = vld [vmem:[#allocation2 + $0x170] sm:$0xff] }
 0x291   : > { %3803 = vmatmul.msk.f32.vlgmr.msra.gmra.mxu2 %vm506_vm2, %v4589_v39  ;;  %v5546_v39 = vld [vmem:[#allocation42_spill] sm:$0xff] }
 0x292   : > { %3759 = vmatmul.msk.f32.gmra.mxu0 %vm506_vm2, %v2214_v12  ;;  %v4974_v12 = vpop.f32.mrf.mxu0 }
 0x294   : > { %v1831_v21 = vpop.f32.mrf.mxu2 }
 0x295   : > { %v4944_v57 = vadd.f32 %v1831_v21, %v1617_v20  ;;  %v1556_v50 = vpop.f32.mrf.mxu1  ;;  %v4972_v20 = vpop.f32.mrf.mxu3  ;;  %v2472_v21 = vld [vmem:[#allocation2 + $0x61] sm:$0xff] }
 0x296   : > { %v1618_v58 = vadd.f32 %v1556_v50, %v5546_v39  ;;  %v2750_v50 = vld [vmem:[#allocation2 + $0x62] sm:$0xff] }
 0x298   : > { %3770 = vmatmul.msk.f32.gmra.mxu1 %vm506_vm2, %v2469_v51 }
 0x299   : > { %3804 = vmatmul.msk.f32.gmra.mxu2 %vm506_vm2, %v4602_v54 }
 0x29a   : > { %3760 = vmatmul.msk.f32.gmra.mxu0 %vm506_vm2, %v2215_v34  ;;  %v2751_v34 = vld [vmem:[#allocation2 + $0x6a] sm:$0xff] }
 0x29c   : > { %v1834_v33 = vpop.f32.mrf.mxu2 }
 0x29d   : > { %v4953_v32 = vadd.f32 %v1834_v33, %v1618_v58  ;;  %v1559_v35 = vpop.f32.mrf.mxu1 }
 0x29e   : > { %v1619_v41 = vadd.f32 %v1559_v35, %v5547_v37  ;;  %v2473_v35 = vld [vmem:[#allocation2 + $0x69] sm:$0xff]  ;;  %v4987_v37 = vpop.f32.mrf.mxu0 }
 0x2a0   : > { %3771 = vmatmul.msk.f32.gmra.mxu1 %vm506_vm2, %v2470_v13  ;;  %v4985_v13 = vpop.f32.mrf.mxu3 }
 0x2a1   : > { %3805 = vmatmul.msk.f32.gmra.mxu2 %vm506_vm2, %v4620_v10 }
 0x2a2   : > { %3761 = vmatmul.msk.f32.gmra.mxu0 %vm506_vm2, %v2216_v38 }
 0x2a4   : > { %v1837_v54 = vpop.f32.mrf.mxu2 }
 0x2a5   : > { %v4960_v56 = vadd.f32 %v1837_v54, %v1619_v41  ;;  %v1562_v59 = vpop.f32.mrf.mxu1 }
 0x2a6   : > { %v1620_v22 = vadd.f32 %v1562_v59, %v5548_v42 }
 0x2a8   : > { %3772 = vmatmul.msk.f32.gmra.mxu1 %vm506_vm2, %v2471_v27  ;;  %v2752_v27 = vld [vmem:[#allocation2 + $0x7a] sm:$0xff] }
 0x2a9   : > { %3806 = vmatmul.msk.f32.gmra.mxu2 %vm506_vm2, %v4634_v40  ;;  %v5549_v40 = vld [vmem:[#allocation45_spill] sm:$0xff] }
 0x2aa   : > { %3762 = vmatmul.msk.f32.gmra.mxu0 %vm506_vm2, %v2217_v1 }
 0x2ac   : > { %v1840_v10 = vpop.f32.mrf.mxu2 }
 0x2ad   : > { %v4969_v9 = vadd.f32 %v1840_v10, %v1620_v22  ;;  %v1565_v45 = vpop.f32.mrf.mxu1  ;;  %v4997_v22 = vpop.f32.mrf.mxu3 }
 0x2ae   : > { %v1621_v51 = vadd.f32 %v1565_v45, %v5549_v40  ;;  %v2220_v45 = vld [vmem:[#allocation2 + $0x198] sm:$0xff] }
 0x2b0   : > { %3773 = vmatmul.msk.f32.gmra.mxu1 %vm506_vm2, %v2472_v21 }
 0x2b1   : > { %3807 = vmatmul.msk.f32.gmra.mxu2 %vm506_vm2, %v2750_v50  ;;  %v2753_v50 = vld [vmem:[#allocation2 + $0x82] sm:$0xff] }
 0x2b2   : > { %3763 = vmatmul.msk.f32.gmra.mxu0 %vm506_vm2, %v4902_v11  ;;  %v2474_v11 = vld [vmem:[#allocation2 + $0x79] sm:$0xff] }
 0x2b4   : > { %v1843_v39 = vpop.f32.mrf.mxu2 }
 0x2b5   : > { %v4979_v58 = vadd.f32 %v1843_v39, %v1621_v51  ;;  %v1568_v33 = vpop.f32.mrf.mxu1  ;;  %v2221_v51 = vld [vmem:[#allocation2 + $0x1a0] sm:$0xff] }
 0x2b6   : > { %v1622_v41 = vadd.f32 %v1568_v33, %v4640_v15  ;;  %v4999_v15 = vpop.f32.mrf.mxu0  ;;  %v5009_v33 = vpop.f32.mrf.mxu3 }
 0x2b8   : > { %3774 = vmatmul.msk.f32.gmra.mxu1 %vm506_vm2, %v2473_v35 }
 0x2b9   : > { %3808 = vmatmul.msk.f32.gmra.mxu2 %vm506_vm2, %v2751_v34 }
 0x2ba   : > { %3764 = vmatmul.msk.f32.gmra.mxu0 %vm506_vm2, %v4916_v28  ;;  %v2475_v28 = vld [vmem:[#allocation2 + $0x81] sm:$0xff] }
 0x2bc   : > { %v1846_v54 = vpop.f32.mrf.mxu2 }
 0x2bd   : > { %v4990_v59 = vadd.f32 %v1846_v54, %v1622_v41  ;;  %v1571_v38 = vpop.f32.mrf.mxu1  ;;  %v2476_v41 = vld [vmem:[#allocation2 + $0x91] sm:$0xff] }
 0x2be   : > { %v1623_v42 = vadd.f32 %v1571_v38, %v4652_v62  ;;  %v5011_v34 = vpop.f32.mrf.mxu0  ;;  %v2754_v54 = vld [vmem:[#allocation2 + $0x92] sm:$0xff] }
 0x2c0   : > { %3775 = vmatmul.msk.f32.gmra.mxu1 %vm506_vm2, %v2474_v11 }
 0x2c1   : > { %3809 = vmatmul.msk.f32.gmra.mxu2 %vm506_vm2, %v2752_v27 }
 0x2c2   : > { %3765 = vmatmul.msk.f32.gmra.mxu0 %vm506_vm2, %v2220_v45  ;;  %v2755_v45 = vld [vmem:[#allocation2 + $0x9a] sm:$0xff] }
 0x2c4   : > { %v1849_v10 = vpop.f32.mrf.mxu2 }
 0x2c5   : > { %v5001_v1 = vadd.f32 %v1849_v10, %v1623_v42  ;;  %v1574_v21 = vpop.f32.mrf.mxu1  ;;  %v5019_v42 = vpop.f32.mrf.mxu3  ;;  %v2477_v10 = vld [vmem:[#allocation2 + $0x99] sm:$0xff] }
 0x2c6   : > { %v1624_v40 = vadd.f32 %v1574_v21, %v4664_v3 }
 0x2c8   : > { %3776 = vmatmul.msk.f32.gmra.mxu1 %vm506_vm2, %v2475_v28 }
 0x2c9   : > { %3810 = vmatmul.msk.f32.gmra.mxu2 %vm506_vm2, %v2753_v50 }
 0x2ca   : > { %3766 = vmatmul.msk.f32.gmra.mxu0 %vm506_vm2, %v2221_v51 }
 0x2cc   : > { %v1852_v62 = vpop.f32.mrf.mxu2 }
 0x2cd   : > { %v5007_v39 = vadd.f32 %v1852_v62, %v1624_v40  ;;  %v1577_v35 = vpop.f32.mrf.mxu1  ;;  %v2478_v62 = vld [vmem:[#allocation2 + $0xa9] sm:$0xff]  ;;  %v5028_v51 = vpop.f32.mrf.mxu3 }
 0x2ce   : > { %v1625_v38 = vadd.f32 %v1577_v35, %v4676_v17  ;;  %v2756_v17 = vld [vmem:[#allocation2 + $0xaa] sm:$0xff] }
 0x2d0   : > { %3777 = vmatmul.msk.f32.gmra.mxu1 %vm506_vm2, %v2476_v41 }
 0x2d1   : > { %3811 = vmatmul.msk.f32.gmra.mxu2 %vm506_vm2, %v2754_v54 }
 0x2d4   : > { %v1855_v3 = vpop.f32.mrf.mxu2 }
 0x2d5   : > { %v5017_v11 = vadd.f32 %v1855_v3, %v1625_v38  ;;  %v1580_v27 = vpop.f32.mrf.mxu1  ;;  %v2479_v3 = vld [vmem:[#allocation2 + $0xb1] sm:$0xff] }
 0x2d6   : > { %v1626_v21 = vadd.f32 %v1580_v27, %v4688_v0  ;;  %v2757_v0 = vld [vmem:[#allocation2 + $0xb2] sm:$0xff] }
 0x2d8   : > { %3778 = vmatmul.msk.f32.gmra.mxu1 %vm506_vm2, %v2477_v10  ;;  %v5036_v10 = vpop.f32.mrf.mxu3 }
 0x2d9   : > { %3812 = vmatmul.msk.f32.gmra.mxu2 %vm506_vm2, %v2755_v45 }
 0x2dc   : > { %v1858_v28 = vpop.f32.mrf.mxu2 }
 0x2dd   : > { %v5024_v50 = vadd.f32 %v1858_v28, %v1626_v21  ;;  %v1583_v40 = vpop.f32.mrf.mxu1 }
 0x2de   : > { %v1627_v35 = vadd.f32 %v1583_v40, %v4700_v4  ;;  %v2758_v4 = vld [vmem:[#allocation2 + $0xc2] sm:$0xff] }
 0x2e0   : > { %3779 = vmatmul.msk.f32.gmra.mxu1 %vm506_vm2, %v2478_v62  ;;  %v2480_v62 = vld [vmem:[#allocation2 + $0xc1] sm:$0xff] }
 0x2e1   : > { %3813 = vmatmul.msk.f32.gmra.mxu2 %vm506_vm2, %v2756_v17 }
 0x2e4   : > { %v1861_v41 = vpop.f32.mrf.mxu2 }
 0x2e5   : > { %v5031_v54 = vadd.f32 %v1861_v41, %v1627_v35  ;;  %v1586_v38 = vpop.f32.mrf.mxu1  ;;  %v5045_v41 = vpop.f32.mrf.mxu3 }
 0x2e6   : > { %v1628_v27 = vadd.f32 %v1586_v38, %v4712_v7  ;;  %v2481_v38 = vld [vmem:[#allocation2 + $0xc9] sm:$0xff] }
 0x2e8   : > { %3780 = vmatmul.msk.f32.gmra.mxu1 %vm506_vm2, %v2479_v3  ;;  %v2759_v3 = vld [vmem:[#allocation2 + $0xca] sm:$0xff] }
 0x2e9   : > { %3814 = vmatmul.msk.f32.gmra.mxu2 %vm506_vm2, %v2757_v0 }
 0x2ec   : > { %v1864_v45 = vpop.f32.mrf.mxu2 }
 0x2ed   : > { %v5038_v21 = vadd.f32 %v1864_v45, %v1628_v27  ;;  %v1589_v28 = vpop.f32.mrf.mxu1 }
 0x2ee   : > { %v1629_v40 = vadd.f32 %v1589_v28, %v4727_v14  ;;  %v2482_v14 = vld [vmem:[#allocation2 + $0xd9] sm:$0xff] }
 0x2ef   : > { %5550 = vst [vmem:[#allocation4_spill] sm:$0xff] %v5038_v21  ;;  %v2760_v28 = vld [vmem:[#allocation2 + $0xda] sm:$0xff]  ;;  %v2764_v21 = vld [vmem:[#allocation2 + $0x10a] sm:$0xff] }
 0x2f0   : > { %3781 = vmatmul.msk.f32.gmra.mxu1 %vm506_vm2, %v2480_v62 }
 0x2f1   : > { %3815 = vmatmul.msk.f32.gmra.mxu2 %vm506_vm2, %v2758_v4  ;;  %v5052_v4 = vpop.f32.mrf.mxu3 }
 0x2f4   : > { %v1867_v17 = vpop.f32.mrf.mxu2 }
 0x2f5   : > { %v5043_v35 = vadd.f32 %v1867_v17, %v1629_v40  ;;  %v1592_v7 = vpop.f32.mrf.mxu1 }
 0x2f6   : > { %v1630_v0 = vadd.f32 %v1592_v7, %v4738_v23  ;;  %v2761_v23 = vld [vmem:[#allocation2 + $0xe2] sm:$0xff] }
 0x2f7   : > { %5551 = vst [vmem:[#allocation3_spill] sm:$0xff] %v5043_v35  ;;  %v2483_v35 = vld [vmem:[#allocation2 + $0xe1] sm:$0xff] }
 0x2f8   : > { %3782 = vmatmul.msk.f32.gmra.mxu1 %vm506_vm2, %v2481_v38 }
 0x2f9   : > { %3816 = vmatmul.msk.f32.gmra.mxu2 %vm506_vm2, %v2759_v3  ;;  %v5061_v7 = vpop.f32.mrf.mxu3 }
 0x2fc   : > { %v1870_v27 = vpop.f32.mrf.mxu2 }
 0x2fd   : > { %v5050_v45 = vadd.f32 %v1870_v27, %v1630_v0  ;;  %v1595_v62 = vpop.f32.mrf.mxu1 }
 0x2fe   : > { %v1631_v40 = vadd.f32 %v1595_v62, %v4749_v30  ;;  %v2762_v30 = vld [vmem:[#allocation2 + $0xf2] sm:$0xff]  ;;  %v2436_v62 = vadd.f32 %v4920_v48, %v4771_v16  ;;  %v2437_v16 = vadd.f32 %v4941_v18, %v4782_v47  ;;  %v2438_v47 = vadd.f32 %v4951_v31, %v4793_v61 }
 0x2ff   : > { %5552 = vst [vmem:[#allocation5_spill] sm:$0xff] %v5050_v45  ;;  %v2484_v45 = vld [vmem:[#allocation2 + $0xf1] sm:$0xff]  ;;  %v2439_v61 = vadd.f32 %v4962_v46, %v4804_v44  ;;  %v2440_v44 = vadd.f32 %v4974_v12, %v4815_v52  ;;  %v2441_v52 = vadd.f32 %v4987_v37, %v4826_v8  ;;  %v2442_v8 = vadd.f32 %v4999_v15, %v4837_v63 }
 0x300   : > { %3783 = vmatmul.msk.f32.gmra.mxu1 %vm506_vm2, %v2482_v14  ;;  %v2443_v63 = vadd.f32 %v5011_v34, %v4849_v24  ;;  %v2770_v24 = vld [vmem:[#allocation2 + $0x152] sm:$0xff] }
 0x301   : > { %3817 = vmatmul.msk.f32.gmra.mxu2 %vm506_vm2, %v2760_v28 }
 0x304   : > { %v1873_v17 = vpop.f32.mrf.mxu2 }
 0x305   : > { %v5057_v38 = vadd.f32 %v1873_v17, %v1631_v40  ;;  %v1598_v3 = vpop.f32.mrf.mxu1  ;;  %v5073_v40 = vld [vmem:[%s5431_s4 + $0x1] ss:$0 sm:$0xff] }
 0x306   : > { %v1632_v0 = vadd.f32 %v1598_v3, %v4760_v36  ;;  %v5075_v36 = vpop.f32.mrf.mxu3 }
 0x307   : > { %5553 = vst [vmem:[#allocation7_spill] sm:$0xff] %v5057_v38  ;;  %v2486_v38 = vld [vmem:[#allocation2 + $0x109] sm:$0xff] }
 0x308   : > { %3784 = vmatmul.msk.f32.gmra.mxu1 %vm506_vm2, %v2483_v35 }
 0x309   : > { %3818 = vmatmul.msk.f32.gmra.mxu2 %vm506_vm2, %v2761_v23 }
 0x30c   : > { %v1876_v27 = vpop.f32.mrf.mxu2 }
 0x30d   : > { %v5064_v14 = vadd.f32 %v1876_v27, %v1632_v0  ;;  %v2618_v28 = vpop.f32.mrf.mxu1  ;;  %v2485_v27 = vld [vmem:[#allocation2 + $0xf9] sm:$0xff] }
 0x30e   : > { %v2714_v35 = vadd.f32 %v2618_v28, %v2436_v62  ;;  %v5083_v62 = vpop.f32.mrf.mxu3 }
 0x30f   : > { %5554 = vst [vmem:[#allocation6_spill] sm:$0xff] %v5064_v14  ;;  %v2763_v14 = vld [vmem:[#allocation2 + $0xfa] sm:$0xff] }
 0x310   : > { %3785 = vmatmul.msk.f32.gmra.mxu1 %vm506_vm2, %v2484_v45 }
 0x311   : > { %3819 = vmatmul.msk.f32.gmra.mxu2 %vm506_vm2, %v2762_v30 }
 0x314   : > { %v2896_v17 = vpop.f32.mrf.mxu2 }
 0x315   : > { %v2992_v3 = vadd.f32 %v2896_v17, %v2714_v35  ;;  %v2621_v23 = vpop.f32.mrf.mxu1  ;;  %v5085_v17 = vpop.f32.mrf.mxu0 }
 0x316   : > { %v2715_v45 = vadd.f32 %v2621_v23, %v2437_v16 }
 0x317   : > { %v3026_v0 = vadd.f32 %v5073_v40, %v2992_v3 }
 0x318   : > { %3786 = vmatmul.msk.f32.gmra.mxu1 %vm506_vm2, %v2485_v27 }
 0x319   : > { %v3058_v48 = vmax.f32 %v3026_v0, 0.0  ;;  %3820 = vmatmul.msk.f32.gmra.mxu2 %vm506_vm2, %v2763_v14 }
 0x31b   : > { %3836 = vmatmul.msk.f32.vlgmr.msra.gmra.mxu3 %vm506_vm2, %v3058_v48  ;;  %v5094_v48 = vpop.f32.mrf.mxu3 }
 0x31c   : > { %v2899_v28 = vpop.f32.mrf.mxu2 }
 0x31d   : > { %v2993_v30 = vadd.f32 %v2899_v28, %v2715_v45  ;;  %v2624_v35 = vpop.f32.mrf.mxu1  ;;  %v2487_v45 = vld [vmem:[#allocation2 + $0x111] sm:$0xff]  ;;  %v5098_v31 = vpop.f32.mrf.mxu0 }
 0x31e   : > { %v2716_v14 = vadd.f32 %v2624_v35, %v2438_v47  ;;  %v2765_v28 = vld [vmem:[#allocation2 + $0x112] sm:$0xff] }
 0x31f   : > { %v3027_v3 = vadd.f32 %v5073_v40, %v2993_v30 }
 0x320   : > { %3787 = vmatmul.msk.f32.gmra.mxu1 %vm506_vm2, %v2486_v38 }
 0x321   : > { %v3059_v18 = vmax.f32 %v3027_v3, 0.0  ;;  %3821 = vmatmul.msk.f32.gmra.mxu2 %vm506_vm2, %v2764_v21 }
 0x323   : > { %3837 = vmatmul.msk.f32.gmra.mxu3 %vm506_vm2, %v3059_v18  ;;  %v2488_v18 = vld [vmem:[#allocation2 + $0x121] sm:$0xff] }
 0x324   : > { %v2902_v23 = vpop.f32.mrf.mxu2 }
 0x325   : > { %v2994_v0 = vadd.f32 %v2902_v23, %v2716_v14  ;;  %v2627_v27 = vpop.f32.mrf.mxu1  ;;  %v2766_v14 = vld [vmem:[#allocation2 + $0x122] sm:$0xff]  ;;  %v5108_v23 = vpop.f32.mrf.mxu3 }
 0x326   : > { %v2717_v21 = vadd.f32 %v2627_v27, %v2439_v61 }
 0x327   : > { %v3028_v16 = vadd.f32 %v5073_v40, %v2994_v0  ;;  %v5110_v0 = vpop.f32.mrf.mxu0 }
 0x328   : > { %3788 = vmatmul.msk.f32.gmra.mxu1 %vm506_vm2, %v2487_v45 }
 0x329   : > { %v3060_v38 = vmax.f32 %v3028_v16, 0.0  ;;  %3822 = vmatmul.msk.f32.gmra.mxu2 %vm506_vm2, %v2765_v28 }
 0x32b   : > { %3838 = vmatmul.msk.f32.gmra.mxu3 %vm506_vm2, %v3060_v38  ;;  %v2489_v38 = vld [vmem:[#allocation2 + $0x129] sm:$0xff] }
 0x32c   : > { %v2905_v30 = vpop.f32.mrf.mxu2 }
 0x32d   : > { %v2995_v35 = vadd.f32 %v2905_v30, %v2717_v21  ;;  %v2630_v3 = vpop.f32.mrf.mxu1  ;;  %v2767_v21 = vld [vmem:[#allocation2 + $0x12a] sm:$0xff] }
 0x32e   : > { %v2718_v27 = vadd.f32 %v2630_v3, %v2440_v44 }
 0x32f   : > { %v3029_v47 = vadd.f32 %v5073_v40, %v2995_v35  ;;  %v5119_v35 = vpop.f32.mrf.mxu3 }
 0x330   : > { %3789 = vmatmul.msk.f32.gmra.mxu1 %vm506_vm2, %v2488_v18 }
 0x331   : > { %v3061_v46 = vmax.f32 %v3029_v47, 0.0  ;;  %3823 = vmatmul.msk.f32.gmra.mxu2 %vm506_vm2, %v2766_v14  ;;  %v5121_v47 = vpop.f32.mrf.mxu0 }
 0x333   : > { %3839 = vmatmul.msk.f32.gmra.mxu3 %vm506_vm2, %v3061_v46  ;;  %v2490_v46 = vld [vmem:[#allocation2 + $0x139] sm:$0xff] }
 0x334   : > { %v2908_v16 = vpop.f32.mrf.mxu2 }
 0x335   : > { %v2996_v45 = vadd.f32 %v2908_v16, %v2718_v27  ;;  %v2633_v28 = vpop.f32.mrf.mxu1  ;;  %v2768_v27 = vld [vmem:[#allocation2 + $0x13a] sm:$0xff] }
 0x336   : > { %v2719_v30 = vadd.f32 %v2633_v28, %v2441_v52 }
 0x337   : > { %v3030_v61 = vadd.f32 %v5073_v40, %v2996_v45 }
 0x338   : > { %3790 = vmatmul.msk.f32.gmra.mxu1 %vm506_vm2, %v2489_v38 }
 0x339   : > { %v3062_v12 = vmax.f32 %v3030_v61, 0.0  ;;  %3824 = vmatmul.msk.f32.gmra.mxu2 %vm506_vm2, %v2767_v21  ;;  %v5129_v61 = vpop.f32.mrf.mxu3  ;;  %v5131_v21 = vpop.f32.mrf.mxu0 }
 0x33b   : > { %3840 = vmatmul.msk.f32.gmra.mxu3 %vm506_vm2, %v3062_v12  ;;  %v2491_v12 = vld [vmem:[#allocation2 + $0x141] sm:$0xff] }
 0x33c   : > { %v2911_v3 = vpop.f32.mrf.mxu2 }
 0x33d   : > { %v2997_v18 = vadd.f32 %v2911_v3, %v2719_v30  ;;  %v2636_v14 = vpop.f32.mrf.mxu1  ;;  %v2769_v30 = vld [vmem:[#allocation2 + $0x142] sm:$0xff] }
 0x33e   : > { %v2720_v16 = vadd.f32 %v2636_v14, %v2442_v8 }
 0x33f   : > { %v3031_v44 = vadd.f32 %v5073_v40, %v2997_v18 }
 0x340   : > { %3791 = vmatmul.msk.f32.gmra.mxu1 %vm506_vm2, %v2490_v46  ;;  %v2165_v46 = vadd.f32 %v4972_v20, %v4847_v29 }
 0x341   : > { %v3063_v37 = vmax.f32 %v3031_v44, 0.0  ;;  %3825 = vmatmul.msk.f32.gmra.mxu2 %vm506_vm2, %v2768_v27  ;;  %v5142_v8 = vpop.f32.mrf.mxu3 }
 0x342   : > { %v2444_v34 = vadd.f32 %v5085_v17, %v2165_v46  ;;  %v2771_v17 = vld [vmem:[#allocation2 + $0x15a] sm:$0xff]  ;;  %v2167_v46 = vadd.f32 %v4997_v22, %v4869_v43  ;;  %v2168_v22 = vadd.f32 %v5009_v33, %v4879_v53  ;;  %v2169_v53 = vadd.f32 %v5019_v42, %v4889_v6 }
 0x343   : > { %3841 = vmatmul.msk.f32.gmra.mxu3 %vm506_vm2, %v3063_v37  ;;  %v2492_v37 = vld [vmem:[#allocation2 + $0x151] sm:$0xff]  ;;  %v2170_v6 = vadd.f32 %v5028_v51, %v4899_v49  ;;  %v2498_v51 = vld [vmem:[#allocation2 + $0x199] sm:$0xff] }
 0x344   : > { %v2914_v45 = vpop.f32.mrf.mxu2 }
 0x345   : > { %v2998_v28 = vadd.f32 %v2914_v45, %v2720_v16  ;;  %v2639_v38 = vpop.f32.mrf.mxu1  ;;  %v5145_v16 = vpop.f32.mrf.mxu0 }
 0x346   : > { %v2721_v3 = vadd.f32 %v2639_v38, %v2443_v63 }
 0x347   : > { %v3032_v52 = vadd.f32 %v5073_v40, %v2998_v28 }
 0x348   : > { %3792 = vmatmul.msk.f32.gmra.mxu1 %vm506_vm2, %v2491_v12 }
 0x349   : > { %v3064_v15 = vmax.f32 %v3032_v52, 0.0  ;;  %3826 = vmatmul.msk.f32.gmra.mxu2 %vm506_vm2, %v2769_v30  ;;  %v2166_v52 = vadd.f32 %v4985_v13, %v4859_v55  ;;  %v2493_v30 = vld [vmem:[#allocation2 + $0x159] sm:$0xff] }
 0x34b   : > { %3842 = vmatmul.msk.f32.gmra.mxu3 %vm506_vm2, %v3064_v15  ;;  %v2445_v63 = vadd.f32 %v5098_v31, %v2166_v52 }
 0x34c   : > { %v2917_v18 = vpop.f32.mrf.mxu2 }
 0x34d   : > { %v2999_v14 = vadd.f32 %v2917_v18, %v2721_v3  ;;  %v2642_v44 = vpop.f32.mrf.mxu1  ;;  %v5156_v3 = vpop.f32.mrf.mxu3 }
 0x34e   : > { %v2722_v28 = vadd.f32 %v2642_v44, %v2444_v34  ;;  %v5158_v18 = vpop.f32.mrf.mxu0 }
 0x34f   : > { %v3033_v27 = vadd.f32 %v5073_v40, %v2999_v14 }
 0x350   : > { %3793 = vmatmul.msk.f32.gmra.mxu1 %vm506_vm2, %v2492_v37  ;;  %v2772_v37 = vld [vmem:[#allocation2 + $0x16a] sm:$0xff] }
 0x351   : > { %v3065_v45 = vmax.f32 %v3033_v27, 0.0  ;;  %3827 = vmatmul.msk.f32.gmra.mxu2 %vm506_vm2, %v2770_v24  ;;  %v2494_v27 = vld [vmem:[#allocation2 + $0x169] sm:$0xff]  ;;  %v2446_v24 = vadd.f32 %v5110_v0, %v2167_v46  ;;  %v2495_v0 = vld [vmem:[#allocation2 + $0x171] sm:$0xff] }
 0x353   : > { %3843 = vmatmul.msk.f32.gmra.mxu3 %vm506_vm2, %v3065_v45 }
 0x354   : > { %v2920_v38 = vpop.f32.mrf.mxu2 }
 0x355   : > { %v3000_v29 = vadd.f32 %v2920_v38, %v2722_v28  ;;  %v2645_v20 = vpop.f32.mrf.mxu1  ;;  %v5168_v28 = vpop.f32.mrf.mxu3 }
 0x356   : > { %v2723_v14 = vadd.f32 %v2645_v20, %v2445_v63 }
 0x357   : > { %v3034_v12 = vadd.f32 %v5073_v40, %v3000_v29  ;;  %v2385_v29 = vpop.f32.mrf.mxu0 }
 0x358   : > { %3794 = vmatmul.msk.f32.gmra.mxu1 %vm506_vm2, %v2493_v30  ;;  %v2447_v30 = vadd.f32 %v5121_v47, %v2168_v22  ;;  %v2448_v47 = vadd.f32 %v5131_v21, %v2169_v53  ;;  %v2449_v21 = vadd.f32 %v5145_v16, %v2170_v6  ;;  %v2171_v22 = vadd.f32 %v5036_v10, %v4913_v26  ;;  %v2777_v26 = vld [vmem:[#allocation2 + $0x1a2] sm:$0xff] }
 0x359   : > { %v3066_v15 = vmax.f32 %v3034_v12, 0.0  ;;  %3828 = vmatmul.msk.f32.gmra.mxu2 %vm506_vm2, %v2771_v17  ;;  %v2773_v12 = vld [vmem:[#allocation2 + $0x172] sm:$0xff]  ;;  %v2172_v10 = vadd.f32 %v5045_v41, %v4931_v5  ;;  %v2173_v5 = vadd.f32 %v5052_v4, %v4944_v57 }
 0x35b   : > { %3844 = vmatmul.msk.f32.gmra.mxu3 %vm506_vm2, %v3066_v15 }
 0x35c   : > { %v2923_v44 = vpop.f32.mrf.mxu2 }
 0x35d   : > { %v3001_v55 = vadd.f32 %v2923_v44, %v2723_v14  ;;  %v2648_v13 = vpop.f32.mrf.mxu1  ;;  %v5177_v44 = vpop.f32.mrf.mxu3 }
 0x35e   : > { %v2724_v45 = vadd.f32 %v2648_v13, %v2446_v24 }
 0x35f   : > { %v3035_v31 = vadd.f32 %v5073_v40, %v3001_v55  ;;  %v2388_v33 = vpop.f32.mrf.mxu0 }
 0x360   : > { %3795 = vmatmul.msk.f32.gmra.mxu1 %vm506_vm2, %v2494_v27 }
 0x361   : > { %v3067_v34 = vmax.f32 %v3035_v31, 0.0  ;;  %3829 = vmatmul.msk.f32.gmra.mxu2 %vm506_vm2, %v2772_v37 }
 0x363   : > { %3845 = vmatmul.msk.f32.gmra.mxu3 %vm506_vm2, %v3067_v34 }
 0x364   : > { %v2926_v38 = vpop.f32.mrf.mxu2 }
 0x365   : > { %v3002_v20 = vadd.f32 %v2926_v38, %v2724_v45  ;;  %v2651_v43 = vpop.f32.mrf.mxu1  ;;  %v5191_v34 = vpop.f32.mrf.mxu3 }
 0x366   : > { %v2725_v63 = vadd.f32 %v2651_v43, %v2447_v30  ;;  %v2776_v43 = vld [vmem:[#allocation2 + $0x19a] sm:$0xff] }
 0x367   : > { %v3036_v52 = vadd.f32 %v5073_v40, %v3002_v20  ;;  %v2391_v45 = vpop.f32.mrf.mxu0 }
 0x368   : > { %3796 = vmatmul.msk.f32.gmra.mxu1 %vm506_vm2, %v2495_v0 }
 0x369   : > { %v3068_v17 = vmax.f32 %v3036_v52, 0.0  ;;  %3830 = vmatmul.msk.f32.gmra.mxu2 %vm506_vm2, %v2773_v12  ;;  %v2450_v52 = vadd.f32 %v5158_v18, %v2171_v22 }
 0x36b   : > { %3846 = vmatmul.msk.f32.gmra.mxu3 %vm506_vm2, %v3068_v17 }
 0x36c   : > { %v2929_v15 = vpop.f32.mrf.mxu2 }
 0x36d   : > { %v3003_v14 = vadd.f32 %v2929_v15, %v2725_v63  ;;  %v2654_v55 = vpop.f32.mrf.mxu1  ;;  %v2499_v15 = vld [vmem:[#allocation2 + $0x1a1] sm:$0xff] }
 0x36e   : > { %v2726_v31 = vadd.f32 %v2654_v55, %v2448_v47 }
 0x36f   : > { %v3037_v13 = vadd.f32 %v5073_v40, %v3003_v14  ;;  %v2451_v14 = vadd.f32 %v2385_v29, %v2172_v10  ;;  %v2452_v29 = vadd.f32 %v2388_v33, %v2173_v5  ;;  %v2176_v10 = vadd.f32 %v5083_v62, %v4969_v9 }
 0x370   : > { %3797 = vmatmul.msk.f32.gmra.mxu1 %vm506_vm2, %v4904_v60 }
 0x371   : > { %v3069_v46 = vmax.f32 %v3037_v13, 0.0  ;;  %3831 = vmatmul.msk.f32.gmra.mxu2 %vm506_vm2, %v4926_v2 }
 0x373   : > { %3847 = vmatmul.msk.f32.gmra.mxu3 %vm506_vm2, %v3069_v46 }
 0x374   : > { %v2932_v27 = vpop.f32.mrf.mxu2 }
 0x375   : > { %v3004_v37 = vadd.f32 %v2932_v27, %v2726_v31  ;;  %v2657_v24 = vpop.f32.mrf.mxu1 }
 0x376   : > { %v2727_v2 = vadd.f32 %v2657_v24, %v2449_v21 }
 0x377   : > { %v3038_v42 = vadd.f32 %v5073_v40, %v3004_v37 }
 0x378   : > { %3798 = vmatmul.msk.f32.gmra.mxu1 %vm506_vm2, %v4918_v19  ;;  %v5205_v19 = vpop.f32.mrf.mxu3 }
 0x379   : > { %v3070_v60 = vmax.f32 %v3038_v42, 0.0  ;;  %3832 = vmatmul.msk.f32.gmra.mxu2 %vm506_vm2, %v4934_v25  ;;  %v2394_v25 = vpop.f32.mrf.mxu0 }
 0x37b   : > { %3848 = vmatmul.msk.f32.gmra.mxu3 %vm506_vm2, %v3070_v60 }
 0x37c   : > { %v2935_v38 = vpop.f32.mrf.mxu2 }
 0x37d   : > { %v3005_v20 = vadd.f32 %v2935_v38, %v2727_v2  ;;  %v2660_v49 = vpop.f32.mrf.mxu1  ;;  %v2174_v2 = vadd.f32 %v5061_v7, %v4953_v32  ;;  %v2175_v32 = vadd.f32 %v5075_v36, %v4960_v56 }
 0x37e   : > { %v2728_v12 = vadd.f32 %v2660_v49, %v2450_v52  ;;  %v5229_v49 = vld [vmem:[%s5431_s4 + $0x2] ss:$0 sm:$0xff] }
 0x37f   : > { %v3039_v16 = vadd.f32 %v5073_v40, %v3005_v20  ;;  %v2453_v57 = vadd.f32 %v2391_v45, %v2174_v2  ;;  %v3337_v52 = vld [vmem:[%s3946_s28] sm:$0xff] }
 0x380   : > { %3799 = vmatmul.msk.f32.gmra.mxu1 %vm506_vm2, %v2498_v51  ;;  %v5214_v13 = vpop.f32.mrf.mxu3 }
 0x381   : > { %v3071_v0 = vmax.f32 %v3039_v16, 0.0  ;;  %3833 = vmatmul.msk.f32.gmra.mxu2 %vm506_vm2, %v2776_v43  ;;  %v2397_v46 = vpop.f32.mrf.mxu0 }
 0x383   : > { %3849 = vmatmul.msk.f32.gmra.mxu3 %vm506_vm2, %v3071_v0  ;;  %v2454_v0 = vadd.f32 %v2394_v25, %v2175_v32  ;;  %v3340_v32 = vld [vmem:[%s3946_s28 + $0x18] sm:$0xff] }
 0x384   : > { %v2938_v30 = vpop.f32.mrf.mxu2 }
 0x385   : > { %v3006_v17 = vadd.f32 %v2938_v30, %v2728_v12  ;;  %v2663_v63 = vpop.f32.mrf.mxu1 }
 0x386   : > { %v2729_v53 = vadd.f32 %v2663_v63, %v2451_v14 }
 0x387   : > { %v3040_v18 = vadd.f32 %v5073_v40, %v3006_v17 }
 0x388   : > { %3800 = vmatmul.msk.f32.gmra.mxu1 %vm506_vm2, %v2499_v15  ;;  %v5220_v21 = vpop.f32.mrf.mxu3 }
 0x389   : > { %v3072_v55 = vmax.f32 %v3040_v18, 0.0  ;;  %3834 = vmatmul.msk.f32.gmra.mxu2 %vm506_vm2, %v2777_v26  ;;  %v2400_v38 = vpop.f32.mrf.mxu0 }
 0x38b   : > { %3850 = vmatmul.msk.f32.gmra.mxu3 %vm506_vm2, %v3072_v55  ;;  %v3338_v55 = vld [vmem:[%s3946_s28 + $0x8] sm:$0xff] }
 0x38c   : > { %v2941_v47 = vpop.f32.mrf.mxu2 }
 0x38d   : > { %v3007_v31 = vadd.f32 %v2941_v47, %v2729_v53  ;;  %v2666_v27 = vpop.f32.mrf.mxu1  ;;  %v2455_v53 = vadd.f32 %v2397_v46, %v2176_v10 }
 0x38e   : > { %v2730_v24 = vadd.f32 %v2666_v27, %v2452_v29 }
 0x38f   : > { %v3041_v41 = vadd.f32 %v5073_v40, %v3007_v31 }
 0x391   : > { %v3073_v37 = vmax.f32 %v3041_v41, 0.0  ;;  %v2403_v12 = vpop.f32.mrf.mxu0 }
 0x393   : > { %3851 = vmatmul.msk.f32.gmra.mxu3 %vm506_vm2, %v3073_v37 }
 0x394   : > { %v2944_v6 = vpop.f32.mrf.mxu2 }
 0x395   : > { %v3008_v42 = vadd.f32 %v2944_v6, %v2730_v24  ;;  %v2669_v60 = vpop.f32.mrf.mxu1  ;;  %v2177_v24 = vadd.f32 %v5094_v48, %v4979_v58 }
 0x396   : > { %v2731_v33 = vadd.f32 %v2669_v60, %v2453_v57 }
 0x397   : > { %v3042_v20 = vadd.f32 %v5073_v40, %v3008_v42  ;;  %v3339_v42 = vld [vmem:[%s3946_s28 + $0x10] sm:$0xff]  ;;  %v2456_v60 = vadd.f32 %v2400_v38, %v2177_v24 }
 0x399   : > { %v3074_v4 = vmax.f32 %v3042_v20, 0.0  ;;  %v2406_v27 = vpop.f32.mrf.mxu0 }
 0x39b   : > { %3852 = vmatmul.msk.f32.gmra.mxu3 %vm506_vm2, %v3074_v4 }
 0x39c   : > { %v2947_v51 = vpop.f32.mrf.mxu2 }
 0x39d   : > { %v3009_v43 = vadd.f32 %v2947_v51, %v2731_v33  ;;  %v2672_v22 = vpop.f32.mrf.mxu1 }
 0x39e   : > { %v3209_v16 = vpop.f32.mrf.mxu3  ;;  %v2732_v63 = vadd.f32 %v2672_v22, %v2454_v0  ;;  %v2178_v22 = vadd.f32 %v5108_v23, %v4990_v59  ;;  %v2179_v23 = vadd.f32 %v5119_v35, %v5001_v1 }
 0x39f   : > { %v3043_v7 = vadd.f32 %v5073_v40, %v3009_v43  ;;  %v3210_v45 = vadd.f32 %v5229_v49, %v3209_v16 }
 0x3a1   : > { %v3075_v30 = vmax.f32 %v3043_v7, 0.0  ;;  %v3305_v17 = vmax.f32 %v3210_v45, 0.0  ;;  %v2409_v51 = vpop.f32.mrf.mxu0  ;;  %v2457_v7 = vadd.f32 %v2403_v12, %v2178_v22 }
 0x3a3   : > { %v3369_v15 = vadd.f32 %v3337_v52, %v3305_v17  ;;  %3853 = vmatmul.msk.f32.gmra.mxu3 %vm506_vm2, %v3075_v30 }
 0x3a4   : > { %v2950_v56 = vpop.f32.mrf.mxu2 }
 0x3a5   : > { %3401 = vst.msk [vmem:[%s5241_s11] sm:$0xff] %vm264_vm0, %v3369_v15  ;;  %v3010_v36 = vadd.f32 %v2950_v56, %v2732_v63  ;;  %v2675_v25 = vpop.f32.mrf.mxu1 }
 0x3a6   : > { %v3212_v26 = vpop.f32.mrf.mxu3  ;;  %v2733_v5 = vadd.f32 %v2675_v25, %v2455_v53  ;;  %v3341_v25 = vld [vmem:[%s3946_s28 + $0x20] sm:$0xff] }
 0x3a7   : > { %v3044_v18 = vadd.f32 %v5073_v40, %v3010_v36  ;;  %v3213_v14 = vadd.f32 %v5229_v49, %v3212_v26  ;;  %v2458_v26 = vadd.f32 %v2406_v27, %v2179_v23 }
 0x3a9   : > { %v3076_v47 = vmax.f32 %v3044_v18, 0.0  ;;  %v3306_v31 = vmax.f32 %v3213_v14, 0.0  ;;  %v2412_v56 = vpop.f32.mrf.mxu0 }
 0x3ab   : > { %v3370_v41 = vadd.f32 %v3338_v55, %v3306_v31  ;;  %3854 = vmatmul.msk.f32.gmra.mxu3 %vm506_vm2, %v3076_v47  ;;  %v2180_v31 = vadd.f32 %v5129_v61, %v5007_v39 }
 0x3ac   : > { %v2953_v29 = vpop.f32.mrf.mxu2 }
 0x3ad   : > { %3402 = vst.msk [vmem:[%s5241_s11 + $0x8] sm:$0xff] %vm264_vm0, %v3370_v41  ;;  %v3011_v37 = vadd.f32 %v2953_v29, %v2733_v5  ;;  %v2678_v9 = vpop.f32.mrf.mxu1  ;;  %v3342_v41 = vld [vmem:[%s3946_s28 + $0x28] sm:$0xff]  ;;  %v2459_v29 = vadd.f32 %v2409_v51, %v2180_v31 }
 0x3ae   : > { %v3215_v62 = vpop.f32.mrf.mxu3  ;;  %v2734_v57 = vadd.f32 %v2678_v9, %v2456_v60  ;;  %v2181_v60 = vadd.f32 %v5142_v8, %v5017_v11 }
 0x3af   : > { %v3045_v6 = vadd.f32 %v5073_v40, %v3011_v37  ;;  %v3216_v46 = vadd.f32 %v5229_v49, %v3215_v62 }
 0x3b1   : > { %v3077_v2 = vmax.f32 %v3045_v6, 0.0  ;;  %v3307_v20 = vmax.f32 %v3216_v46, 0.0  ;;  %v2415_v37 = vpop.f32.mrf.mxu0 }
 0x3b3   : > { %v3371_v4 = vadd.f32 %v3339_v42, %v3307_v20  ;;  %3855 = vmatmul.msk.f32.gmra.mxu3 %vm506_vm2, %v3077_v2 }
 0x3b4   : > { %v2956_v33 = vpop.f32.mrf.mxu2 }
 0x3b5   : > { %3403 = vst.msk [vmem:[%s5241_s11 + $0x10] sm:$0xff] %vm264_vm0, %v3371_v4  ;;  %v3012_v43 = vadd.f32 %v2956_v33, %v2734_v57  ;;  %v2681_v58 = vpop.f32.mrf.mxu1  ;;  %v3343_v57 = vld [vmem:[%s3946_s28 + $0x30] sm:$0xff]  ;;  %v2460_v4 = vadd.f32 %v2412_v56, %v2181_v60  ;;  %v2183_v56 = vadd.f32 %v5168_v28, %v5031_v54  ;;  %v5555_v28 = vld [vmem:[#allocation4_spill] sm:$0xff] }
 0x3b6   : > { %v3218_v48 = vpop.f32.mrf.mxu3  ;;  %v2735_v0 = vadd.f32 %v2681_v58, %v2457_v7 }
 0x3b7   : > { %v3046_v16 = vadd.f32 %v5073_v40, %v3012_v43  ;;  %v3219_v38 = vadd.f32 %v5229_v49, %v3218_v48 }
 0x3b9   : > { %v3078_v45 = vmax.f32 %v3046_v16, 0.0  ;;  %v3308_v52 = vmax.f32 %v3219_v38, 0.0  ;;  %v2418_v43 = vpop.f32.mrf.mxu0  ;;  %v2182_v38 = vadd.f32 %v5156_v3, %v5024_v50 }
 0x3bb   : > { %v3372_v30 = vadd.f32 %v3340_v32, %v3308_v52  ;;  %3856 = vmatmul.msk.f32.gmra.mxu3 %vm506_vm2, %v3078_v45  ;;  %v3344_v45 = vld [vmem:[%s3946_s28 + $0x38] sm:$0xff]  ;;  %v2461_v52 = vadd.f32 %v2415_v37, %v2182_v38 }
 0x3bc   : > { %v2959_v17 = vpop.f32.mrf.mxu2 }
 0x3bd   : > { %3404 = vst.msk [vmem:[%s5241_s11 + $0x18] sm:$0xff] %vm264_vm0, %v3372_v30  ;;  %v3013_v63 = vadd.f32 %v2959_v17, %v2735_v0  ;;  %v2684_v15 = vpop.f32.mrf.mxu1 }
 0x3be   : > { %v3221_v59 = vpop.f32.mrf.mxu3  ;;  %v2736_v14 = vadd.f32 %v2684_v15, %v2458_v26  ;;  %v2462_v26 = vadd.f32 %v2418_v43, %v2183_v56 }
 0x3bf   : > { %v3047_v36 = vadd.f32 %v5073_v40, %v3013_v63  ;;  %v3222_v12 = vadd.f32 %v5229_v49, %v3221_v59 }
 0x3c1   : > { %v3079_v10 = vmax.f32 %v3047_v36, 0.0  ;;  %v3309_v18 = vmax.f32 %v3222_v12, 0.0  ;;  %v2421_v59 = vpop.f32.mrf.mxu0 }
 0x3c3   : > { %v3373_v55 = vadd.f32 %v3341_v25, %v3309_v18  ;;  %3857 = vmatmul.msk.f32.gmra.mxu3 %vm506_vm2, %v3079_v10  ;;  %v3345_v25 = vld [vmem:[%s3946_s28 + $0x40] sm:$0xff] }
 0x3c4   : > { %v2962_v53 = vpop.f32.mrf.mxu2 }
 0x3c5   : > { %3405 = vst.msk [vmem:[%s5241_s11 + $0x20] sm:$0xff] %vm264_vm0, %v3373_v55  ;;  %v3014_v47 = vadd.f32 %v2962_v53, %v2736_v14  ;;  %v2687_v1 = vpop.f32.mrf.mxu1 }
 0x3c6   : > { %v3224_v35 = vpop.f32.mrf.mxu3  ;;  %v2737_v24 = vadd.f32 %v2687_v1, %v2459_v29 }
 0x3c7   : > { %v3048_v5 = vadd.f32 %v5073_v40, %v3014_v47  ;;  %v3225_v27 = vadd.f32 %v5229_v49, %v3224_v35  ;;  %v2184_v35 = vadd.f32 %v5177_v44, %v5555_v28 }
 0x3c9   : > { %v3080_v9 = vmax.f32 %v3048_v5, 0.0  ;;  %v3310_v62 = vmax.f32 %v3225_v27, 0.0  ;;  %v2424_v27 = vpop.f32.mrf.mxu0  ;;  %v2463_v29 = vadd.f32 %v2421_v59, %v2184_v35 }
 0x3cb   : > { %v3374_v6 = vadd.f32 %v3342_v41, %v3310_v62  ;;  %3858 = vmatmul.msk.f32.gmra.mxu3 %vm506_vm2, %v3080_v9  ;;  %v3346_v41 = vld [vmem:[%s3946_s28 + $0x48] sm:$0xff] }
 0x3cc   : > { %v2965_v46 = vpop.f32.mrf.mxu2 }
 0x3cd   : > { %3406 = vst.msk [vmem:[%s5241_s11 + $0x28] sm:$0xff] %vm264_vm0, %v3374_v6  ;;  %v3015_v42 = vadd.f32 %v2965_v46, %v2737_v24  ;;  %v2690_v39 = vpop.f32.mrf.mxu1 }
 0x3ce   : > { %v3227_v61 = vpop.f32.mrf.mxu3  ;;  %v2738_v58 = vadd.f32 %v2690_v39, %v2460_v4  ;;  %v5556_v39 = vld [vmem:[#allocation3_spill] sm:$0xff] }
 0x3cf   : > { %v3049_v2 = vadd.f32 %v5073_v40, %v3015_v42  ;;  %v3228_v20 = vadd.f32 %v5229_v49, %v3227_v61  ;;  %v2185_v61 = vadd.f32 %v5191_v34, %v5556_v39 }
 0x3d1   : > { %v3081_v33 = vmax.f32 %v3049_v2, 0.0  ;;  %v3311_v51 = vmax.f32 %v3228_v20, 0.0  ;;  %v3347_v20 = vld [vmem:[%s3946_s28 + $0x50] sm:$0xff] }
 0x3d3   : > { %v3375_v48 = vadd.f32 %v3343_v57, %v3311_v51  ;;  %3859 = vmatmul.msk.f32.gmra.mxu3 %vm506_vm2, %v3081_v33  ;;  %v2464_v57 = vadd.f32 %v2424_v27, %v2185_v61  ;;  %v2427_v51 = vpop.f32.mrf.mxu0 }
 0x3d4   : > { %v2968_v22 = vpop.f32.mrf.mxu2 }
 0x3d5   : > { %3407 = vst.msk [vmem:[%s5241_s11 + $0x30] sm:$0xff] %vm264_vm0, %v3375_v48  ;;  %v3016_v16 = vadd.f32 %v2968_v22, %v2738_v58  ;;  %v2693_v11 = vpop.f32.mrf.mxu1 }
 0x3d6   : > { %v3230_v8 = vpop.f32.mrf.mxu3  ;;  %v2739_v17 = vadd.f32 %v2693_v11, %v2461_v52  ;;  %v5557_v11 = vld [vmem:[#allocation5_spill] sm:$0xff] }
 0x3d7   : > { %v3050_v32 = vadd.f32 %v5073_v40, %v3016_v16  ;;  %v3231_v7 = vadd.f32 %v5229_v49, %v3230_v8  ;;  %v2186_v8 = vadd.f32 %v5205_v19, %v5557_v11 }
 0x3d9   : > { %v3082_v0 = vmax.f32 %v3050_v32, 0.0  ;;  %v3312_v30 = vmax.f32 %v3231_v7, 0.0  ;;  %v3348_v7 = vld [vmem:[%s3946_s28 + $0x58] sm:$0xff] }
 0x3db   : > { %v3376_v63 = vadd.f32 %v3344_v45, %v3312_v30  ;;  %3860 = vmatmul.msk.f32.gmra.mxu3 %vm506_vm2, %v3082_v0  ;;  %v2465_v45 = vadd.f32 %v2427_v51, %v2186_v8  ;;  %v3353_v51 = vld [vmem:[%s3946_s28 + $0x80] sm:$0xff] }
 0x3dc   : > { %v2971_v15 = vpop.f32.mrf.mxu2 }
 0x3dd   : > { %3408 = vst.msk [vmem:[%s5241_s11 + $0x38] sm:$0xff] %vm264_vm0, %v3376_v63  ;;  %v3017_v23 = vadd.f32 %v2971_v15, %v2739_v17  ;;  %v2696_v50 = vpop.f32.mrf.mxu1  ;;  %v2430_v63 = vpop.f32.mrf.mxu0 }
 0x3de   : > { %v3233_v3 = vpop.f32.mrf.mxu3  ;;  %v2740_v14 = vadd.f32 %v2696_v50, %v2462_v26  ;;  %v5558_v50 = vld [vmem:[#allocation7_spill] sm:$0xff] }
 0x3df   : > { %v3051_v36 = vadd.f32 %v5073_v40, %v3017_v23  ;;  %v3234_v12 = vadd.f32 %v5229_v49, %v3233_v3  ;;  %v2187_v3 = vadd.f32 %v5214_v13, %v5558_v50 }
 0x3e1   : > { %v3083_v10 = vmax.f32 %v3051_v36, 0.0  ;;  %v3313_v18 = vmax.f32 %v3234_v12, 0.0  ;;  %v3349_v12 = vld [vmem:[%s3946_s28 + $0x60] sm:$0xff] }
 0x3e3   : > { %v3377_v55 = vadd.f32 %v3345_v25, %v3313_v18  ;;  %3861 = vmatmul.msk.f32.gmra.mxu3 %vm506_vm2, %v3083_v10  ;;  %v2466_v25 = vadd.f32 %v2430_v63, %v2187_v3 }
 0x3e4   : > { %v2974_v53 = vpop.f32.mrf.mxu2 }
 0x3e5   : > { %3409 = vst.msk [vmem:[%s5241_s11 + $0x40] sm:$0xff] %vm264_vm0, %v3377_v55  ;;  %v3018_v47 = vadd.f32 %v2974_v53, %v2740_v14  ;;  %v2699_v1 = vpop.f32.mrf.mxu1 }
 0x3e6   : > { %v3236_v54 = vpop.f32.mrf.mxu3  ;;  %v2741_v62 = vadd.f32 %v2699_v1, %v2463_v29  ;;  %v5559_v1 = vld [vmem:[#allocation6_spill] sm:$0xff] }
 0x3e7   : > { %v3052_v31 = vadd.f32 %v5073_v40, %v3018_v47  ;;  %v3237_v5 = vadd.f32 %v5229_v49, %v3236_v54  ;;  %v2433_v47 = vpop.f32.mrf.mxu0  ;;  %v2188_v54 = vadd.f32 %v5220_v21, %v5559_v1 }
 0x3e9   : > { %v3084_v37 = vmax.f32 %v3052_v31, 0.0  ;;  %v3314_v9 = vmax.f32 %v3237_v5, 0.0  ;;  %v3350_v5 = vld [vmem:[%s3946_s28 + $0x68] sm:$0xff]  ;;  %v2467_v27 = vadd.f32 %v2433_v47, %v2188_v54 }
 0x3eb   : > { %v3378_v24 = vadd.f32 %v3346_v41, %v3314_v9  ;;  %3862 = vmatmul.msk.f32.gmra.mxu3 %vm506_vm2, %v3084_v37 }
 0x3ec   : > { %v2977_v6 = vpop.f32.mrf.mxu2 }
 0x3ed   : > { %3410 = vst.msk [vmem:[%s5241_s11 + $0x48] sm:$0xff] %vm264_vm0, %v3378_v24  ;;  %v3019_v46 = vadd.f32 %v2977_v6, %v2741_v62  ;;  %v2702_v44 = vpop.f32.mrf.mxu1 }
 0x3ee   : > { %v3239_v42 = vpop.f32.mrf.mxu3  ;;  %v2742_v43 = vadd.f32 %v2702_v44, %v2464_v57  ;;  %v3351_v44 = vld [vmem:[%s3946_s28 + $0x70] sm:$0xff] }
 0x3ef   : > { %v3053_v60 = vadd.f32 %v5073_v40, %v3019_v46  ;;  %v3240_v2 = vadd.f32 %v5229_v49, %v3239_v42 }
 0x3f1   : > { %v3085_v4 = vmax.f32 %v3053_v60, 0.0  ;;  %v3315_v33 = vmax.f32 %v3240_v2, 0.0 }
 0x3f3   : > { %v3379_v58 = vadd.f32 %v3347_v20, %v3315_v33  ;;  %3863 = vmatmul.msk.f32.gmra.mxu3 %vm506_vm2, %v3085_v4  ;;  %v3352_v20 = vld [vmem:[%s3946_s28 + $0x78] sm:$0xff] }
 0x3f4   : > { %v2980_v48 = vpop.f32.mrf.mxu2 }
 0x3f5   : > { %3411 = vst.msk [vmem:[%s5241_s11 + $0x50] sm:$0xff] %vm264_vm0, %v3379_v58  ;;  %v3020_v22 = vadd.f32 %v2980_v48, %v2742_v43  ;;  %v2705_v34 = vpop.f32.mrf.mxu1 }
 0x3f6   : > { %v3242_v16 = vpop.f32.mrf.mxu3  ;;  %v2743_v30 = vadd.f32 %v2705_v34, %v2465_v45  ;;  %v3354_v34 = vld [vmem:[%s3946_s28 + $0x88] sm:$0xff] }
 0x3f7   : > { %v3054_v38 = vadd.f32 %v5073_v40, %v3020_v22  ;;  %v3243_v32 = vadd.f32 %v5229_v49, %v3242_v16 }
 0x3f9   : > { %v3086_v52 = vmax.f32 %v3054_v38, 0.0  ;;  %v3316_v0 = vmax.f32 %v3243_v32, 0.0  ;;  %v3355_v32 = vld [vmem:[%s3946_s28 + $0x90] sm:$0xff] }
 0x3fb   : > { %v3380_v17 = vadd.f32 %v3348_v7, %v3316_v0  ;;  %3864 = vmatmul.msk.f32.gmra.mxu3 %vm506_vm2, %v3086_v52 }
 0x3fc   : > { %v2983_v15 = vpop.f32.mrf.mxu2 }
 0x3fd   : > { %3412 = vst.msk [vmem:[%s5241_s11 + $0x58] sm:$0xff] %vm264_vm0, %v3380_v17  ;;  %v3021_v59 = vadd.f32 %v2983_v15, %v2743_v30  ;;  %v2708_v19 = vpop.f32.mrf.mxu1  ;;  %v3356_v30 = vld [vmem:[%s3946_s28 + $0x98] sm:$0xff] }
 0x3fe   : > { %v3245_v23 = vpop.f32.mrf.mxu3  ;;  %v2744_v18 = vadd.f32 %v2708_v19, %v2466_v25  ;;  %v3357_v19 = vld [vmem:[%s3946_s28 + $0xa0] sm:$0xff] }
 0x3ff   : > { %v3055_v56 = vadd.f32 %v5073_v40, %v3021_v59  ;;  %v3246_v36 = vadd.f32 %v5229_v49, %v3245_v23 }
 0x401   : > { %v3087_v26 = vmax.f32 %v3055_v56, 0.0  ;;  %v3317_v10 = vmax.f32 %v3246_v36, 0.0  ;;  %v3358_v36 = vld [vmem:[%s3946_s28 + $0xa8] sm:$0xff] }
 0x403   : > { %v3381_v14 = vadd.f32 %v3349_v12, %v3317_v10  ;;  %3865 = vmatmul.msk.f32.gmra.mxu3 %vm506_vm2, %v3087_v26 }
 0x404   : > { %v2986_v55 = vpop.f32.mrf.mxu2 }
 0x405   : > { %3413 = vst.msk [vmem:[%s5241_s11 + $0x60] sm:$0xff] %vm264_vm0, %v3381_v14  ;;  %v3022_v53 = vadd.f32 %v2986_v55, %v2744_v18  ;;  %v2711_v31 = vpop.f32.mrf.mxu1  ;;  %v3359_v18 = vld [vmem:[%s3946_s28 + $0xb0] sm:$0xff] }
 0x406   : > { %v3248_v13 = vpop.f32.mrf.mxu3  ;;  %v2745_v37 = vadd.f32 %v2711_v31, %v2467_v27  ;;  %v3361_v31 = vld [vmem:[%s3946_s28 + $0xc0] sm:$0xff] }
 0x407   : > { %v3056_v28 = vadd.f32 %v5073_v40, %v3022_v53  ;;  %v3249_v35 = vadd.f32 %v5229_v49, %v3248_v13  ;;  %v3360_v13 = vld [vmem:[%s3946_s28 + $0xb8] sm:$0xff] }
 0x409   : > { %v3088_v41 = vmax.f32 %v3056_v28, 0.0  ;;  %v3318_v29 = vmax.f32 %v3249_v35, 0.0 }
 0x40b   : > { %v3382_v9 = vadd.f32 %v3350_v5, %v3318_v29  ;;  %3866 = vmatmul.msk.f32.gmra.mxu3 %vm506_vm2, %v3088_v41 }
 0x40c   : > { %v2989_v62 = vpop.f32.mrf.mxu2 }
 0x40d   : > { %3414 = vst.msk [vmem:[%s5241_s11 + $0x68] sm:$0xff] %vm264_vm0, %v3382_v9  ;;  %v3023_v21 = vadd.f32 %v2989_v62, %v2745_v37  ;;  %v3362_v37 = vld [vmem:[%s3946_s28 + $0xc8] sm:$0xff] }
 0x40e   : > { %v3251_v24 = vpop.f32.mrf.mxu3 }
 0x40f   : > { %v3057_v6 = vadd.f32 %v5073_v40, %v3023_v21  ;;  %v3252_v46 = vadd.f32 %v5229_v49, %v3251_v24 }
 0x411   : > { %v3089_v42 = vmax.f32 %v3057_v6, 0.0  ;;  %v3319_v39 = vmax.f32 %v3252_v46, 0.0  ;;  %v3363_v6 = vld [vmem:[%s3946_s28 + $0xd0] sm:$0xff] }
 0x413   : > { %v3383_v61 = vadd.f32 %v3351_v44, %v3319_v39  ;;  %3867 = vmatmul.msk.f32.gmra.mxu3 %vm506_vm2, %v3089_v42 }
 0x415   : > { %3415 = vst.msk [vmem:[%s5241_s11 + $0x70] sm:$0xff] %vm264_vm0, %v3383_v61  ;;  %v3364_v61 = vld [vmem:[%s3946_s28 + $0xd8] sm:$0xff] }
 0x416   : > { %v3254_v60 = vpop.f32.mrf.mxu3 }
 0x417   : > { %v3255_v2 = vadd.f32 %v5229_v49, %v3254_v60 }
 0x419   : > { %v3320_v57 = vmax.f32 %v3255_v2, 0.0 }
 0x41b   : > { %v3384_v40 = vadd.f32 %v3352_v20, %v3320_v57 }
 0x41d   : > { %3416 = vst.msk [vmem:[%s5241_s11 + $0x78] sm:$0xff] %vm264_vm0, %v3384_v40  ;;  %v3365_v40 = vld [vmem:[%s3946_s28 + $0xe0] sm:$0xff] }
 0x41e   : > { %v3257_v4 = vpop.f32.mrf.mxu3 }
 0x41f   : > { %v3258_v33 = vadd.f32 %v5229_v49, %v3257_v4 }
 0x421   : > { %v3321_v43 = vmax.f32 %v3258_v33, 0.0 }
 0x423   : > { %v3385_v58 = vadd.f32 %v3353_v51, %v3321_v43 }
 0x425   : > { %3417 = vst.msk [vmem:[%s5241_s11 + $0x80] sm:$0xff] %vm264_vm0, %v3385_v58  ;;  %v3366_v58 = vld [vmem:[%s3946_s28 + $0xe8] sm:$0xff] }
 0x426   : > { %v3260_v48 = vpop.f32.mrf.mxu3 }
 0x427   : > { %v3261_v22 = vadd.f32 %v5229_v49, %v3260_v48 }
 0x429   : > { %v3322_v16 = vmax.f32 %v3261_v22, 0.0 }
 0x42b   : > { %v3386_v11 = vadd.f32 %v3354_v34, %v3322_v16 }
 0x42d   : > { %3418 = vst.msk [vmem:[%s5241_s11 + $0x88] sm:$0xff] %vm264_vm0, %v3386_v11  ;;  %v3367_v11 = vld [vmem:[%s3946_s28 + $0xf0] sm:$0xff] }
 0x42e   : > { %v3263_v8 = vpop.f32.mrf.mxu3 }
 0x42f   : > { %v3264_v38 = vadd.f32 %v5229_v49, %v3263_v8 }
 0x431   : > { %v3323_v7 = vmax.f32 %v3264_v38, 0.0 }
 0x433   : > { %v3387_v45 = vadd.f32 %v3355_v32, %v3323_v7 }
 0x435   : > { %3419 = vst.msk [vmem:[%s5241_s11 + $0x90] sm:$0xff] %vm264_vm0, %v3387_v45  ;;  %v3368_v45 = vld [vmem:[%s3946_s28 + $0xf8] sm:$0xff] }
 0x436   : > { %v3266_v52 = vpop.f32.mrf.mxu3 }
 0x437   : > { %v3267_v0 = vadd.f32 %v5229_v49, %v3266_v52 }
 0x439   : > { %v3324_v17 = vmax.f32 %v3267_v0, 0.0 }
 0x43b   : > { %v3388_v63 = vadd.f32 %v3356_v30, %v3324_v17 }
 0x43d   : > { %3420 = vst.msk [vmem:[%s5241_s11 + $0x98] sm:$0xff] %vm264_vm0, %v3388_v63 }
 0x43e   : > { %v3269_v15 = vpop.f32.mrf.mxu3 }
 0x43f   : > { %v3270_v59 = vadd.f32 %v5229_v49, %v3269_v15 }
 0x441   : > { %v3325_v23 = vmax.f32 %v3270_v59, 0.0 }
 0x443   : > { %v3389_v50 = vadd.f32 %v3357_v19, %v3325_v23 }
 0x445   : > { %3421 = vst.msk [vmem:[%s5241_s11 + $0xa0] sm:$0xff] %vm264_vm0, %v3389_v50 }
 0x446   : > { %v3272_v3 = vpop.f32.mrf.mxu3 }
 0x447   : > { %v3273_v56 = vadd.f32 %v5229_v49, %v3272_v3 }
 0x449   : > { %v3326_v12 = vmax.f32 %v3273_v56, 0.0 }
 0x44b   : > { %v3390_v25 = vadd.f32 %v3358_v36, %v3326_v12 }
 0x44d   : > { %3422 = vst.msk [vmem:[%s5241_s11 + $0xa8] sm:$0xff] %vm264_vm0, %v3390_v25 }
 0x44e   : > { %v3275_v26 = vpop.f32.mrf.mxu3 }
 0x44f   : > { %v3276_v10 = vadd.f32 %v5229_v49, %v3275_v26 }
 0x451   : > { %v3327_v14 = vmax.f32 %v3276_v10, 0.0 }
 0x453   : > { %v3391_v55 = vadd.f32 %v3359_v18, %v3327_v14 }
 0x455   : > { %3423 = vst.msk [vmem:[%s5241_s11 + $0xb0] sm:$0xff] %vm264_vm0, %v3391_v55 }
 0x456   : > { %v3278_v53 = vpop.f32.mrf.mxu3 }
 0x457   : > { %v3279_v47 = vadd.f32 %v5229_v49, %v3278_v53 }
 0x459   : > { %v3328_v1 = vmax.f32 %v3279_v47, 0.0 }
 0x45b   : > { %v3392_v54 = vadd.f32 %v3360_v13, %v3328_v1 }
 0x45d   : > { %3424 = vst.msk [vmem:[%s5241_s11 + $0xb8] sm:$0xff] %vm264_vm0, %v3392_v54 }
 0x45e   : > { %v3281_v28 = vpop.f32.mrf.mxu3 }
 0x45f   : > { %v3282_v35 = vadd.f32 %v5229_v49, %v3281_v28 }
 0x461   : > { %v3329_v5 = vmax.f32 %v3282_v35, 0.0 }
 0x463   : > { %v3393_v27 = vadd.f32 %v3361_v31, %v3329_v5 }
 0x465   : > { %3425 = vst.msk [vmem:[%s5241_s11 + $0xc0] sm:$0xff] %vm264_vm0, %v3393_v27 }
 0x466   : > { %v3284_v41 = vpop.f32.mrf.mxu3 }
 0x467   : > { %v3285_v29 = vadd.f32 %v5229_v49, %v3284_v41 }
 0x469   : > { %v3330_v9 = vmax.f32 %v3285_v29, 0.0 }
 0x46b   : > { %v3394_v62 = vadd.f32 %v3362_v37, %v3330_v9 }
 0x46d   : > { %3426 = vst.msk [vmem:[%s5241_s11 + $0xc8] sm:$0xff] %vm264_vm0, %v3394_v62 }
 0x46e   : > { %v3287_v21 = vpop.f32.mrf.mxu3 }
 0x46f   : > { %v3288_v24 = vadd.f32 %v5229_v49, %v3287_v21 }
 0x471   : > { %v3331_v46 = vmax.f32 %v3288_v24, 0.0 }
 0x473   : > { %v3395_v44 = vadd.f32 %v3363_v6, %v3331_v46 }
 0x475   : > { %3427 = vst.msk [vmem:[%s5241_s11 + $0xd0] sm:$0xff] %vm264_vm0, %v3395_v44 }
 0x476   : > { %v3290_v42 = vpop.f32.mrf.mxu3 }
 0x477   : > { %v3291_v39 = vadd.f32 %v5229_v49, %v3290_v42 }
 0x479   : > { %v3332_v60 = vmax.f32 %v3291_v39, 0.0 }
 0x47b   : > { %v3396_v2 = vadd.f32 %v3364_v61, %v3332_v60 }
 0x47d   : > { %3428 = vst.msk [vmem:[%s5241_s11 + $0xd8] sm:$0xff] %vm264_vm0, %v3396_v2 }
 0x47e   : > { %v3293_v20 = vpop.f32.mrf.mxu3 }
 0x47f   : > { %v3294_v57 = vadd.f32 %v5229_v49, %v3293_v20 }
 0x481   : > { %v3333_v4 = vmax.f32 %v3294_v57, 0.0 }
 0x483   : > { %v3397_v33 = vadd.f32 %v3365_v40, %v3333_v4 }
 0x485   : > { %3429 = vst.msk [vmem:[%s5241_s11 + $0xe0] sm:$0xff] %vm264_vm0, %v3397_v33 }
 0x486   : > { %v3296_v51 = vpop.f32.mrf.mxu3 }
 0x487   : > { %v3297_v43 = vadd.f32 %v5229_v49, %v3296_v51 }
 0x489   : > { %v3334_v48 = vmax.f32 %v3297_v43, 0.0 }
 0x48b   : > { %v3398_v22 = vadd.f32 %v3366_v58, %v3334_v48 }
 0x48d   : > { %3430 = vst.msk [vmem:[%s5241_s11 + $0xe8] sm:$0xff] %vm264_vm0, %v3398_v22 }
 0x48e   : > { %v3299_v34 = vpop.f32.mrf.mxu3 }
 0x48f   : > { %v3300_v16 = vadd.f32 %v5229_v49, %v3299_v34 }
 0x491   : > { %v3335_v8 = vmax.f32 %v3300_v16, 0.0 }
 0x493   : > { %v3399_v38 = vadd.f32 %v3367_v11, %v3335_v8 }
 0x495   : > { %3431 = vst.msk [vmem:[%s5241_s11 + $0xf0] sm:$0xff] %vm264_vm0, %v3399_v38 }
 0x496   : > { %v3302_v32 = vpop.f32.mrf.mxu3 }
 0x497   : > { %v3303_v7 = vadd.f32 %v5229_v49, %v3302_v32 }
 0x499   : > { %v3336_v52 = vmax.f32 %v3303_v7, 0.0 }
 0x49b   : > { %v3400_v0 = vadd.f32 %v3368_v45, %v3336_v52 }
 0x49d   : > { %3432 = vst.msk [vmem:[%s5241_s11 + $0xf8] sm:$0xff] %vm264_vm0, %v3400_v0 }
 0x49e PF: > { %s15_s18 = sadd.s32 1, %s3891_s18  }
 0x49f   : > { %p12_p4 = scmp.ge.s32.totalorder %s15_s18, 4  }
 0x4a1   :  { %14 = sbr.rel (!%p12_p4) target bundleno = 1 (0x1), region = 81 }

</bundles_post_ra>
